<compile_context>
chip_gen: v7x
topology: tpu7x:2x2x1
jax: 0.10.0
libtpu: 0.0.40
codegen_flags: <defaults>
</compile_context>

<pallas_src>
import jax
import jax.numpy as jnp
import numpy as np
from jax import lax
from jax.experimental import pallas as pl
from jax.experimental.pallas import tpu as pltpu

_K = 5          # conv kernel size (fixed by the module spec)
_BB = 8         # images per grid step; 8 keeps every block (8,128)-aligned.
                # (v5e could use 4, but 8 just splits the 224-row conv matmul
                #  into two MXU passes -- same work, simpler constraints.)


# ------------------------------ fused kernel ------------------------------- #

def _lenet_fused_kernel(xs_ref, t1_ref, cb1_ref, s1re_ref, s1ro_ref,
                        s1ce_ref, s1co_ref, t2_ref, cb2_ref, s2re_ref,
                        s2ro_ref, s2ce_ref, s2co_ref, w1p_ref, fb1_ref,
                        w2t_ref, fb2_ref, w3t_ref, fb3_ref, out_ref):
    f32 = jnp.float32
    bf16 = jnp.bfloat16

    def mm(a, b):
        return jnp.dot(a, b, preferred_element_type=f32)

    k = t1_ref.shape[0]               # 5
    bb = out_ref.shape[0]             # images per block
    rows2 = s2re_ref.shape[1]         # 10 * bb (conv2 output rows)
    hp2 = w1p_ref.shape[0]            # 5

    # ---- conv1 + bias + ReLU : 5 matmuls (bb*28, 96) @ (96, 168)
    acc1 = mm(xs_ref[0, 0], t1_ref[0])
    for ky in range(1, k):
        acc1 = acc1 + mm(xs_ref[ky, 0], t1_ref[ky])
    acc1 = jnp.maximum(acc1 + cb1_ref[...], 0.0).astype(bf16)

    # ---- 2x2 max-pool #1 : row-pair / col-pair one-hot selector matmuls
    rmax = jnp.maximum(mm(s1re_ref[...], acc1),
                       mm(s1ro_ref[...], acc1)).astype(bf16)
    p1 = jnp.maximum(mm(rmax, s1ce_ref[...]),
                     mm(rmax, s1co_ref[...])).astype(bf16)   # (bb*14, 84)

    # ---- conv2 + bias + ReLU : 5 matmuls over contiguous row windows of p1
    acc2 = mm(p1[0:rows2, :], t2_ref[0])
    for ky in range(1, k):
        acc2 = acc2 + mm(p1[ky * bb: ky * bb + rows2, :], t2_ref[ky])
    acc2 = jnp.maximum(acc2 + cb2_ref[...], 0.0).astype(bf16)  # (bb*10, 160)

    # ---- 2x2 max-pool #2
    r2 = jnp.maximum(mm(s2re_ref[...], acc2),
                     mm(s2ro_ref[...], acc2)).astype(bf16)
    p2 = jnp.maximum(mm(r2, s2ce_ref[...]),
                     mm(r2, s2co_ref[...])).astype(bf16)       # (bb*5, 80)

    # ---- fc1 (PyTorch (C,H,W) flatten order folded into w1p) + ReLU
    h = mm(p2[0:bb, :], w1p_ref[0])
    for hp in range(1, hp2):
        h = h + mm(p2[hp * bb:(hp + 1) * bb, :], w1p_ref[hp])
    h = jnp.maximum(h + fb1_ref[...], 0.0).astype(bf16)        # (bb, 120)

    # ---- fc2 + ReLU, fc3 (class dim padded to 128 lanes)
    h = jnp.maximum(mm(h, w2t_ref[...]) + fb2_ref[...], 0.0).astype(bf16)
    out_ref[...] = (mm(h, w3t_ref[...]) + fb3_ref[...]).astype(out_ref.dtype)


# ----------------------- host-side constant preparation --------------------- #

def build_constants(params, bb):
    """Rearrange PyTorch-layout weights into MXU-friendly matrices (setup only)."""
    w1 = np.asarray(params["conv1_w"], np.float32)   # (6, 3, 5, 5)
    b1 = np.asarray(params["conv1_b"], np.float32)
    w2 = np.asarray(params["conv2_w"], np.float32)   # (16, 6, 5, 5)
    b2 = np.asarray(params["conv2_b"], np.float32)
    fc1w = np.asarray(params["fc1_w"], np.float32)   # (120, 400)
    fc1b = np.asarray(params["fc1_b"], np.float32)
    fc2w = np.asarray(params["fc2_w"], np.float32)   # (84, 120)
    fc2b = np.asarray(params["fc2_b"], np.float32)
    fc3w = np.asarray(params["fc3_w"], np.float32)   # (10, 84)
    fc3b = np.asarray(params["fc3_b"], np.float32)

    K = _K
    cin1, W = 3, 32
    cout1, ho1, wo1 = 6, 28, 28
    hp1, wp1 = 14, 14
    cout2, ho2, wo2 = 16, 10, 10
    hp2, wp2 = 5, 5
    n_pad = 128

    # conv1 Toeplitz-in-(Cin*W): t1[ky, ci*W + wo + kx, co*wo1 + wo] = w1[co,ci,ky,kx]
    t1 = np.zeros((K, cin1 * W, cout1 * wo1), np.float32)
    wo = np.arange(wo1)
    for ky in range(K):
        for ci in range(cin1):
            for co in range(cout1):
                for kx in range(K):
                    t1[ky, ci * W + wo + kx, co * wo1 + wo] = w1[co, ci, ky, kx]

    # conv2 Toeplitz-in-(Cin*Wp1): t2[ky, ci*wp1 + wo + kx, co*wo2 + wo]
    t2 = np.zeros((K, cout1 * wp1, cout2 * wo2), np.float32)
    wo2a = np.arange(wo2)
    for ky in range(K):
        for ci in range(cout1):
            for co in range(cout2):
                for kx in range(K):
                    t2[ky, ci * wp1 + wo2a + kx, co * wo2 + wo2a] = w2[co, ci, ky, kx]

    cb1 = np.repeat(b1, wo1)[None, :]                 # (1, 168)
    cb2 = np.repeat(b2, wo2)[None, :]                 # (1, 160)

    # pool1 row selectors: activation rows are ordered (h, b_local).
    s1re = np.zeros((hp1 * bb, ho1 * bb), np.float32)
    s1ro = np.zeros_like(s1re)
    for hp in range(hp1):
        for b in range(bb):
            s1re[hp * bb + b, (2 * hp) * bb + b] = 1.0
            s1ro[hp * bb + b, (2 * hp + 1) * bb + b] = 1.0
    # pool1 column selectors, merged over channels: (168, 84)
    s1ce = np.zeros((cout1 * wo1, cout1 * wp1), np.float32)
    s1co = np.zeros_like(s1ce)
    wp = np.arange(wp1)
    for co in range(cout1):
        s1ce[co * wo1 + 2 * wp, co * wp1 + wp] = 1.0
        s1co[co * wo1 + 2 * wp + 1, co * wp1 + wp] = 1.0

    # pool2 selectors.
    s2re = np.zeros((hp2 * bb, ho2 * bb), np.float32)
    s2ro = np.zeros_like(s2re)
    for hp in range(hp2):
        for b in range(bb):
            s2re[hp * bb + b, (2 * hp) * bb + b] = 1.0
            s2ro[hp * bb + b, (2 * hp + 1) * bb + b] = 1.0
    s2ce = np.zeros((cout2 * wo2, cout2 * wp2), np.float32)
    s2co = np.zeros_like(s2ce)
    wpp = np.arange(wp2)
    for co in range(cout2):
        s2ce[co * wo2 + 2 * wpp, co * wp2 + wpp] = 1.0
        s2co[co * wo2 + 2 * wpp + 1, co * wp2 + wpp] = 1.0

    # fc1 with PyTorch (C,H,W) flatten order folded in: (hp2, cout2*wp2, 120)
    w1p = np.transpose(fc1w.reshape(120, cout2, hp2, wp2),
                       (2, 1, 3, 0)).reshape(hp2, cout2 * wp2, 120)

    # fc3 padded to a lane-dense 128-wide output.
    w3t = np.zeros((fc3w.shape[1], n_pad), np.float32)
    w3t[:, :fc3w.shape[0]] = fc3w.T
    fb3 = np.zeros((1, n_pad), np.float32)
    fb3[0, :fc3b.shape[0]] = fc3b

    bf16 = jnp.bfloat16
    f32 = jnp.float32
    consts = dict(
        t1=jnp.asarray(t1, bf16), cb1=jnp.asarray(cb1, f32),
        s1re=jnp.asarray(s1re, bf16), s1ro=jnp.asarray(s1ro, bf16),
        s1ce=jnp.asarray(s1ce, bf16), s1co=jnp.asarray(s1co, bf16),
        t2=jnp.asarray(t2, bf16), cb2=jnp.asarray(cb2, f32),
        s2re=jnp.asarray(s2re, bf16), s2ro=jnp.asarray(s2ro, bf16),
        s2ce=jnp.asarray(s2ce, bf16), s2co=jnp.asarray(s2co, bf16),
        w1p=jnp.asarray(w1p, bf16), fb1=jnp.asarray(fc1b[None, :], f32),
        w2t=jnp.asarray(fc2w.T.copy(), bf16), fb2=jnp.asarray(fc2b[None, :], f32),
        w3t=jnp.asarray(w3t, bf16), fb3=jnp.asarray(fb3, f32),
    )
    return consts


_CONST_ORDER = ("t1", "cb1", "s1re", "s1ro", "s1ce", "s1co",
                "t2", "cb2", "s2re", "s2ro", "s2ce", "s2co",
                "w1p", "fb1", "w2t", "fb2", "w3t", "fb3")


# --------------------------------- wrapper ---------------------------------- #

def net_forward_pallas(x_nchw, consts, bb=_BB):
    B, cin, H, W = x_nchw.shape
    n_cls = 10
    ho1 = H - (_K - 1)                               # 28
    g = pl.cdiv(B, bb)
    bp = g * bb
    if bp != B:
        x_nchw = jnp.pad(x_nchw, ((0, bp - B), (0, 0), (0, 0), (0, 0)))

    # (Bp,3,32,32) -> rows (h, b_local), cols ci*W + w; stack the 5 ky windows.
    xr = jnp.transpose(x_nchw, (0, 2, 1, 3)).reshape(bp, H, cin * W)
    xg = xr.reshape(g, bb, H, cin * W)
    windows = [jnp.transpose(xg[:, :, ky:ky + ho1, :], (0, 2, 1, 3))
               .reshape(g, ho1 * bb, cin * W) for ky in range(_K)]
    xs = jnp.stack(windows, axis=0).astype(jnp.bfloat16)   # (5, g, 28*bb, 96)

    wts = [consts[n] for n in _CONST_ORDER]

    def const_spec(a):
        nd = a.ndim
        return pl.BlockSpec(a.shape, lambda grp, _nd=nd: (0,) * _nd)

    out = pl.pallas_call(
        _lenet_fused_kernel,
        out_shape=jax.ShapeDtypeStruct((bp, 128), jnp.float32),
        grid=(g,),
        in_specs=[pl.BlockSpec((_K, 1, ho1 * bb, cin * W),
                               lambda grp: (0, grp, 0, 0))]
                 + [const_spec(a) for a in wts],
        out_specs=pl.BlockSpec((bb, 128), lambda grp: (grp, 0)),
        compiler_params=pltpu.CompilerParams(
            dimension_semantics=("parallel",)),
    )(xs, *wts)
    return out[:B, :n_cls]


# ------------------------ reference (pure JAX/XLA) -------------------------- #

def ref_forward(x, p):
    dn = ("NCHW", "OIHW", "NCHW")
    y = lax.conv_general_dilated(x, p["conv1_w"], (1, 1), "VALID",
                                 dimension_numbers=dn)
    y = jnp.maximum(y + p["conv1_b"][None, :, None, None], 0.0)
    y = lax.reduce_window(y, -jnp.inf, lax.max, (1, 1, 2, 2), (1, 1, 2, 2), "VALID")
    y = lax.conv_general_dilated(y, p["conv2_w"], (1, 1), "VALID",
                                 dimension_numbers=dn)
    y = jnp.maximum(y + p["conv2_b"][None, :, None, None], 0.0)
    y = lax.reduce_window(y, -jnp.inf, lax.max, (1, 1, 2, 2), (1, 1, 2, 2), "VALID")
    y = y.reshape(y.shape[0], -1)
    y = jnp.maximum(y @ p["fc1_w"].T + p["fc1_b"], 0.0)
    y = jnp.maximum(y @ p["fc2_w"].T + p["fc2_b"], 0.0)
    return y @ p["fc3_w"].T + p["fc3_b"]


# ------------------------------- parameters --------------------------------- #

def init_params(key):
    def uniform(k, shape, fan_in):
        bound = 1.0 / np.sqrt(fan_in)
        return jax.random.uniform(k, shape, jnp.float32, -bound, bound)

    ks = jax.random.split(key, 10)
    return {
        "conv1_w": uniform(ks[0], (6, 3, 5, 5), 3 * 25),
        "conv1_b": uniform(ks[1], (6,), 3 * 25),
        "conv2_w": uniform(ks[2], (16, 6, 5, 5), 6 * 25),
        "conv2_b": uniform(ks[3], (16,), 6 * 25),
        "fc1_w": uniform(ks[4], (120, 400), 400),
        "fc1_b": uniform(ks[5], (120,), 400),
        "fc2_w": uniform(ks[6], (84, 120), 120),
        "fc2_b": uniform(ks[7], (84,), 120),
        "fc3_w": uniform(ks[8], (10, 84), 84),
        "fc3_b": uniform(ks[9], (10,), 84),
    }


if __name__ == "__main__":
    key = jax.random.PRNGKey(0)
    pkey, xkey = jax.random.split(key)
    params = init_params(pkey)
    consts = build_constants(params, _BB)

    # B=16 -> 2 grid steps of 8 images: both v7x TensorCores get work.
    B = 16
    x = jax.random.normal(xkey, (B, 3, 32, 32), jnp.float32)  # NCHW, like PyTorch

    fwd = jax.jit(lambda xx: net_forward_pallas(xx, consts, _BB))
    out = jax.block_until_ready(fwd(x))
    assert out.shape == (B, 10)

    ref = jax.block_until_ready(ref_forward(x, params))
    np.testing.assert_allclose(np.asarray(out), np.asarray(ref),
                               rtol=2e-2, atol=2e-2)
    print("KERNEL_OK")
</pallas_src>

<mosaic_0001>
module attributes {stable_mosaic.version = 11 : i64} {
  func.func @_lenet_fused_kernel(%arg0: i32, %arg1: memref<5x1x224x96xbf16, #tpu.memory_space<vmem>>, %arg2: memref<5x96x168xbf16, #tpu.memory_space<vmem>>, %arg3: memref<1x168xf32, #tpu.memory_space<vmem>>, %arg4: memref<112x224xbf16, #tpu.memory_space<vmem>>, %arg5: memref<112x224xbf16, #tpu.memory_space<vmem>>, %arg6: memref<168x84xbf16, #tpu.memory_space<vmem>>, %arg7: memref<168x84xbf16, #tpu.memory_space<vmem>>, %arg8: memref<5x84x160xbf16, #tpu.memory_space<vmem>>, %arg9: memref<1x160xf32, #tpu.memory_space<vmem>>, %arg10: memref<40x80xbf16, #tpu.memory_space<vmem>>, %arg11: memref<40x80xbf16, #tpu.memory_space<vmem>>, %arg12: memref<160x80xbf16, #tpu.memory_space<vmem>>, %arg13: memref<160x80xbf16, #tpu.memory_space<vmem>>, %arg14: memref<5x80x120xbf16, #tpu.memory_space<vmem>>, %arg15: memref<1x120xf32, #tpu.memory_space<vmem>>, %arg16: memref<120x84xbf16, #tpu.memory_space<vmem>>, %arg17: memref<1x84xf32, #tpu.memory_space<vmem>>, %arg18: memref<84x128xbf16, #tpu.memory_space<vmem>>, %arg19: memref<1x128xf32, #tpu.memory_space<vmem>>, %arg20: memref<8x128xf32, #tpu.memory_space<vmem>>) attributes {dimension_semantics = [#tpu.dimension_semantics<parallel>], iteration_bounds = array<i64: 2>, scalar_prefetch = 0 : i64, scratch_operands = 0 : i64, tpu.core_type = #tpu.core_type<tc>, window_params = [{transform_indices = @transform_0, window_bounds = array<i64: 5, 1, 224, 96>}, {pipeline_mode = #tpu.pipeline_mode<synchronous>, transform_indices = @transform_1, window_bounds = array<i64: 5, 96, 168>}, {pipeline_mode = #tpu.pipeline_mode<synchronous>, transform_indices = @transform_2, window_bounds = array<i64: 1, 168>}, {pipeline_mode = #tpu.pipeline_mode<synchronous>, transform_indices = @transform_3, window_bounds = array<i64: 112, 224>}, {pipeline_mode = #tpu.pipeline_mode<synchronous>, transform_indices = @transform_4, window_bounds = array<i64: 112, 224>}, {pipeline_mode = #tpu.pipeline_mode<synchronous>, transform_indices = @transform_5, window_bounds = array<i64: 168, 84>}, {pipeline_mode = #tpu.pipeline_mode<synchronous>, transform_indices = @transform_6, window_bounds = array<i64: 168, 84>}, {pipeline_mode = #tpu.pipeline_mode<synchronous>, transform_indices = @transform_7, window_bounds = array<i64: 5, 84, 160>}, {pipeline_mode = #tpu.pipeline_mode<synchronous>, transform_indices = @transform_8, window_bounds = array<i64: 1, 160>}, {pipeline_mode = #tpu.pipeline_mode<synchronous>, transform_indices = @transform_9, window_bounds = array<i64: 40, 80>}, {pipeline_mode = #tpu.pipeline_mode<synchronous>, transform_indices = @transform_10, window_bounds = array<i64: 40, 80>}, {pipeline_mode = #tpu.pipeline_mode<synchronous>, transform_indices = @transform_11, window_bounds = array<i64: 160, 80>}, {pipeline_mode = #tpu.pipeline_mode<synchronous>, transform_indices = @transform_12, window_bounds = array<i64: 160, 80>}, {pipeline_mode = #tpu.pipeline_mode<synchronous>, transform_indices = @transform_13, window_bounds = array<i64: 5, 80, 120>}, {pipeline_mode = #tpu.pipeline_mode<synchronous>, transform_indices = @transform_14, window_bounds = array<i64: 1, 120>}, {pipeline_mode = #tpu.pipeline_mode<synchronous>, transform_indices = @transform_15, window_bounds = array<i64: 120, 84>}, {pipeline_mode = #tpu.pipeline_mode<synchronous>, transform_indices = @transform_16, window_bounds = array<i64: 1, 84>}, {pipeline_mode = #tpu.pipeline_mode<synchronous>, transform_indices = @transform_17, window_bounds = array<i64: 84, 128>}, {pipeline_mode = #tpu.pipeline_mode<synchronous>, transform_indices = @transform_18, window_bounds = array<i64: 1, 128>}, {transform_indices = @transform_19, window_bounds = array<i64: 8, 128>}]} {
    %c0 = arith.constant 0 : index
    %c0_0 = arith.constant 0 : index
    %c0_1 = arith.constant 0 : index
    %c0_2 = arith.constant 0 : index
    %0 = vector.load %arg1[%c0, %c0_0, %c0_1, %c0_2] : memref<5x1x224x96xbf16, #tpu.memory_space<vmem>>, vector<1x1x224x96xbf16>
    %1 = vector.shape_cast %0 : vector<1x1x224x96xbf16> to vector<224x96xbf16>
    %c0_3 = arith.constant 0 : index
    %c0_4 = arith.constant 0 : index
    %c0_5 = arith.constant 0 : index
    %2 = vector.load %arg2[%c0_3, %c0_4, %c0_5] : memref<5x96x168xbf16, #tpu.memory_space<vmem>>, vector<1x96x168xbf16>
    %3 = vector.shape_cast %2 : vector<1x96x168xbf16> to vector<96x168xbf16>
    %cst = arith.constant dense<0.000000e+00> : vector<224x168xf32>
    %4 = tpu.matmul %1, %3, %cst {dimension_numbers = #tpu.dot_dimension_numbers<[1], [0], [0], [1], [0, 0, 1, 1], [], []>} : vector<224x96xbf16>, vector<96x168xbf16>, vector<224x168xf32> -> vector<224x168xf32>
    %c1 = arith.constant 1 : index
    %c0_6 = arith.constant 0 : index
    %c0_7 = arith.constant 0 : index
    %c0_8 = arith.constant 0 : index
    %5 = vector.load %arg1[%c1, %c0_6, %c0_7, %c0_8] : memref<5x1x224x96xbf16, #tpu.memory_space<vmem>>, vector<1x1x224x96xbf16>
    %6 = vector.shape_cast %5 : vector<1x1x224x96xbf16> to vector<224x96xbf16>
    %c1_9 = arith.constant 1 : index
    %c0_10 = arith.constant 0 : index
    %c0_11 = arith.constant 0 : index
    %7 = vector.load %arg2[%c1_9, %c0_10, %c0_11] : memref<5x96x168xbf16, #tpu.memory_space<vmem>>, vector<1x96x168xbf16>
    %8 = vector.shape_cast %7 : vector<1x96x168xbf16> to vector<96x168xbf16>
    %cst_12 = arith.constant dense<0.000000e+00> : vector<224x168xf32>
    %9 = tpu.matmul %6, %8, %cst_12 {dimension_numbers = #tpu.dot_dimension_numbers<[1], [0], [0], [1], [0, 0, 1, 1], [], []>} : vector<224x96xbf16>, vector<96x168xbf16>, vector<224x168xf32> -> vector<224x168xf32>
    %10 = arith.addf %4, %9 : vector<224x168xf32>
    %c2 = arith.constant 2 : index
    %c0_13 = arith.constant 0 : index
    %c0_14 = arith.constant 0 : index
    %c0_15 = arith.constant 0 : index
    %11 = vector.load %arg1[%c2, %c0_13, %c0_14, %c0_15] : memref<5x1x224x96xbf16, #tpu.memory_space<vmem>>, vector<1x1x224x96xbf16>
    %12 = vector.shape_cast %11 : vector<1x1x224x96xbf16> to vector<224x96xbf16>
    %c2_16 = arith.constant 2 : index
    %c0_17 = arith.constant 0 : index
    %c0_18 = arith.constant 0 : index
    %13 = vector.load %arg2[%c2_16, %c0_17, %c0_18] : memref<5x96x168xbf16, #tpu.memory_space<vmem>>, vector<1x96x168xbf16>
    %14 = vector.shape_cast %13 : vector<1x96x168xbf16> to vector<96x168xbf16>
    %cst_19 = arith.constant dense<0.000000e+00> : vector<224x168xf32>
    %15 = tpu.matmul %12, %14, %cst_19 {dimension_numbers = #tpu.dot_dimension_numbers<[1], [0], [0], [1], [0, 0, 1, 1], [], []>} : vector<224x96xbf16>, vector<96x168xbf16>, vector<224x168xf32> -> vector<224x168xf32>
    %16 = arith.addf %10, %15 : vector<224x168xf32>
    %c3 = arith.constant 3 : index
    %c0_20 = arith.constant 0 : index
    %c0_21 = arith.constant 0 : index
    %c0_22 = arith.constant 0 : index
    %17 = vector.load %arg1[%c3, %c0_20, %c0_21, %c0_22] : memref<5x1x224x96xbf16, #tpu.memory_space<vmem>>, vector<1x1x224x96xbf16>
    %18 = vector.shape_cast %17 : vector<1x1x224x96xbf16> to vector<224x96xbf16>
    %c3_23 = arith.constant 3 : index
    %c0_24 = arith.constant 0 : index
    %c0_25 = arith.constant 0 : index
    %19 = vector.load %arg2[%c3_23, %c0_24, %c0_25] : memref<5x96x168xbf16, #tpu.memory_space<vmem>>, vector<1x96x168xbf16>
    %20 = vector.shape_cast %19 : vector<1x96x168xbf16> to vector<96x168xbf16>
    %cst_26 = arith.constant dense<0.000000e+00> : vector<224x168xf32>
    %21 = tpu.matmul %18, %20, %cst_26 {dimension_numbers = #tpu.dot_dimension_numbers<[1], [0], [0], [1], [0, 0, 1, 1], [], []>} : vector<224x96xbf16>, vector<96x168xbf16>, vector<224x168xf32> -> vector<224x168xf32>
    %22 = arith.addf %16, %21 : vector<224x168xf32>
    %c4 = arith.constant 4 : index
    %c0_27 = arith.constant 0 : index
    %c0_28 = arith.constant 0 : index
    %c0_29 = arith.constant 0 : index
    %23 = vector.load %arg1[%c4, %c0_27, %c0_28, %c0_29] : memref<5x1x224x96xbf16, #tpu.memory_space<vmem>>, vector<1x1x224x96xbf16>
    %24 = vector.shape_cast %23 : vector<1x1x224x96xbf16> to vector<224x96xbf16>
    %c4_30 = arith.constant 4 : index
    %c0_31 = arith.constant 0 : index
    %c0_32 = arith.constant 0 : index
    %25 = vector.load %arg2[%c4_30, %c0_31, %c0_32] : memref<5x96x168xbf16, #tpu.memory_space<vmem>>, vector<1x96x168xbf16>
    %26 = vector.shape_cast %25 : vector<1x96x168xbf16> to vector<96x168xbf16>
    %cst_33 = arith.constant dense<0.000000e+00> : vector<224x168xf32>
    %27 = tpu.matmul %24, %26, %cst_33 {dimension_numbers = #tpu.dot_dimension_numbers<[1], [0], [0], [1], [0, 0, 1, 1], [], []>} : vector<224x96xbf16>, vector<96x168xbf16>, vector<224x168xf32> -> vector<224x168xf32>
    %28 = arith.addf %22, %27 : vector<224x168xf32>
    %c0_34 = arith.constant 0 : index
    %c0_35 = arith.constant 0 : index
    %29 = vector.load %arg3[%c0_34, %c0_35] : memref<1x168xf32, #tpu.memory_space<vmem>>, vector<1x168xf32>
    %30 = vector.broadcast %29 : vector<1x168xf32> to vector<224x168xf32>
    %31 = arith.addf %28, %30 : vector<224x168xf32>
    %cst_36 = arith.constant 0.000000e+00 : f32
    %32 = vector.broadcast %cst_36 : f32 to vector<224x168xf32>
    %33 = arith.maximumf %31, %32 : vector<224x168xf32>
    %34 = arith.truncf %33 : vector<224x168xf32> to vector<224x168xbf16>
    %c0_37 = arith.constant 0 : index
    %c0_38 = arith.constant 0 : index
    %35 = vector.load %arg4[%c0_37, %c0_38] : memref<112x224xbf16, #tpu.memory_space<vmem>>, vector<112x224xbf16>
    %cst_39 = arith.constant dense<0.000000e+00> : vector<112x168xf32>
    %36 = tpu.matmul %35, %34, %cst_39 {dimension_numbers = #tpu.dot_dimension_numbers<[1], [0], [0], [1], [0, 0, 1, 1], [], []>} : vector<112x224xbf16>, vector<224x168xbf16>, vector<112x168xf32> -> vector<112x168xf32>
    %c0_40 = arith.constant 0 : index
    %c0_41 = arith.constant 0 : index
    %37 = vector.load %arg5[%c0_40, %c0_41] : memref<112x224xbf16, #tpu.memory_space<vmem>>, vector<112x224xbf16>
    %cst_42 = arith.constant dense<0.000000e+00> : vector<112x168xf32>
    %38 = tpu.matmul %37, %34, %cst_42 {dimension_numbers = #tpu.dot_dimension_numbers<[1], [0], [0], [1], [0, 0, 1, 1], [], []>} : vector<112x224xbf16>, vector<224x168xbf16>, vector<112x168xf32> -> vector<112x168xf32>
    %39 = arith.maximumf %36, %38 : vector<112x168xf32>
    %40 = arith.truncf %39 : vector<112x168xf32> to vector<112x168xbf16>
    %c0_43 = arith.constant 0 : index
    %c0_44 = arith.constant 0 : index
    %41 = vector.load %arg6[%c0_43, %c0_44] : memref<168x84xbf16, #tpu.memory_space<vmem>>, vector<168x84xbf16>
    %cst_45 = arith.constant dense<0.000000e+00> : vector<112x84xf32>
    %42 = tpu.matmul %40, %41, %cst_45 {dimension_numbers = #tpu.dot_dimension_numbers<[1], [0], [0], [1], [0, 0, 1, 1], [], []>} : vector<112x168xbf16>, vector<168x84xbf16>, vector<112x84xf32> -> vector<112x84xf32>
    %c0_46 = arith.constant 0 : index
    %c0_47 = arith.constant 0 : index
    %43 = vector.load %arg7[%c0_46, %c0_47] : memref<168x84xbf16, #tpu.memory_space<vmem>>, vector<168x84xbf16>
    %cst_48 = arith.constant dense<0.000000e+00> : vector<112x84xf32>
    %44 = tpu.matmul %40, %43, %cst_48 {dimension_numbers = #tpu.dot_dimension_numbers<[1], [0], [0], [1], [0, 0, 1, 1], [], []>} : vector<112x168xbf16>, vector<168x84xbf16>, vector<112x84xf32> -> vector<112x84xf32>
    %45 = arith.maximumf %42, %44 : vector<112x84xf32>
    %46 = arith.truncf %45 : vector<112x84xf32> to vector<112x84xbf16>
    %47 = vector.extract_strided_slice %46 {offsets = [0, 0], sizes = [80, 84], strides = [1, 1]} : vector<112x84xbf16> to vector<80x84xbf16>
    %c0_49 = arith.constant 0 : index
    %c0_50 = arith.constant 0 : index
    %c0_51 = arith.constant 0 : index
    %48 = vector.load %arg8[%c0_49, %c0_50, %c0_51] : memref<5x84x160xbf16, #tpu.memory_space<vmem>>, vector<1x84x160xbf16>
    %49 = vector.shape_cast %48 : vector<1x84x160xbf16> to vector<84x160xbf16>
    %cst_52 = arith.constant dense<0.000000e+00> : vector<80x160xf32>
    %50 = tpu.matmul %47, %49, %cst_52 {dimension_numbers = #tpu.dot_dimension_numbers<[1], [0], [0], [1], [0, 0, 1, 1], [], []>} : vector<80x84xbf16>, vector<84x160xbf16>, vector<80x160xf32> -> vector<80x160xf32>
    %51 = vector.extract_strided_slice %46 {offsets = [8, 0], sizes = [80, 84], strides = [1, 1]} : vector<112x84xbf16> to vector<80x84xbf16>
    %c1_53 = arith.constant 1 : index
    %c0_54 = arith.constant 0 : index
    %c0_55 = arith.constant 0 : index
    %52 = vector.load %arg8[%c1_53, %c0_54, %c0_55] : memref<5x84x160xbf16, #tpu.memory_space<vmem>>, vector<1x84x160xbf16>
    %53 = vector.shape_cast %52 : vector<1x84x160xbf16> to vector<84x160xbf16>
    %cst_56 = arith.constant dense<0.000000e+00> : vector<80x160xf32>
    %54 = tpu.matmul %51, %53, %cst_56 {dimension_numbers = #tpu.dot_dimension_numbers<[1], [0], [0], [1], [0, 0, 1, 1], [], []>} : vector<80x84xbf16>, vector<84x160xbf16>, vector<80x160xf32> -> vector<80x160xf32>
    %55 = arith.addf %50, %54 : vector<80x160xf32>
    %56 = vector.extract_strided_slice %46 {offsets = [16, 0], sizes = [80, 84], strides = [1, 1]} : vector<112x84xbf16> to vector<80x84xbf16>
    %c2_57 = arith.constant 2 : index
    %c0_58 = arith.constant 0 : index
    %c0_59 = arith.constant 0 : index
    %57 = vector.load %arg8[%c2_57, %c0_58, %c0_59] : memref<5x84x160xbf16, #tpu.memory_space<vmem>>, vector<1x84x160xbf16>
    %58 = vector.shape_cast %57 : vector<1x84x160xbf16> to vector<84x160xbf16>
    %cst_60 = arith.constant dense<0.000000e+00> : vector<80x160xf32>
    %59 = tpu.matmul %56, %58, %cst_60 {dimension_numbers = #tpu.dot_dimension_numbers<[1], [0], [0], [1], [0, 0, 1, 1], [], []>} : vector<80x84xbf16>, vector<84x160xbf16>, vector<80x160xf32> -> vector<80x160xf32>
    %60 = arith.addf %55, %59 : vector<80x160xf32>
    %61 = vector.extract_strided_slice %46 {offsets = [24, 0], sizes = [80, 84], strides = [1, 1]} : vector<112x84xbf16> to vector<80x84xbf16>
    %c3_61 = arith.constant 3 : index
    %c0_62 = arith.constant 0 : index
    %c0_63 = arith.constant 0 : index
    %62 = vector.load %arg8[%c3_61, %c0_62, %c0_63] : memref<5x84x160xbf16, #tpu.memory_space<vmem>>, vector<1x84x160xbf16>
    %63 = vector.shape_cast %62 : vector<1x84x160xbf16> to vector<84x160xbf16>
    %cst_64 = arith.constant dense<0.000000e+00> : vector<80x160xf32>
    %64 = tpu.matmul %61, %63, %cst_64 {dimension_numbers = #tpu.dot_dimension_numbers<[1], [0], [0], [1], [0, 0, 1, 1], [], []>} : vector<80x84xbf16>, vector<84x160xbf16>, vector<80x160xf32> -> vector<80x160xf32>
    %65 = arith.addf %60, %64 : vector<80x160xf32>
    %66 = vector.extract_strided_slice %46 {offsets = [32, 0], sizes = [80, 84], strides = [1, 1]} : vector<112x84xbf16> to vector<80x84xbf16>
    %c4_65 = arith.constant 4 : index
    %c0_66 = arith.constant 0 : index
    %c0_67 = arith.constant 0 : index
    %67 = vector.load %arg8[%c4_65, %c0_66, %c0_67] : memref<5x84x160xbf16, #tpu.memory_space<vmem>>, vector<1x84x160xbf16>
    %68 = vector.shape_cast %67 : vector<1x84x160xbf16> to vector<84x160xbf16>
    %cst_68 = arith.constant dense<0.000000e+00> : vector<80x160xf32>
    %69 = tpu.matmul %66, %68, %cst_68 {dimension_numbers = #tpu.dot_dimension_numbers<[1], [0], [0], [1], [0, 0, 1, 1], [], []>} : vector<80x84xbf16>, vector<84x160xbf16>, vector<80x160xf32> -> vector<80x160xf32>
    %70 = arith.addf %65, %69 : vector<80x160xf32>
    %c0_69 = arith.constant 0 : index
    %c0_70 = arith.constant 0 : index
    %71 = vector.load %arg9[%c0_69, %c0_70] : memref<1x160xf32, #tpu.memory_space<vmem>>, vector<1x160xf32>
    %72 = vector.broadcast %71 : vector<1x160xf32> to vector<80x160xf32>
    %73 = arith.addf %70, %72 : vector<80x160xf32>
    %cst_71 = arith.constant 0.000000e+00 : f32
    %74 = vector.broadcast %cst_71 : f32 to vector<80x160xf32>
    %75 = arith.maximumf %73, %74 : vector<80x160xf32>
    %76 = arith.truncf %75 : vector<80x160xf32> to vector<80x160xbf16>
    %c0_72 = arith.constant 0 : index
    %c0_73 = arith.constant 0 : index
    %77 = vector.load %arg10[%c0_72, %c0_73] : memref<40x80xbf16, #tpu.memory_space<vmem>>, vector<40x80xbf16>
    %cst_74 = arith.constant dense<0.000000e+00> : vector<40x160xf32>
    %78 = tpu.matmul %77, %76, %cst_74 {dimension_numbers = #tpu.dot_dimension_numbers<[1], [0], [0], [1], [0, 0, 1, 1], [], []>} : vector<40x80xbf16>, vector<80x160xbf16>, vector<40x160xf32> -> vector<40x160xf32>
    %c0_75 = arith.constant 0 : index
    %c0_76 = arith.constant 0 : index
    %79 = vector.load %arg11[%c0_75, %c0_76] : memref<40x80xbf16, #tpu.memory_space<vmem>>, vector<40x80xbf16>
    %cst_77 = arith.constant dense<0.000000e+00> : vector<40x160xf32>
    %80 = tpu.matmul %79, %76, %cst_77 {dimension_numbers = #tpu.dot_dimension_numbers<[1], [0], [0], [1], [0, 0, 1, 1], [], []>} : vector<40x80xbf16>, vector<80x160xbf16>, vector<40x160xf32> -> vector<40x160xf32>
    %81 = arith.maximumf %78, %80 : vector<40x160xf32>
    %82 = arith.truncf %81 : vector<40x160xf32> to vector<40x160xbf16>
    %c0_78 = arith.constant 0 : index
    %c0_79 = arith.constant 0 : index
    %83 = vector.load %arg12[%c0_78, %c0_79] : memref<160x80xbf16, #tpu.memory_space<vmem>>, vector<160x80xbf16>
    %cst_80 = arith.constant dense<0.000000e+00> : vector<40x80xf32>
    %84 = tpu.matmul %82, %83, %cst_80 {dimension_numbers = #tpu.dot_dimension_numbers<[1], [0], [0], [1], [0, 0, 1, 1], [], []>} : vector<40x160xbf16>, vector<160x80xbf16>, vector<40x80xf32> -> vector<40x80xf32>
    %c0_81 = arith.constant 0 : index
    %c0_82 = arith.constant 0 : index
    %85 = vector.load %arg13[%c0_81, %c0_82] : memref<160x80xbf16, #tpu.memory_space<vmem>>, vector<160x80xbf16>
    %cst_83 = arith.constant dense<0.000000e+00> : vector<40x80xf32>
    %86 = tpu.matmul %82, %85, %cst_83 {dimension_numbers = #tpu.dot_dimension_numbers<[1], [0], [0], [1], [0, 0, 1, 1], [], []>} : vector<40x160xbf16>, vector<160x80xbf16>, vector<40x80xf32> -> vector<40x80xf32>
    %87 = arith.maximumf %84, %86 : vector<40x80xf32>
    %88 = arith.truncf %87 : vector<40x80xf32> to vector<40x80xbf16>
    %89 = vector.extract_strided_slice %88 {offsets = [0, 0], sizes = [8, 80], strides = [1, 1]} : vector<40x80xbf16> to vector<8x80xbf16>
    %c0_84 = arith.constant 0 : index
    %c0_85 = arith.constant 0 : index
    %c0_86 = arith.constant 0 : index
    %90 = vector.load %arg14[%c0_84, %c0_85, %c0_86] : memref<5x80x120xbf16, #tpu.memory_space<vmem>>, vector<1x80x120xbf16>
    %91 = vector.shape_cast %90 : vector<1x80x120xbf16> to vector<80x120xbf16>
    %cst_87 = arith.constant dense<0.000000e+00> : vector<8x120xf32>
    %92 = tpu.matmul %89, %91, %cst_87 {dimension_numbers = #tpu.dot_dimension_numbers<[1], [0], [0], [1], [0, 0, 1, 1], [], []>} : vector<8x80xbf16>, vector<80x120xbf16>, vector<8x120xf32> -> vector<8x120xf32>
    %93 = vector.extract_strided_slice %88 {offsets = [8, 0], sizes = [8, 80], strides = [1, 1]} : vector<40x80xbf16> to vector<8x80xbf16>
    %c1_88 = arith.constant 1 : index
    %c0_89 = arith.constant 0 : index
    %c0_90 = arith.constant 0 : index
    %94 = vector.load %arg14[%c1_88, %c0_89, %c0_90] : memref<5x80x120xbf16, #tpu.memory_space<vmem>>, vector<1x80x120xbf16>
    %95 = vector.shape_cast %94 : vector<1x80x120xbf16> to vector<80x120xbf16>
    %cst_91 = arith.constant dense<0.000000e+00> : vector<8x120xf32>
    %96 = tpu.matmul %93, %95, %cst_91 {dimension_numbers = #tpu.dot_dimension_numbers<[1], [0], [0], [1], [0, 0, 1, 1], [], []>} : vector<8x80xbf16>, vector<80x120xbf16>, vector<8x120xf32> -> vector<8x120xf32>
    %97 = arith.addf %92, %96 : vector<8x120xf32>
    %98 = vector.extract_strided_slice %88 {offsets = [16, 0], sizes = [8, 80], strides = [1, 1]} : vector<40x80xbf16> to vector<8x80xbf16>
    %c2_92 = arith.constant 2 : index
    %c0_93 = arith.constant 0 : index
    %c0_94 = arith.constant 0 : index
    %99 = vector.load %arg14[%c2_92, %c0_93, %c0_94] : memref<5x80x120xbf16, #tpu.memory_space<vmem>>, vector<1x80x120xbf16>
    %100 = vector.shape_cast %99 : vector<1x80x120xbf16> to vector<80x120xbf16>
    %cst_95 = arith.constant dense<0.000000e+00> : vector<8x120xf32>
    %101 = tpu.matmul %98, %100, %cst_95 {dimension_numbers = #tpu.dot_dimension_numbers<[1], [0], [0], [1], [0, 0, 1, 1], [], []>} : vector<8x80xbf16>, vector<80x120xbf16>, vector<8x120xf32> -> vector<8x120xf32>
    %102 = arith.addf %97, %101 : vector<8x120xf32>
    %103 = vector.extract_strided_slice %88 {offsets = [24, 0], sizes = [8, 80], strides = [1, 1]} : vector<40x80xbf16> to vector<8x80xbf16>
    %c3_96 = arith.constant 3 : index
    %c0_97 = arith.constant 0 : index
    %c0_98 = arith.constant 0 : index
    %104 = vector.load %arg14[%c3_96, %c0_97, %c0_98] : memref<5x80x120xbf16, #tpu.memory_space<vmem>>, vector<1x80x120xbf16>
    %105 = vector.shape_cast %104 : vector<1x80x120xbf16> to vector<80x120xbf16>
    %cst_99 = arith.constant dense<0.000000e+00> : vector<8x120xf32>
    %106 = tpu.matmul %103, %105, %cst_99 {dimension_numbers = #tpu.dot_dimension_numbers<[1], [0], [0], [1], [0, 0, 1, 1], [], []>} : vector<8x80xbf16>, vector<80x120xbf16>, vector<8x120xf32> -> vector<8x120xf32>
    %107 = arith.addf %102, %106 : vector<8x120xf32>
    %108 = vector.extract_strided_slice %88 {offsets = [32, 0], sizes = [8, 80], strides = [1, 1]} : vector<40x80xbf16> to vector<8x80xbf16>
    %c4_100 = arith.constant 4 : index
    %c0_101 = arith.constant 0 : index
    %c0_102 = arith.constant 0 : index
    %109 = vector.load %arg14[%c4_100, %c0_101, %c0_102] : memref<5x80x120xbf16, #tpu.memory_space<vmem>>, vector<1x80x120xbf16>
    %110 = vector.shape_cast %109 : vector<1x80x120xbf16> to vector<80x120xbf16>
    %cst_103 = arith.constant dense<0.000000e+00> : vector<8x120xf32>
    %111 = tpu.matmul %108, %110, %cst_103 {dimension_numbers = #tpu.dot_dimension_numbers<[1], [0], [0], [1], [0, 0, 1, 1], [], []>} : vector<8x80xbf16>, vector<80x120xbf16>, vector<8x120xf32> -> vector<8x120xf32>
    %112 = arith.addf %107, %111 : vector<8x120xf32>
    %c0_104 = arith.constant 0 : index
    %c0_105 = arith.constant 0 : index
    %113 = vector.load %arg15[%c0_104, %c0_105] : memref<1x120xf32, #tpu.memory_space<vmem>>, vector<1x120xf32>
    %114 = vector.broadcast %113 : vector<1x120xf32> to vector<8x120xf32>
    %115 = arith.addf %112, %114 : vector<8x120xf32>
    %cst_106 = arith.constant 0.000000e+00 : f32
    %116 = vector.broadcast %cst_106 : f32 to vector<8x120xf32>
    %117 = arith.maximumf %115, %116 : vector<8x120xf32>
    %118 = arith.truncf %117 : vector<8x120xf32> to vector<8x120xbf16>
    %c0_107 = arith.constant 0 : index
    %c0_108 = arith.constant 0 : index
    %119 = vector.load %arg16[%c0_107, %c0_108] : memref<120x84xbf16, #tpu.memory_space<vmem>>, vector<120x84xbf16>
    %cst_109 = arith.constant dense<0.000000e+00> : vector<8x84xf32>
    %120 = tpu.matmul %118, %119, %cst_109 {dimension_numbers = #tpu.dot_dimension_numbers<[1], [0], [0], [1], [0, 0, 1, 1], [], []>} : vector<8x120xbf16>, vector<120x84xbf16>, vector<8x84xf32> -> vector<8x84xf32>
    %c0_110 = arith.constant 0 : index
    %c0_111 = arith.constant 0 : index
    %121 = vector.load %arg17[%c0_110, %c0_111] : memref<1x84xf32, #tpu.memory_space<vmem>>, vector<1x84xf32>
    %122 = vector.broadcast %121 : vector<1x84xf32> to vector<8x84xf32>
    %123 = arith.addf %120, %122 : vector<8x84xf32>
    %cst_112 = arith.constant 0.000000e+00 : f32
    %124 = vector.broadcast %cst_112 : f32 to vector<8x84xf32>
    %125 = arith.maximumf %123, %124 : vector<8x84xf32>
    %126 = arith.truncf %125 : vector<8x84xf32> to vector<8x84xbf16>
    %c0_113 = arith.constant 0 : index
    %c0_114 = arith.constant 0 : index
    %127 = vector.load %arg18[%c0_113, %c0_114] : memref<84x128xbf16, #tpu.memory_space<vmem>>, vector<84x128xbf16>
    %cst_115 = arith.constant dense<0.000000e+00> : vector<8x128xf32>
    %128 = tpu.matmul %126, %127, %cst_115 {dimension_numbers = #tpu.dot_dimension_numbers<[1], [0], [0], [1], [0, 0, 1, 1], [], []>} : vector<8x84xbf16>, vector<84x128xbf16>, vector<8x128xf32> -> vector<8x128xf32>
    %c0_116 = arith.constant 0 : index
    %c0_117 = arith.constant 0 : index
    %129 = vector.load %arg19[%c0_116, %c0_117] : memref<1x128xf32, #tpu.memory_space<vmem>>, vector<1x128xf32>
    %130 = vector.broadcast %129 : vector<1x128xf32> to vector<8x128xf32>
    %131 = arith.addf %128, %130 : vector<8x128xf32>
    %c0_118 = arith.constant 0 : index
    %c0_119 = arith.constant 0 : index
    %132 = vector.load %arg20[%c0_118, %c0_119] : memref<8x128xf32, #tpu.memory_space<vmem>>, vector<8x128xf32>
    tpu.vector_store %arg20[%c0_118, %c0_119], %131 {strides = array<i32>} : memref<8x128xf32, #tpu.memory_space<vmem>>, vector<8x128xf32>,
    return
  }
  func.func @transform_0(%arg0: i32) -> (i32, i32, i32, i32) {
    %c0_i32 = arith.constant 0 : i32
    %c0_i32_0 = arith.constant 0 : i32
    %c0_i32_1 = arith.constant 0 : i32
    %c0_i32_2 = arith.constant 0 : i32
    return %c0_i32, %arg0, %c0_i32_0, %c0_i32_1 : i32, i32, i32, i32
  }
  func.func @transform_1(%arg0: i32) -> (i32, i32, i32) {
    %c0_i32 = arith.constant 0 : i32
    %c0_i32_0 = arith.constant 0 : i32
    %c0_i32_1 = arith.constant 0 : i32
    %c0_i32_2 = arith.constant 0 : i32
    return %c0_i32, %c0_i32_0, %c0_i32_1 : i32, i32, i32
  }
  func.func @transform_2(%arg0: i32) -> (i32, i32) {
    %c0_i32 = arith.constant 0 : i32
    %c0_i32_0 = arith.constant 0 : i32
    %c0_i32_1 = arith.constant 0 : i32
    return %c0_i32, %c0_i32_0 : i32, i32
  }
  func.func @transform_3(%arg0: i32) -> (i32, i32) {
    %c0_i32 = arith.constant 0 : i32
    %c0_i32_0 = arith.constant 0 : i32
    %c0_i32_1 = arith.constant 0 : i32
    return %c0_i32, %c0_i32_0 : i32, i32
  }
  func.func @transform_4(%arg0: i32) -> (i32, i32) {
    %c0_i32 = arith.constant 0 : i32
    %c0_i32_0 = arith.constant 0 : i32
    %c0_i32_1 = arith.constant 0 : i32
    return %c0_i32, %c0_i32_0 : i32, i32
  }
  func.func @transform_5(%arg0: i32) -> (i32, i32) {
    %c0_i32 = arith.constant 0 : i32
    %c0_i32_0 = arith.constant 0 : i32
    %c0_i32_1 = arith.constant 0 : i32
    return %c0_i32, %c0_i32_0 : i32, i32
  }
  func.func @transform_6(%arg0: i32) -> (i32, i32) {
    %c0_i32 = arith.constant 0 : i32
    %c0_i32_0 = arith.constant 0 : i32
    %c0_i32_1 = arith.constant 0 : i32
    return %c0_i32, %c0_i32_0 : i32, i32
  }
  func.func @transform_7(%arg0: i32) -> (i32, i32, i32) {
    %c0_i32 = arith.constant 0 : i32
    %c0_i32_0 = arith.constant 0 : i32
    %c0_i32_1 = arith.constant 0 : i32
    %c0_i32_2 = arith.constant 0 : i32
    return %c0_i32, %c0_i32_0, %c0_i32_1 : i32, i32, i32
  }
  func.func @transform_8(%arg0: i32) -> (i32, i32) {
    %c0_i32 = arith.constant 0 : i32
    %c0_i32_0 = arith.constant 0 : i32
    %c0_i32_1 = arith.constant 0 : i32
    return %c0_i32, %c0_i32_0 : i32, i32
  }
  func.func @transform_9(%arg0: i32) -> (i32, i32) {
    %c0_i32 = arith.constant 0 : i32
    %c0_i32_0 = arith.constant 0 : i32
    %c0_i32_1 = arith.constant 0 : i32
    return %c0_i32, %c0_i32_0 : i32, i32
  }
  func.func @transform_10(%arg0: i32) -> (i32, i32) {
    %c0_i32 = arith.constant 0 : i32
    %c0_i32_0 = arith.constant 0 : i32
    %c0_i32_1 = arith.constant 0 : i32
    return %c0_i32, %c0_i32_0 : i32, i32
  }
  func.func @transform_11(%arg0: i32) -> (i32, i32) {
    %c0_i32 = arith.constant 0 : i32
    %c0_i32_0 = arith.constant 0 : i32
    %c0_i32_1 = arith.constant 0 : i32
    return %c0_i32, %c0_i32_0 : i32, i32
  }
  func.func @transform_12(%arg0: i32) -> (i32, i32) {
    %c0_i32 = arith.constant 0 : i32
    %c0_i32_0 = arith.constant 0 : i32
    %c0_i32_1 = arith.constant 0 : i32
    return %c0_i32, %c0_i32_0 : i32, i32
  }
  func.func @transform_13(%arg0: i32) -> (i32, i32, i32) {
    %c0_i32 = arith.constant 0 : i32
    %c0_i32_0 = arith.constant 0 : i32
    %c0_i32_1 = arith.constant 0 : i32
    %c0_i32_2 = arith.constant 0 : i32
    return %c0_i32, %c0_i32_0, %c0_i32_1 : i32, i32, i32
  }
  func.func @transform_14(%arg0: i32) -> (i32, i32) {
    %c0_i32 = arith.constant 0 : i32
    %c0_i32_0 = arith.constant 0 : i32
    %c0_i32_1 = arith.constant 0 : i32
    return %c0_i32, %c0_i32_0 : i32, i32
  }
  func.func @transform_15(%arg0: i32) -> (i32, i32) {
    %c0_i32 = arith.constant 0 : i32
    %c0_i32_0 = arith.constant 0 : i32
    %c0_i32_1 = arith.constant 0 : i32
    return %c0_i32, %c0_i32_0 : i32, i32
  }
  func.func @transform_16(%arg0: i32) -> (i32, i32) {
    %c0_i32 = arith.constant 0 : i32
    %c0_i32_0 = arith.constant 0 : i32
    %c0_i32_1 = arith.constant 0 : i32
    return %c0_i32, %c0_i32_0 : i32, i32
  }
  func.func @transform_17(%arg0: i32) -> (i32, i32) {
    %c0_i32 = arith.constant 0 : i32
    %c0_i32_0 = arith.constant 0 : i32
    %c0_i32_1 = arith.constant 0 : i32
    return %c0_i32, %c0_i32_0 : i32, i32
  }
  func.func @transform_18(%arg0: i32) -> (i32, i32) {
    %c0_i32 = arith.constant 0 : i32
    %c0_i32_0 = arith.constant 0 : i32
    %c0_i32_1 = arith.constant 0 : i32
    return %c0_i32, %c0_i32_0 : i32, i32
  }
  func.func @transform_19(%arg0: i32) -> (i32, i32) {
    %c0_i32 = arith.constant 0 : i32
    %c0_i32_0 = arith.constant 0 : i32
    return %arg0, %c0_i32 : i32, i32
  }
}

</mosaic_0001>

<bundles_post_ra>
// kernel: _lambda_.1
= control target key start
LH: loop header
LB: loop body
LE: loop exit
PB: predicated region body
PF: predicated region fallthrough
CT: control target
= control target key end

     0   :  { %s9978_s0 = inlined_call_operand.vmem [shape: bf16[5,2,224,96], index: 0, kind: input, shape index: {}]   ;;  %s9979_s1 = inlined_call_operand.vmem [shape: bf16[5,96,168], index: 1, kind: input, shape index: {}]   ;;  %s9980_s2 = inlined_call_operand.vmem [shape: f32[1,168], index: 2, kind: input, shape index: {}]   ;;  %s9981_s3 = inlined_call_operand.vmem [shape: bf16[112,224], index: 3, kind: input, shape index: {}]   ;;  %s9982_s4 = inlined_call_operand.vmem [shape: bf16[112,224], index: 4, kind: input, shape index: {}]   ;;  %s9983_s5 = inlined_call_operand.vmem [shape: bf16[168,84], index: 5, kind: input, shape index: {}]   ;;  %s9984_s6 = inlined_call_operand.vmem [shape: bf16[168,84], index: 6, kind: input, shape index: {}]   ;;  %s9985_s7 = inlined_call_operand.vmem [shape: bf16[5,84,160], index: 7, kind: input, shape index: {}]   ;;  %s9986_s8 = inlined_call_operand.vmem [shape: f32[1,160], index: 8, kind: input, shape index: {}]   ;;  %s9987_s9 = inlined_call_operand.vmem [shape: bf16[40,80], index: 9, kind: input, shape index: {}]   ;;  %s9988_s10 = inlined_call_operand.vmem [shape: bf16[40,80], index: 10, kind: input, shape index: {}]   ;;  %s9989_s11 = inlined_call_operand.vmem [shape: bf16[160,80], index: 11, kind: input, shape index: {}]   ;;  %s9990_s12 = inlined_call_operand.vmem [shape: bf16[160,80], index: 12, kind: input, shape index: {}]   ;;  %s9991_s13 = inlined_call_operand.vmem [shape: bf16[5,80,120], index: 13, kind: input, shape index: {}]   ;;  %s9992_s14 = inlined_call_operand.vmem [shape: f32[1,120], index: 14, kind: input, shape index: {}]   ;;  %s9993_s15 = inlined_call_operand.vmem [shape: bf16[120,84], index: 15, kind: input, shape index: {}]   ;;  %s9994_s16 = inlined_call_operand.vmem [shape: f32[1,84], index: 16, kind: input, shape index: {}]   ;;  %s9995_s17 = inlined_call_operand.vmem [shape: bf16[84,128], index: 17, kind: input, shape index: {}]   ;;  %s9996_s18 = inlined_call_operand.vmem [shape: f32[1,128], index: 18, kind: input, shape index: {}]   ;;  %s9997_s19 = inlined_call_operand.hbm [shape: f32[16,128], index: 19, kind: output, shape index: {}]  }
   0x1   :  { %10007 = sst [smem:[#allocation12_spill]] %s9978_s0 }
   0x2   :  { %10008 = sst [smem:[#allocation13_spill]] %s9979_s1 }
   0x3   :  { %10009 = sst [smem:[#allocation14_spill]] %s9980_s2 }
   0x4   :  { %10010 = sst [smem:[#allocation15_spill]] %s9981_s3 }
   0x5   :  { %24 = vsyncpa [#allocation4], 0 }
   0x6   :  { %26 = vsyncpa [#allocation4 + $0x1], 0  ;;  %s8221_s0 = smov 0   ;;  %s8223_s30 = smov 0  }
   0x7   :  { %s8225_s20 = smov 0   ;;  %s8227_s21 = smov 0  }
   0x8 LB: > { %10011 = sst [smem:[#allocation6_spill]] %s8103_s0  ;;  %s10000_s1 = sadd.s32 4294967295, %s8115_s21   ;;  %s8115_s21 = sphi %s8227_s21, %s10026_s21   ;;  %s8111_s20 = sphi %s8225_s20, %s10029_s20   ;;  %s8107_s30 = sphi %s8223_s30, %s10028_s30   ;;  %s8103_s0 = sphi %s8221_s0, %s10027_s0  }
   0x9   : > { %10012 = sst [smem:[#allocation7_spill]] %s8107_s30  ;;  %s6469_s22 = sadd.s32 4294967294, %s8115_s21  }
   0xa   : > { %10013 = sst [smem:[#allocation8_spill]] %s8111_s20  ;;  %s8244_s2 = sadd.s32 1, %s8115_s21  }
   0xb   : > { %10014 = sst [smem:[#allocation9_spill]] %s8244_s2  ;;  %s39_s23 = sadd.s32 1, %s8111_s20 }
   0xc   : > { %s36_s24 = ssub.s32 %s8115_s21, %s8244_s2  ;;  %p46_p0 = scmp.ne.s32.totalorder %s8111_s20, %s8107_s30 }
   0xd   : > { %p37_p1 = scmp.eq.s32.totalorder %s36_s24, 0  ;;  %p47_p2 = scmp.eq.s32.totalorder %s8115_s21, 0 }
   0xe   : > { %p454_p3 = scmp.eq.s32.totalorder %s10000_s1, 1  ;;  %p459_p4 = scmp.ne.s32.totalorder %s8107_s30, %s8103_s0 }
   0xf   : > { %s8257_s25 = scalar_select %p37_p1, %s8111_s20, %s39_s23  }
  0x10   : > { %p48_p5 = por %p47_p2, %p46_p0  ;;  %p8259_p6 = por %p454_p3, %p46_p0 }
  0x11   : > { %10015 = sst [smem:[#allocation10_spill]] %s8257_s25  ;;  %p460_p7 = scmp.eq.s32.totalorder %s6469_s22, 1 }
  0x12   : > { %p6471_p9 = scmp.ge.s32.totalorder %s8115_s21, 2 }
  0x13   : > { %p8263_p8 = por %p460_p7, %p459_p4 }
  0x14   : > { %530 = sbr.rel (%p6471_p9) target bundleno = 71 (0x47), region = 88 }
  0x15   : > { %s10017_s26 = scalar_select %p8263_p8, 1, 0 }
  0x17   : > { %10018 = sst [smem:[#allocation11_spill]] %s10017_s26 }
  0x1b   : > { %533 = sbr.rel (!%p48_p5) target bundleno = 71 (0x47), region = 92  ;;  %s535_s27 = sand.u32 (%p48_p5), 1, %s8111_s20  }
  0x1c   : > { %s7635_s28 = smul.u32 (%p48_p5), 112, %s8115_s21  ;;  %s10019_s1 = sld [smem:[#allocation12_spill]] (%p48_p5) }
  0x1d   : > { %s7634_s29 = smul.u32 (%p48_p5), 560, %s535_s27 }
  0x1f   : > { %s8280_s22 = scalar_lea.vmem (%p48_p5), [#allocation2], %s7634_s29 }
  0x22   : > { %s8275_s25 = scalar_lea.vmem %s10019_s1, %s7635_s28 }
  0x23   : > { %v556_v0 = vld [vmem:[%s8275_s25] sm:$0xff]   ;;  %v560_v1 = vld [vmem:[%s8275_s25 + $0x8] sm:$0xff]   ;;  %v564_v2 = vld [vmem:[%s8275_s25 + $0x10] sm:$0xff]  }
  0x24   : > { %557 = vst [vmem:[%s8280_s22] sm:$0xff] %v556_v0   ;;  %561 = vst [vmem:[%s8280_s22 + $0x8] sm:$0xff] %v560_v1   ;;  %v568_v3 = vld [vmem:[%s8275_s25 + $0x18] sm:$0xff]   ;;  %v572_v4 = vld [vmem:[%s8275_s25 + $0x20] sm:$0xff]  }
  0x25   : > { %565 = vst [vmem:[%s8280_s22 + $0x10] sm:$0xff] %v564_v2   ;;  %v576_v5 = vld [vmem:[%s8275_s25 + $0x28] sm:$0xff]   ;;  %569 = vst [vmem:[%s8280_s22 + $0x18] sm:$0xff] %v568_v3   ;;  %v580_v6 = vld [vmem:[%s8275_s25 + $0x30] sm:$0xff]  }
  0x26   : > { %573 = vst [vmem:[%s8280_s22 + $0x20] sm:$0xff] %v572_v4   ;;  %577 = vst [vmem:[%s8280_s22 + $0x28] sm:$0xff] %v576_v5   ;;  %v584_v7 = vld [vmem:[%s8275_s25 + $0x38] sm:$0xff]   ;;  %v588_v8 = vld [vmem:[%s8275_s25 + $0x40] sm:$0xff]  }
  0x27   : > { %581 = vst [vmem:[%s8280_s22 + $0x30] sm:$0xff] %v580_v6   ;;  %585 = vst [vmem:[%s8280_s22 + $0x38] sm:$0xff] %v584_v7   ;;  %v592_v9 = vld [vmem:[%s8275_s25 + $0x48] sm:$0xff]   ;;  %v596_v10 = vld [vmem:[%s8275_s25 + $0x50] sm:$0xff]  }
  0x28   : > { %589 = vst [vmem:[%s8280_s22 + $0x40] sm:$0xff] %v588_v8   ;;  %v600_v11 = vld [vmem:[%s8275_s25 + $0x58] sm:$0xff]   ;;  %593 = vst [vmem:[%s8280_s22 + $0x48] sm:$0xff] %v592_v9   ;;  %v604_v12 = vld [vmem:[%s8275_s25 + $0x60] sm:$0xff]  }
  0x29   : > { %597 = vst [vmem:[%s8280_s22 + $0x50] sm:$0xff] %v596_v10   ;;  %601 = vst [vmem:[%s8280_s22 + $0x58] sm:$0xff] %v600_v11   ;;  %v608_v13 = vld [vmem:[%s8275_s25 + $0x68] sm:$0xff]   ;;  %v612_v14 = vld [vmem:[%s8275_s25 + $0xe0] sm:$0xff]  }
  0x2a   : > { %605 = vst [vmem:[%s8280_s22 + $0x60] sm:$0xff] %v604_v12   ;;  %609 = vst [vmem:[%s8280_s22 + $0x68] sm:$0xff] %v608_v13   ;;  %v616_v15 = vld [vmem:[%s8275_s25 + $0xe8] sm:$0xff]   ;;  %v620_v16 = vld [vmem:[%s8275_s25 + $0xf0] sm:$0xff]  }
  0x2b   : > { %613 = vst [vmem:[%s8280_s22 + $0x70] sm:$0xff] %v612_v14   ;;  %v624_v17 = vld [vmem:[%s8275_s25 + $0xf8] sm:$0xff]   ;;  %617 = vst [vmem:[%s8280_s22 + $0x78] sm:$0xff] %v616_v15   ;;  %v628_v18 = vld [vmem:[%s8275_s25 + $0x100] sm:$0xff]  }
  0x2c   : > { %621 = vst [vmem:[%s8280_s22 + $0x80] sm:$0xff] %v620_v16   ;;  %625 = vst [vmem:[%s8280_s22 + $0x88] sm:$0xff] %v624_v17   ;;  %v632_v19 = vld [vmem:[%s8275_s25 + $0x108] sm:$0xff]   ;;  %v636_v20 = vld [vmem:[%s8275_s25 + $0x110] sm:$0xff]  }
  0x2d   : > { %629 = vst [vmem:[%s8280_s22 + $0x90] sm:$0xff] %v628_v18   ;;  %633 = vst [vmem:[%s8280_s22 + $0x98] sm:$0xff] %v632_v19   ;;  %v640_v21 = vld [vmem:[%s8275_s25 + $0x118] sm:$0xff]   ;;  %v644_v22 = vld [vmem:[%s8275_s25 + $0x120] sm:$0xff]  }
  0x2e   : > { %637 = vst [vmem:[%s8280_s22 + $0xa0] sm:$0xff] %v636_v20   ;;  %v648_v23 = vld [vmem:[%s8275_s25 + $0x128] sm:$0xff]   ;;  %641 = vst [vmem:[%s8280_s22 + $0xa8] sm:$0xff] %v640_v21   ;;  %v652_v24 = vld [vmem:[%s8275_s25 + $0x130] sm:$0xff]  }
  0x2f   : > { %645 = vst [vmem:[%s8280_s22 + $0xb0] sm:$0xff] %v644_v22   ;;  %649 = vst [vmem:[%s8280_s22 + $0xb8] sm:$0xff] %v648_v23   ;;  %v656_v25 = vld [vmem:[%s8275_s25 + $0x138] sm:$0xff]   ;;  %v660_v26 = vld [vmem:[%s8275_s25 + $0x140] sm:$0xff]  }
  0x30   : > { %653 = vst [vmem:[%s8280_s22 + $0xc0] sm:$0xff] %v652_v24   ;;  %657 = vst [vmem:[%s8280_s22 + $0xc8] sm:$0xff] %v656_v25   ;;  %v664_v27 = vld [vmem:[%s8275_s25 + $0x148] sm:$0xff]   ;;  %v668_v28 = vld [vmem:[%s8275_s25 + $0x1c0] sm:$0xff]  }
  0x31   : > { %661 = vst [vmem:[%s8280_s22 + $0xd0] sm:$0xff] %v660_v26   ;;  %v672_v29 = vld [vmem:[%s8275_s25 + $0x1c8] sm:$0xff]   ;;  %665 = vst [vmem:[%s8280_s22 + $0xd8] sm:$0xff] %v664_v27   ;;  %v676_v30 = vld [vmem:[%s8275_s25 + $0x1d0] sm:$0xff]  }
  0x32   : > { %669 = vst [vmem:[%s8280_s22 + $0xe0] sm:$0xff] %v668_v28   ;;  %673 = vst [vmem:[%s8280_s22 + $0xe8] sm:$0xff] %v672_v29   ;;  %v680_v31 = vld [vmem:[%s8275_s25 + $0x1d8] sm:$0xff]   ;;  %v684_v32 = vld [vmem:[%s8275_s25 + $0x1e0] sm:$0xff]  }
  0x33   : > { %677 = vst [vmem:[%s8280_s22 + $0xf0] sm:$0xff] %v676_v30   ;;  %681 = vst [vmem:[%s8280_s22 + $0xf8] sm:$0xff] %v680_v31   ;;  %v688_v33 = vld [vmem:[%s8275_s25 + $0x1e8] sm:$0xff]   ;;  %v692_v34 = vld [vmem:[%s8275_s25 + $0x1f0] sm:$0xff]  }
  0x34   : > { %685 = vst [vmem:[%s8280_s22 + $0x100] sm:$0xff] %v684_v32   ;;  %v696_v35 = vld [vmem:[%s8275_s25 + $0x1f8] sm:$0xff]   ;;  %689 = vst [vmem:[%s8280_s22 + $0x108] sm:$0xff] %v688_v33   ;;  %v700_v36 = vld [vmem:[%s8275_s25 + $0x200] sm:$0xff]  }
  0x35   : > { %693 = vst [vmem:[%s8280_s22 + $0x110] sm:$0xff] %v692_v34   ;;  %697 = vst [vmem:[%s8280_s22 + $0x118] sm:$0xff] %v696_v35   ;;  %v704_v37 = vld [vmem:[%s8275_s25 + $0x208] sm:$0xff]   ;;  %v708_v38 = vld [vmem:[%s8275_s25 + $0x210] sm:$0xff]  }
  0x36   : > { %701 = vst [vmem:[%s8280_s22 + $0x120] sm:$0xff] %v700_v36   ;;  %705 = vst [vmem:[%s8280_s22 + $0x128] sm:$0xff] %v704_v37   ;;  %v712_v39 = vld [vmem:[%s8275_s25 + $0x218] sm:$0xff]   ;;  %v716_v40 = vld [vmem:[%s8275_s25 + $0x220] sm:$0xff]  }
  0x37   : > { %709 = vst [vmem:[%s8280_s22 + $0x130] sm:$0xff] %v708_v38   ;;  %v720_v41 = vld [vmem:[%s8275_s25 + $0x228] sm:$0xff]   ;;  %713 = vst [vmem:[%s8280_s22 + $0x138] sm:$0xff] %v712_v39   ;;  %v724_v42 = vld [vmem:[%s8275_s25 + $0x2a0] sm:$0xff]  }
  0x38   : > { %717 = vst [vmem:[%s8280_s22 + $0x140] sm:$0xff] %v716_v40   ;;  %721 = vst [vmem:[%s8280_s22 + $0x148] sm:$0xff] %v720_v41   ;;  %v728_v43 = vld [vmem:[%s8275_s25 + $0x2a8] sm:$0xff]   ;;  %v732_v44 = vld [vmem:[%s8275_s25 + $0x2b0] sm:$0xff]  }
  0x39   : > { %725 = vst [vmem:[%s8280_s22 + $0x150] sm:$0xff] %v724_v42   ;;  %729 = vst [vmem:[%s8280_s22 + $0x158] sm:$0xff] %v728_v43   ;;  %v736_v45 = vld [vmem:[%s8275_s25 + $0x2b8] sm:$0xff]   ;;  %v740_v46 = vld [vmem:[%s8275_s25 + $0x2c0] sm:$0xff]  }
  0x3a   : > { %733 = vst [vmem:[%s8280_s22 + $0x160] sm:$0xff] %v732_v44   ;;  %v744_v47 = vld [vmem:[%s8275_s25 + $0x2c8] sm:$0xff]   ;;  %737 = vst [vmem:[%s8280_s22 + $0x168] sm:$0xff] %v736_v45   ;;  %v748_v48 = vld [vmem:[%s8275_s25 + $0x2d0] sm:$0xff]  }
  0x3b   : > { %741 = vst [vmem:[%s8280_s22 + $0x170] sm:$0xff] %v740_v46   ;;  %745 = vst [vmem:[%s8280_s22 + $0x178] sm:$0xff] %v744_v47   ;;  %v752_v49 = vld [vmem:[%s8275_s25 + $0x2d8] sm:$0xff]   ;;  %v756_v50 = vld [vmem:[%s8275_s25 + $0x2e0] sm:$0xff]  }
  0x3c   : > { %749 = vst [vmem:[%s8280_s22 + $0x180] sm:$0xff] %v748_v48   ;;  %753 = vst [vmem:[%s8280_s22 + $0x188] sm:$0xff] %v752_v49   ;;  %v760_v51 = vld [vmem:[%s8275_s25 + $0x2e8] sm:$0xff]   ;;  %v764_v52 = vld [vmem:[%s8275_s25 + $0x2f0] sm:$0xff]  }
  0x3d   : > { %757 = vst [vmem:[%s8280_s22 + $0x190] sm:$0xff] %v756_v50   ;;  %v768_v53 = vld [vmem:[%s8275_s25 + $0x2f8] sm:$0xff]   ;;  %761 = vst [vmem:[%s8280_s22 + $0x198] sm:$0xff] %v760_v51   ;;  %v772_v54 = vld [vmem:[%s8275_s25 + $0x300] sm:$0xff]  }
  0x3e   : > { %765 = vst [vmem:[%s8280_s22 + $0x1a0] sm:$0xff] %v764_v52   ;;  %769 = vst [vmem:[%s8280_s22 + $0x1a8] sm:$0xff] %v768_v53   ;;  %v776_v55 = vld [vmem:[%s8275_s25 + $0x308] sm:$0xff]   ;;  %v780_v56 = vld [vmem:[%s8275_s25 + $0x380] sm:$0xff]  }
  0x3f   : > { %773 = vst [vmem:[%s8280_s22 + $0x1b0] sm:$0xff] %v772_v54   ;;  %777 = vst [vmem:[%s8280_s22 + $0x1b8] sm:$0xff] %v776_v55   ;;  %v784_v57 = vld [vmem:[%s8275_s25 + $0x388] sm:$0xff]   ;;  %v788_v58 = vld [vmem:[%s8275_s25 + $0x390] sm:$0xff]  }
  0x40   : > { %781 = vst [vmem:[%s8280_s22 + $0x1c0] sm:$0xff] %v780_v56   ;;  %v792_v59 = vld [vmem:[%s8275_s25 + $0x398] sm:$0xff]   ;;  %785 = vst [vmem:[%s8280_s22 + $0x1c8] sm:$0xff] %v784_v57   ;;  %v796_v60 = vld [vmem:[%s8275_s25 + $0x3a0] sm:$0xff]  }
  0x41   : > { %789 = vst [vmem:[%s8280_s22 + $0x1d0] sm:$0xff] %v788_v58   ;;  %793 = vst [vmem:[%s8280_s22 + $0x1d8] sm:$0xff] %v792_v59   ;;  %v800_v61 = vld [vmem:[%s8275_s25 + $0x3a8] sm:$0xff]   ;;  %v804_v62 = vld [vmem:[%s8275_s25 + $0x3b0] sm:$0xff]  }
  0x42   : > { %797 = vst [vmem:[%s8280_s22 + $0x1e0] sm:$0xff] %v796_v60   ;;  %801 = vst [vmem:[%s8280_s22 + $0x1e8] sm:$0xff] %v800_v61   ;;  %v808_v63 = vld [vmem:[%s8275_s25 + $0x3b8] sm:$0xff]   ;;  %v812_v0 = vld [vmem:[%s8275_s25 + $0x3c0] sm:$0xff]  }
  0x43   : > { %805 = vst [vmem:[%s8280_s22 + $0x1f0] sm:$0xff] %v804_v62   ;;  %v816_v1 = vld [vmem:[%s8275_s25 + $0x3c8] sm:$0xff]   ;;  %809 = vst [vmem:[%s8280_s22 + $0x1f8] sm:$0xff] %v808_v63   ;;  %v820_v2 = vld [vmem:[%s8275_s25 + $0x3d0] sm:$0xff]  }
  0x44   : > { %813 = vst [vmem:[%s8280_s22 + $0x200] sm:$0xff] %v812_v0   ;;  %817 = vst [vmem:[%s8280_s22 + $0x208] sm:$0xff] %v816_v1   ;;  %v824_v3 = vld [vmem:[%s8275_s25 + $0x3d8] sm:$0xff]   ;;  %v828_v4 = vld [vmem:[%s8275_s25 + $0x3e0] sm:$0xff]  }
  0x45   : > { %821 = vst [vmem:[%s8280_s22 + $0x210] sm:$0xff] %v820_v2   ;;  %825 = vst [vmem:[%s8280_s22 + $0x218] sm:$0xff] %v824_v3   ;;  %v832_v5 = vld [vmem:[%s8275_s25 + $0x3e8] sm:$0xff]  }
  0x46   : > { %829 = vst [vmem:[%s8280_s22 + $0x220] sm:$0xff] %v828_v4   ;;  %833 = vst [vmem:[%s8280_s22 + $0x228] sm:$0xff] %v832_v5  }
  0x47 PF: > { %p6473_p10 = scmp.ge.s32.totalorder %s8115_s21, 1  ;;  %p1137_p11 = scmp.lt.s32.totalorder %s8115_s21, 3 }
  0x49   : > { %p1138_p12 = pnand %p6473_p10, %p1137_p11 }
  0x4a   : > { %s10020_s28 = sld [smem:[#allocation13_spill]] (!%p1138_p12)  ;;  %s8425_s29 = sand.u32 (!%p1138_p12), 1, %s8107_s30   ;;  %v8117_v8 = vmov (!%p1138_p12), 0   ;;  %vm1412_vm0 = vcmask (!%p1138_p12), 785408   ;;  %vm4004_vm1 = vcmask (!%p1138_p12), 1043456   ;;  %vm3982_vm2 = vcmask (!%p1138_p12), 326656  }
  0x4b   : > { %1141 = sbr.rel (%p1138_p12) target bundleno = 3032 (0xbd8), region = 133  ;;  %1487 = vmatprep.mubr.bf16.mxu0 (!%p1138_p12), %v8117_v8  ;;  %s10022_s1 = sld [smem:[#allocation14_spill]] (!%p1138_p12)  ;;  %vm4406_vm3 = vcmask (!%p1138_p12), 1041408   ;;  %vm4390_vm4 = vcmask (!%p1138_p12), 687104   ;;  %vm5275_vm5 = vcmask (!%p1138_p12), 654336   ;;  %vm5530_vm6 = vcmask (!%p1138_p12), 261120  }
  0x4c   : > { %s7636_s27 = smul.u32 (!%p1138_p12), 560, %s8425_s29  ;;  %vm8119_vm7 = vmmov (!%p1138_p12), 0   ;;  %vm6243_vm8 = vcmask (!%p1138_p12), 982016   ;;  %s6474_s24 = sshll.u32 (!%p1138_p12), %s8425_s29, 3 }
  0x4d   : > { %s10023_s25 = sadd.s32 (!%p1138_p12), 4294967295, %s8115_s21   ;;  %s6391_s0 = scalar_lea.sflag (!%p1138_p12), [#allocation4], %s8425_s29 }
  0x4e   : > { %s8447_s22 = scalar_lea.vmem (!%p1138_p12), [#allocation2], %s7636_s27  ;;  %s10021_s27 = sld [smem:[#allocation15_spill]] (!%p1138_p12) }
  0x4f   : > { %v7697_v20 = vld [vmem:[%s8447_s22 + $0x70] sm:$0xff] (!%p1138_p12)   ;;  %v7701_v25 = vld [vmem:[%s8447_s22 + $0x78] sm:$0xff] (!%p1138_p12)   ;;  %v7702_v29 = vld [vmem:[%s8447_s22 + $0x80] sm:$0xff] (!%p1138_p12)   ;;  %s7175_s20 = sshll.u32 (!%p1138_p12), %s10023_s25, 7 }
  0x50   : > { %v7679_v6 = vld [vmem:[%s10020_s28 + $0x64] ss:$8 sps:$4 sm:$0xff] (!%p1138_p12)   ;;  %v7681_v7 = vld [vmem:[%s10020_s28 + $0x60] ss:$8 sps:$4 sm:$0xff] (!%p1138_p12)   ;;  %v7682_v9 = vld [vmem:[%s10020_s28 + $0x74] ss:$8 sps:$4 sm:$0xff] (!%p1138_p12)   ;;  %s9934_s23 = scalar_lea.hbm (!%p1138_p12), %s9997_s19, %s7175_s20 }
  0x51   : > { %1455 = vmatprep.subr.bf16.mxu0 (!%p1138_p12), %v7679_v6  ;;  %v7684_v10 = vld [vmem:[%s10020_s28 + $0x70] ss:$8 sps:$4 sm:$0xff] (!%p1138_p12)   ;;  %v7685_v11 = vld [vmem:[%s10020_s28 + $0x84] ss:$8 sps:$4 sm:$0xff] (!%p1138_p12)   ;;  %v7687_v12 = vld [vmem:[%s10020_s28 + $0x80] ss:$8 sps:$4 sm:$0xff] (!%p1138_p12)  }
  0x52   : > { %1456 = vmatpush1.bf16.msra.mxu0 %v7681_v7  ;;  %v7688_v13 = vld [vmem:[%s10020_s28 + $0x94] ss:$8 sps:$4 sm:$0xff]   ;;  %v7690_v14 = vld [vmem:[%s10020_s28 + $0x90] ss:$8 sps:$4 sm:$0xff]   ;;  %v7691_v15 = vld [vmem:[%s10020_s28 + $0xa4] ss:$8 sps:$4 sm:$0xff]  }
  0x53   : > { %1457 = vmatprep.subr.bf16.mxu0 %v7682_v9  ;;  %v7693_v16 = vld [vmem:[%s10020_s28 + $0xa0] ss:$8 sps:$4 sm:$0xff]   ;;  %v7694_v17 = vld [vmem:[%s10020_s28 + $0xb4] ss:$8 sps:$4 sm:$0xff]   ;;  %v7696_v18 = vld [vmem:[%s10020_s28 + $0xb0] ss:$8 sps:$4 sm:$0xff]  }
  0x54   : > { %v7700_v19 = vld [vmem:[%s10020_s28 + $0x4] ss:$8 sps:$4 sm:$0xff]   ;;  %v7698_v21 = vld [vmem:[%s10020_s28] ss:$8 sps:$4 sm:$0xff]   ;;  %v7705_v22 = vld [vmem:[%s10020_s28 + $0x14] ss:$8 sps:$4 sm:$0xff]  }
  0x55   : > { %v7703_v23 = vld [vmem:[%s10020_s28 + $0x10] ss:$8 sps:$4 sm:$0xff]   ;;  %v7711_v24 = vld [vmem:[%s10020_s28 + $0x24] ss:$8 sps:$4 sm:$0xff]   ;;  %v7709_v26 = vld [vmem:[%s10020_s28 + $0x20] ss:$8 sps:$4 sm:$0xff]  }
  0x56   : > { %1458 = vmatpush1.bf16.msra.mxu0 %v7684_v10  ;;  %v7716_v27 = vld [vmem:[%s10020_s28 + $0x34] ss:$8 sps:$4 sm:$0xff]   ;;  %v7714_v28 = vld [vmem:[%s10020_s28 + $0x30] ss:$8 sps:$4 sm:$0xff]   ;;  %v7721_v30 = vld [vmem:[%s10020_s28 + $0x44] ss:$8 sps:$4 sm:$0xff]  }
  0x57   : > { %1459 = vmatprep.subr.bf16.mxu0 %v7685_v11  ;;  %v7719_v31 = vld [vmem:[%s10020_s28 + $0x40] ss:$8 sps:$4 sm:$0xff]   ;;  %v7727_v32 = vld [vmem:[%s10020_s28 + $0x54] ss:$8 sps:$4 sm:$0xff]   ;;  %v7725_v33 = vld [vmem:[%s10020_s28 + $0x50] ss:$8 sps:$4 sm:$0xff]  }
  0x58   : > { %v7732_v34 = vld [vmem:[%s10020_s28 + $0xc4] ss:$8 sps:$4 sm:$0xff]   ;;  %v7730_v47 = vld [vmem:[%s10020_s28 + $0xc0] ss:$8 sps:$4 sm:$0xff]   ;;  %v7737_v48 = vld [vmem:[%s10020_s28 + $0xd4] ss:$8 sps:$4 sm:$0xff]  }
  0x59   : > { %v7706_v35 = vld [vmem:[%s8447_s22 + $0x88] sm:$0xff]   ;;  %v7707_v36 = vld [vmem:[%s8447_s22 + $0x90] sm:$0xff]   ;;  %v7708_v37 = vld [vmem:[%s8447_s22 + $0x98] sm:$0xff]  }
  0x5a   : > { %1460 = vmatpush1.bf16.msra.mxu0 %v7687_v12  ;;  %v7712_v38 = vld [vmem:[%s8447_s22 + $0xa0] sm:$0xff]   ;;  %v7713_v39 = vld [vmem:[%s8447_s22 + $0xa8] sm:$0xff]   ;;  %v7717_v40 = vld [vmem:[%s8447_s22 + $0xb0] sm:$0xff]  }
  0x5b   : > { %1461 = vmatprep.subr.bf16.mxu0 %v7688_v13  ;;  %v7718_v41 = vld [vmem:[%s8447_s22 + $0xb8] sm:$0xff]   ;;  %v7722_v42 = vld [vmem:[%s8447_s22 + $0xc0] sm:$0xff]   ;;  %v7723_v43 = vld [vmem:[%s8447_s22 + $0xc8] sm:$0xff]  }
  0x5c   : > { %v7724_v44 = vld [vmem:[%s8447_s22 + $0xd0] sm:$0xff]   ;;  %v7728_v45 = vld [vmem:[%s8447_s22 + $0xd8] sm:$0xff]   ;;  %v7729_v46 = vld [vmem:[%s8447_s22] sm:$0xff]  }
  0x5d   : > { %v7735_v49 = vld [vmem:[%s10020_s28 + $0xd0] ss:$8 sps:$4 sm:$0xff]   ;;  %v7743_v50 = vld [vmem:[%s10020_s28 + $0xe4] ss:$8 sps:$4 sm:$0xff]   ;;  %v7741_v52 = vld [vmem:[%s10020_s28 + $0xe0] ss:$8 sps:$4 sm:$0xff]  }
  0x5e   : > { %1462 = vmatpush1.bf16.msra.mxu0 %v7690_v14  ;;  %v7733_v51 = vld [vmem:[%s8447_s22 + $0x8] sm:$0xff]   ;;  %v7734_v56 = vld [vmem:[%s8447_s22 + $0x10] sm:$0xff]   ;;  %v7738_v61 = vld [vmem:[%s8447_s22 + $0x18] sm:$0xff]  }
  0x5f   : > { %1463 = vmatprep.subr.bf16.mxu0 %v7691_v15  ;;  %v7748_v53 = vld [vmem:[%s10020_s28 + $0xf4] ss:$8 sps:$4 sm:$0xff]   ;;  %v7746_v54 = vld [vmem:[%s10020_s28 + $0xf0] ss:$8 sps:$4 sm:$0xff]   ;;  %v7753_v55 = vld [vmem:[%s10020_s28 + $0x104] ss:$8 sps:$4 sm:$0xff]  }
  0x60   : > { %v7751_v57 = vld [vmem:[%s10020_s28 + $0x100] ss:$8 sps:$4 sm:$0xff]   ;;  %v7759_v58 = vld [vmem:[%s10020_s28 + $0x114] ss:$8 sps:$4 sm:$0xff]   ;;  %v7757_v59 = vld [vmem:[%s10020_s28 + $0x110] ss:$8 sps:$4 sm:$0xff]  }
  0x61   : > { %v7764_v60 = vld [vmem:[%s10020_s28 + $0x124] ss:$8 sps:$4 sm:$0xff]   ;;  %v7762_v10 = vld [vmem:[%s10020_s28 + $0x120] ss:$8 sps:$4 sm:$0xff]   ;;  %v7769_v11 = vld [vmem:[%s10020_s28 + $0x134] ss:$8 sps:$4 sm:$0xff]  }
  0x62   : > { %1464 = vmatpush1.bf16.msra.mxu0 %v7693_v16  ;;  %v7739_v62 = vld [vmem:[%s8447_s22 + $0x20] sm:$0xff]   ;;  %v7740_v63 = vld [vmem:[%s8447_s22 + $0x28] sm:$0xff]   ;;  %v7744_v0 = vld [vmem:[%s8447_s22 + $0x30] sm:$0xff]  }
  0x63   : > { %1465 = vmatprep.subr.bf16.mxu0 %v7694_v17  ;;  %v7745_v1 = vld [vmem:[%s8447_s22 + $0x38] sm:$0xff]   ;;  %v7749_v2 = vld [vmem:[%s8447_s22 + $0x40] sm:$0xff]   ;;  %v7750_v3 = vld [vmem:[%s8447_s22 + $0x48] sm:$0xff]  }
  0x64   : > { %v7754_v4 = vld [vmem:[%s8447_s22 + $0x50] sm:$0xff]   ;;  %v7755_v5 = vld [vmem:[%s8447_s22 + $0x58] sm:$0xff]   ;;  %v7756_v6 = vld [vmem:[%s8447_s22 + $0x60] sm:$0xff]  }
  0x65   : > { %v7760_v7 = vld [vmem:[%s8447_s22 + $0x68] sm:$0xff]   ;;  %v7761_v9 = vld [vmem:[%s8447_s22 + $0xe0] sm:$0xff]  }
  0x66   : > { %1466 = vmatpush1.bf16.msra.mxu0 %v7696_v18  ;;  %v7767_v12 = vld [vmem:[%s10020_s28 + $0x130] ss:$8 sps:$4 sm:$0xff]   ;;  %v7775_v13 = vld [vmem:[%s10020_s28 + $0x144] ss:$8 sps:$4 sm:$0xff]   ;;  %v7773_v15 = vld [vmem:[%s10020_s28 + $0x140] ss:$8 sps:$4 sm:$0xff]  }
  0x67   : > { %1800 = vmatprep.subr.bf16.mxu0 %v7700_v19  ;;  %v7765_v14 = vld [vmem:[%s8447_s22 + $0xe8] sm:$0xff]   ;;  %v7766_v19 = vld [vmem:[%s8447_s22 + $0xf0] sm:$0xff]  }
  0x68   : > { %v7780_v16 = vld [vmem:[%s10020_s28 + $0x154] ss:$8 sps:$4 sm:$0xff]   ;;  %v7778_v17 = vld [vmem:[%s10020_s28 + $0x150] ss:$8 sps:$4 sm:$0xff]   ;;  %v7785_v18 = vld [vmem:[%s10020_s28 + $0x164] ss:$8 sps:$4 sm:$0xff]  }
  0x69   : > { %6541 = vmatmul.mubr.msk.bf16.vlgmr.msra.gmra.mrb[0].mxu0 %vm1412_vm0, %v7697_v20  ;;  %v7783_v20 = vld [vmem:[%s10020_s28 + $0x160] ss:$8 sps:$4 sm:$0xff]  }
  0x6a   : > { %1801 = vmatpush1.bf16.msra.mxu0 %v7698_v21  ;;  %1497 = vmatprep.mubr.bf16.mxu0 %v8117_v8  ;;  %v7791_v21 = vld [vmem:[%s10020_s28 + $0x174] ss:$8 sps:$4 sm:$0xff]  }
  0x6b   : > { %1802 = vmatprep.subr.bf16.mxu0 %v7705_v22  ;;  %v7789_v22 = vld [vmem:[%s10020_s28 + $0x170] ss:$8 sps:$4 sm:$0xff]  }
  0x6e   : > { %1803 = vmatpush1.bf16.msra.mxu0 %v7703_v23  ;;  %v7796_v23 = vld [vmem:[%s10020_s28 + $0x184] ss:$8 sps:$4 sm:$0xff]  }
  0x6f   : > { %1804 = vmatprep.subr.bf16.mxu0 %v7711_v24  ;;  %v7770_v24 = vld [vmem:[%s8447_s22 + $0xf8] sm:$0xff]  }
  0x71   : > { %6542 = vmatmul.mubr.msk.bf16.gmra.mrb[4].mxu0 %vm1412_vm0, %v7701_v25  ;;  %v7771_v25 = vld [vmem:[%s8447_s22 + $0x100] sm:$0xff]  }
  0x72   : > { %1507 = vmatprep.mubr.bf16.mxu0 %v8117_v8  ;;  %1805 = vmatpush1.bf16.msra.mxu0 %v7709_v26  ;;  %v7772_v26 = vld [vmem:[%s8447_s22 + $0x108] sm:$0xff]  }
  0x73   : > { %1806 = vmatprep.subr.bf16.mxu0 %v7716_v27  ;;  %v7776_v27 = vld [vmem:[%s8447_s22 + $0x110] sm:$0xff]  }
  0x76   : > { %1807 = vmatpush1.bf16.msra.mxu0 %v7714_v28  ;;  %v7777_v28 = vld [vmem:[%s8447_s22 + $0x118] sm:$0xff]  }
  0x77   : > { %1808 = vmatprep.subr.bf16.mxu0 %v7721_v30  ;;  %v7782_v30 = vld [vmem:[%s8447_s22 + $0x128] sm:$0xff]  }
  0x79   : > { %6543 = vmatmul.mubr.msk.bf16.gmra.mrb[8].mxu0 %vm1412_vm0, %v7702_v29  ;;  %v7781_v29 = vld [vmem:[%s8447_s22 + $0x120] sm:$0xff]  }
  0x7a   : > { %1517 = vmatprep.mubr.bf16.mxu0 %v8117_v8  ;;  %1809 = vmatpush1.bf16.msra.mxu0 %v7719_v31  ;;  %v7786_v31 = vld [vmem:[%s8447_s22 + $0x130] sm:$0xff]  }
  0x7b   : > { %1810 = vmatprep.subr.bf16.mxu0 %v7727_v32  ;;  %v7787_v32 = vld [vmem:[%s8447_s22 + $0x138] sm:$0xff]  }
  0x7e   : > { %1811 = vmatpush1.bf16.msra.mxu0 %v7725_v33  ;;  %v7788_v33 = vld [vmem:[%s8447_s22 + $0x140] sm:$0xff]  }
  0x7f   : > { %2187 = vmatprep.subr.bf16.mxu0 %v7732_v34  ;;  %v7792_v34 = vld [vmem:[%s8447_s22 + $0x148] sm:$0xff]  }
  0x81   : > { %6544 = vmatmul.mubr.msk.bf16.gmra.mrb[12].mxu0 %vm1412_vm0, %v7706_v35  ;;  %v7793_v35 = vld [vmem:[%s8447_s22 + $0x150] sm:$0xff]  }
  0x82   : > { %1527 = vmatprep.mubr.bf16.mxu0 %v8117_v8 }
  0x89   : > { %6545 = vmatmul.mubr.msk.bf16.gmra.mrb[16].mxu0 %vm1412_vm0, %v7707_v36  ;;  %v7794_v36 = vld [vmem:[%s10020_s28 + $0x180] ss:$8 sps:$4 sm:$0xff]  }
  0x8a   : > { %1537 = vmatprep.mubr.bf16.mxu0 %v8117_v8 }
  0x91   : > { %6546 = vmatmul.mubr.msk.bf16.gmra.mrb[20].mxu0 %vm1412_vm0, %v7708_v37  ;;  %v7801_v37 = vld [vmem:[%s10020_s28 + $0x194] ss:$8 sps:$4 sm:$0xff]  }
  0x92   : > { %1547 = vmatprep.mubr.bf16.mxu0 %v8117_v8 }
  0x99   : > { %6547 = vmatmul.mubr.msk.bf16.gmra.mrb[24].mxu0 %vm1412_vm0, %v7712_v38  ;;  %v7799_v38 = vld [vmem:[%s10020_s28 + $0x190] ss:$8 sps:$4 sm:$0xff]  }
  0x9a   : > { %1557 = vmatprep.mubr.bf16.mxu0 %v8117_v8 }
  0xa1   : > { %6548 = vmatmul.mubr.msk.bf16.gmra.mrb[28].mxu0 %vm1412_vm0, %v7713_v39  ;;  %v7807_v39 = vld [vmem:[%s10020_s28 + $0x1a4] ss:$8 sps:$4 sm:$0xff]  }
  0xa2   : > { %1567 = vmatprep.mubr.bf16.mxu0 %v8117_v8 }
  0xa9   : > { %6549 = vmatmul.mubr.msk.bf16.gmra.mrb[32].mxu0 %vm1412_vm0, %v7717_v40  ;;  %v7797_v40 = vld [vmem:[%s8447_s22 + $0x158] sm:$0xff]  }
  0xaa   : > { %1577 = vmatprep.mubr.bf16.mxu0 %v8117_v8 }
  0xb1   : > { %6550 = vmatmul.mubr.msk.bf16.gmra.mrb[36].mxu0 %vm1412_vm0, %v7718_v41  ;;  %v7805_v41 = vld [vmem:[%s10020_s28 + $0x1a0] ss:$8 sps:$4 sm:$0xff]  }
  0xb2   : > { %1587 = vmatprep.mubr.bf16.mxu0 %v8117_v8 }
  0xb9   : > { %6551 = vmatmul.mubr.msk.bf16.gmra.mrb[40].mxu0 %vm1412_vm0, %v7722_v42  ;;  %v7812_v42 = vld [vmem:[%s10020_s28 + $0x1b4] ss:$8 sps:$4 sm:$0xff]  }
  0xba   : > { %1597 = vmatprep.mubr.bf16.mxu0 %v8117_v8 }
  0xc1   : > { %6552 = vmatmul.mubr.msk.bf16.gmra.mrb[44].mxu0 %vm1412_vm0, %v7723_v43  ;;  %v7810_v43 = vld [vmem:[%s10020_s28 + $0x1b0] ss:$8 sps:$4 sm:$0xff]  }
  0xc2   : > { %1607 = vmatprep.mubr.bf16.mxu0 %v8117_v8 }
  0xc9   : > { %6553 = vmatmul.mubr.msk.bf16.gmra.mrb[48].mxu0 %vm1412_vm0, %v7724_v44  ;;  %v7817_v44 = vld [vmem:[%s10020_s28 + $0x1c4] ss:$8 sps:$4 sm:$0xff]  }
  0xca   : > { %1617 = vmatprep.mubr.bf16.mxu0 %v8117_v8 }
  0xd1   : > { %6554 = vmatmul.mubr.msk.bf16.gmra.mrb[52].mxu0 %vm1412_vm0, %v7728_v45  ;;  %v7798_v45 = vld [vmem:[%s8447_s22 + $0x160] sm:$0xff]  }
  0xd2   : > { %1832 = vmatprep.mubr.bf16.mxu0 %v8117_v8 }
  0xd9   : > { %6581 = vmatmul.mubr.msk.bf16.vlgmr.msra.gmra.mrb[0].mxu0 %vm1412_vm0, %v7729_v46  ;;  %v7815_v46 = vld [vmem:[%s10020_s28 + $0x1c0] ss:$8 sps:$4 sm:$0xff]  }
  0xda   : > { %2188 = vmatpush1.bf16.msra.mxu0 %v7730_v47  ;;  %1842 = vmatprep.mubr.bf16.mxu0 %v8117_v8  ;;  %v7823_v47 = vld [vmem:[%s10020_s28 + $0x1d4] ss:$8 sps:$4 sm:$0xff]  }
  0xdb   : > { %2189 = vmatprep.subr.bf16.mxu0 %v7737_v48  ;;  %v7821_v48 = vld [vmem:[%s10020_s28 + $0x1d0] ss:$8 sps:$4 sm:$0xff]  }
  0xde   : > { %2190 = vmatpush1.bf16.msra.mxu0 %v7735_v49  ;;  %v7802_v49 = vld [vmem:[%s8447_s22 + $0x168] sm:$0xff]  }
  0xdf   : > { %2191 = vmatprep.subr.bf16.mxu0 %v7743_v50  ;;  %v7803_v50 = vld [vmem:[%s8447_s22 + $0x170] sm:$0xff]  }
  0xe1   : > { %6582 = vmatmul.mubr.msk.bf16.gmra.mrb[4].mxu0 %vm1412_vm0, %v7733_v51  ;;  %v7804_v51 = vld [vmem:[%s8447_s22 + $0x178] sm:$0xff]  }
  0xe2   : > { %1852 = vmatprep.mubr.bf16.mxu0 %v8117_v8  ;;  %2192 = vmatpush1.bf16.msra.mxu0 %v7741_v52  ;;  %v7808_v52 = vld [vmem:[%s8447_s22 + $0x180] sm:$0xff]  }
  0xe3   : > { %2193 = vmatprep.subr.bf16.mxu0 %v7748_v53  ;;  %v7809_v53 = vld [vmem:[%s8447_s22 + $0x188] sm:$0xff]  }
  0xe6   : > { %2194 = vmatpush1.bf16.msra.mxu0 %v7746_v54  ;;  %v7813_v54 = vld [vmem:[%s8447_s22 + $0x190] sm:$0xff]  }
  0xe7   : > { %2195 = vmatprep.subr.bf16.mxu0 %v7753_v55  ;;  %v7814_v55 = vld [vmem:[%s8447_s22 + $0x198] sm:$0xff]  }
  0xe9   : > { %6583 = vmatmul.mubr.msk.bf16.gmra.mrb[8].mxu0 %vm1412_vm0, %v7734_v56  ;;  %v7818_v56 = vld [vmem:[%s8447_s22 + $0x1a0] sm:$0xff]  }
  0xea   : > { %1862 = vmatprep.mubr.bf16.mxu0 %v8117_v8  ;;  %2196 = vmatpush1.bf16.msra.mxu0 %v7751_v57  ;;  %v7819_v57 = vld [vmem:[%s8447_s22 + $0x1a8] sm:$0xff]  }
  0xeb   : > { %2197 = vmatprep.subr.bf16.mxu0 %v7759_v58  ;;  %v7820_v58 = vld [vmem:[%s8447_s22 + $0x1b0] sm:$0xff]  }
  0xee   : > { %2198 = vmatpush1.bf16.msra.mxu0 %v7757_v59  ;;  %v7824_v59 = vld [vmem:[%s8447_s22 + $0x1b8] sm:$0xff]  }
  0xef   : > { %2630 = vmatprep.subr.bf16.mxu0 %v7764_v60  ;;  %v7825_v60 = vld [vmem:[%s8447_s22 + $0x1c0] sm:$0xff]  }
  0xf1   : > { %6584 = vmatmul.mubr.msk.bf16.gmra.mrb[12].mxu0 %vm1412_vm0, %v7738_v61  ;;  %v7826_v61 = vld [vmem:[%s8447_s22 + $0x1c8] sm:$0xff]  }
  0xf2   : > { %1872 = vmatprep.mubr.bf16.mxu0 %v8117_v8 }
  0xf9   : > { %6585 = vmatmul.mubr.msk.bf16.gmra.mrb[16].mxu0 %vm1412_vm0, %v7739_v62  ;;  %v7827_v62 = vld [vmem:[%s8447_s22 + $0x1d0] sm:$0xff]  }
  0xfa   : > { %1882 = vmatprep.mubr.bf16.mxu0 %v8117_v8 }
 0x101   : > { %6586 = vmatmul.mubr.msk.bf16.gmra.mrb[20].mxu0 %vm1412_vm0, %v7740_v63  ;;  %v7828_v63 = vld [vmem:[%s8447_s22 + $0x1d8] sm:$0xff]  }
 0x102   : > { %1892 = vmatprep.mubr.bf16.mxu0 %v8117_v8 }
 0x109   : > { %6587 = vmatmul.mubr.msk.bf16.gmra.mrb[24].mxu0 %vm1412_vm0, %v7744_v0  ;;  %v7829_v0 = vld [vmem:[%s8447_s22 + $0x1e0] sm:$0xff]  }
 0x10a   : > { %1902 = vmatprep.mubr.bf16.mxu0 %v8117_v8 }
 0x111   : > { %6588 = vmatmul.mubr.msk.bf16.gmra.mrb[28].mxu0 %vm1412_vm0, %v7745_v1  ;;  %v7830_v1 = vld [vmem:[%s8447_s22 + $0x1e8] sm:$0xff]  }
 0x112   : > { %1912 = vmatprep.mubr.bf16.mxu0 %v8117_v8 }
 0x119   : > { %6589 = vmatmul.mubr.msk.bf16.gmra.mrb[32].mxu0 %vm1412_vm0, %v7749_v2  ;;  %v7831_v2 = vld [vmem:[%s8447_s22 + $0x1f0] sm:$0xff]  }
 0x11a   : > { %1922 = vmatprep.mubr.bf16.mxu0 %v8117_v8 }
 0x121   : > { %6590 = vmatmul.mubr.msk.bf16.gmra.mrb[36].mxu0 %vm1412_vm0, %v7750_v3  ;;  %v7832_v3 = vld [vmem:[%s8447_s22 + $0x1f8] sm:$0xff]  }
 0x122   : > { %1932 = vmatprep.mubr.bf16.mxu0 %v8117_v8 }
 0x129   : > { %6591 = vmatmul.mubr.msk.bf16.gmra.mrb[40].mxu0 %vm1412_vm0, %v7754_v4  ;;  %v7833_v4 = vld [vmem:[%s8447_s22 + $0x200] sm:$0xff]  }
 0x12a   : > { %1942 = vmatprep.mubr.bf16.mxu0 %v8117_v8 }
 0x131   : > { %6592 = vmatmul.mubr.msk.bf16.gmra.mrb[44].mxu0 %vm1412_vm0, %v7755_v5  ;;  %v7834_v5 = vld [vmem:[%s8447_s22 + $0x208] sm:$0xff]  }
 0x132   : > { %1952 = vmatprep.mubr.bf16.mxu0 %v8117_v8 }
 0x139   : > { %6593 = vmatmul.mubr.msk.bf16.gmra.mrb[48].mxu0 %vm1412_vm0, %v7756_v6  ;;  %v7835_v6 = vld [vmem:[%s8447_s22 + $0x210] sm:$0xff]  }
 0x13a   : > { %1962 = vmatprep.mubr.bf16.mxu0 %v8117_v8 }
 0x141   : > { %6594 = vmatmul.mubr.msk.bf16.gmra.mrb[52].mxu0 %vm1412_vm0, %v7760_v7  ;;  %v7836_v7 = vld [vmem:[%s8447_s22 + $0x218] sm:$0xff]  }
 0x142   : > { %2219 = vmatprep.mubr.bf16.mxu0 %v8117_v8 }
 0x149   : > { %6661 = vmatmul.mubr.msk.bf16.vlgmr.msra.gmra.mrb[0].mxu0 %vm1412_vm0, %v7761_v9  ;;  %v7837_v9 = vld [vmem:[%s8447_s22 + $0x220] sm:$0xff]  }
 0x14a   : > { %2631 = vmatpush1.bf16.msra.mxu0 %v7762_v10  ;;  %2229 = vmatprep.mubr.bf16.mxu0 %v8117_v8  ;;  %v7838_v10 = vld [vmem:[%s8447_s22 + $0x228] sm:$0xff]  }
 0x14b   : > { %2632 = vmatprep.subr.bf16.mxu0 %v7769_v11  ;;  %v3304_v11 = vlaneseq }
 0x14e   : > { %2633 = vmatpush1.bf16.msra.mxu0 %v7767_v12  ;;  %v7841_v12 = vld [vmem:[%s10021_s27 + $0x4] ss:$8 sps:$4 sm:$0xff]  }
 0x14f   : > { %2634 = vmatprep.subr.bf16.mxu0 %v7775_v13  ;;  %v8821_v13 = vshrl.u32 %v3304_v11, 7  ;;  %6849 = vmatprep.mubr.msk.bf16.mxu1 %vm1412_vm0, %v7841_v12 }
 0x151   : > { %6662 = vmatmul.mubr.msk.bf16.gmra.mrb[4].mxu0 %vm1412_vm0, %v7765_v14  ;;  %v3306_v14 = vsub.s32 0, %v8821_v13 }
 0x152   : > { %2239 = vmatprep.mubr.bf16.mxu0 %v8117_v8  ;;  %2635 = vmatpush1.bf16.msra.mxu0 %v7773_v15  ;;  %v3302_v15 = vld [vmem:[%s10022_s1] sm:$0x3]  ;;  %s1198_s1 = scalar_lea.vmem [#allocation3], %s6474_s24  ;;  %s8120_s24 = smov [#allocation3]  }
 0x153   : > { %2636 = vmatprep.subr.bf16.mxu0 %v7780_v16  ;;  %v3310_v16 = vsub.s32 1, %v8821_v13  ;;  %s6404_s22 = sshll.u32 %s1198_s1, 4  ;;  %s8057_s25 = sshll.u32 %s8120_s24, 4  ;;  %s9936_s22 = int_to_ptr.vmem [resolvable:$true] %s6404_s22  ;;  %s8058_s25 = int_to_ptr.vmem [resolvable:$false] %s8057_s25 }
 0x154   : > { %s8053_s26 = scalar_lea.vmem %s9936_s22, 128  ;;  %s8059_s30 = scalar_lea.vmem %s8058_s25, 256 }
 0x155   : > { %p8054_p13 = scmp.ne.s32.totalorder %s9936_s22, %s8053_s26  ;;  %p8060_p2 = scmp.lt.s32.totalorder %s9936_s22, %s8058_s25 }
 0x156   : > { %2637 = vmatpush1.bf16.msra.mxu0 %v7778_v17  ;;  %v8831_v17 = vrot.slane %v3302_v15, %v3306_v14  ;;  %p8061_p3 = scmp.lt.s32.totalorder %s8059_s30, %s8053_s26 }
 0x157   : > { %2638 = vmatprep.subr.bf16.mxu0 %v7785_v18  ;;  %v8835_v18 = vrot.slane %v3302_v15, %v3310_v16  ;;  %p8055_p0 = pnand %p8054_p13, %p8259_p6 }
 0x158   : > { %p8062_p4 = por %p8061_p3, %p8060_p2 }
 0x159   : > { %6663 = vmatmul.mubr.msk.bf16.gmra.mrb[8].mxu0 %vm1412_vm0, %v7766_v19  ;;  %p8056_p1 = pneg %p8055_p0 }
 0x15a   : > { %2249 = vmatprep.mubr.bf16.mxu0 %v8117_v8  ;;  %2639 = vmatpush1.bf16.msra.mxu0 %v7783_v20 }
 0x15b   : > { %2640 = vmatprep.subr.bf16.mxu0 %v7791_v21  ;;  %p8063_p5 = pnand %p8062_p4, %p8056_p1 }
 0x15e   : > { %2641 = vmatpush1.bf16.msra.mxu0 %v7789_v22 }
 0x15f   : > { %3073 = vmatprep.subr.bf16.mxu0 %v7796_v23 }
 0x161   : > { %6664 = vmatmul.mubr.msk.bf16.gmra.mrb[12].mxu0 %vm1412_vm0, %v7770_v24 }
 0x162   : > { %2259 = vmatprep.mubr.bf16.mxu0 %v8117_v8 }
 0x169   : > { %6665 = vmatmul.mubr.msk.bf16.gmra.mrb[16].mxu0 %vm1412_vm0, %v7771_v25 }
 0x16a   : > { %2269 = vmatprep.mubr.bf16.mxu0 %v8117_v8 }
 0x171   : > { %6666 = vmatmul.mubr.msk.bf16.gmra.mrb[20].mxu0 %vm1412_vm0, %v7772_v26 }
 0x172   : > { %2279 = vmatprep.mubr.bf16.mxu0 %v8117_v8 }
 0x179   : > { %6667 = vmatmul.mubr.msk.bf16.gmra.mrb[24].mxu0 %vm1412_vm0, %v7776_v27 }
 0x17a   : > { %2289 = vmatprep.mubr.bf16.mxu0 %v8117_v8 }
 0x181   : > { %6668 = vmatmul.mubr.msk.bf16.gmra.mrb[28].mxu0 %vm1412_vm0, %v7777_v28 }
 0x182   : > { %2299 = vmatprep.mubr.bf16.mxu0 %v8117_v8 }
 0x189   : > { %6669 = vmatmul.mubr.msk.bf16.gmra.mrb[32].mxu0 %vm1412_vm0, %v7781_v29 }
 0x18a   : > { %2309 = vmatprep.mubr.bf16.mxu0 %v8117_v8 }
 0x191   : > { %6670 = vmatmul.mubr.msk.bf16.gmra.mrb[36].mxu0 %vm1412_vm0, %v7782_v30 }
 0x192   : > { %2319 = vmatprep.mubr.bf16.mxu0 %v8117_v8 }
 0x199   : > { %6671 = vmatmul.mubr.msk.bf16.gmra.mrb[40].mxu0 %vm1412_vm0, %v7786_v31 }
 0x19a   : > { %2329 = vmatprep.mubr.bf16.mxu0 %v8117_v8 }
 0x1a1   : > { %6672 = vmatmul.mubr.msk.bf16.gmra.mrb[44].mxu0 %vm1412_vm0, %v7787_v32 }
 0x1a2   : > { %2339 = vmatprep.mubr.bf16.mxu0 %v8117_v8 }
 0x1a9   : > { %6673 = vmatmul.mubr.msk.bf16.gmra.mrb[48].mxu0 %vm1412_vm0, %v7788_v33 }
 0x1aa   : > { %2349 = vmatprep.mubr.bf16.mxu0 %v8117_v8 }
 0x1b1   : > { %6674 = vmatmul.mubr.msk.bf16.gmra.mrb[52].mxu0 %vm1412_vm0, %v7792_v34 }
 0x1b2   : > { %2662 = vmatprep.mubr.bf16.mxu0 %v8117_v8 }
 0x1b9   : > { %6741 = vmatmul.mubr.msk.bf16.vlgmr.msra.gmra.mrb[0].mxu0 %vm1412_vm0, %v7793_v35 }
 0x1ba   : > { %3074 = vmatpush1.bf16.msra.mxu0 %v7794_v36  ;;  %2672 = vmatprep.mubr.bf16.mxu0 %v8117_v8 }
 0x1bb   : > { %3075 = vmatprep.subr.bf16.mxu0 %v7801_v37 }
 0x1be   : > { %3076 = vmatpush1.bf16.msra.mxu0 %v7799_v38 }
 0x1bf   : > { %3077 = vmatprep.subr.bf16.mxu0 %v7807_v39 }
 0x1c1   : > { %6742 = vmatmul.mubr.msk.bf16.gmra.mrb[4].mxu0 %vm1412_vm0, %v7797_v40 }
 0x1c2   : > { %2682 = vmatprep.mubr.bf16.mxu0 %v8117_v8  ;;  %3078 = vmatpush1.bf16.msra.mxu0 %v7805_v41 }
 0x1c3   : > { %3079 = vmatprep.subr.bf16.mxu0 %v7812_v42 }
 0x1c6   : > { %3080 = vmatpush1.bf16.msra.mxu0 %v7810_v43 }
 0x1c7   : > { %3081 = vmatprep.subr.bf16.mxu0 %v7817_v44 }
 0x1c9   : > { %6743 = vmatmul.mubr.msk.bf16.gmra.mrb[8].mxu0 %vm1412_vm0, %v7798_v45 }
 0x1ca   : > { %2692 = vmatprep.mubr.bf16.mxu0 %v8117_v8  ;;  %3082 = vmatpush1.bf16.msra.mxu0 %v7815_v46 }
 0x1cb   : > { %3083 = vmatprep.subr.bf16.mxu0 %v7823_v47 }
 0x1ce   : > { %3084 = vmatpush1.bf16.msra.mxu0 %v7821_v48 }
 0x1cf   : > { %5676 = vmatprep.subr.bf16.mxu0 %v8117_v8 }
 0x1d1   : > { %6744 = vmatmul.mubr.msk.bf16.gmra.mrb[12].mxu0 %vm1412_vm0, %v7802_v49 }
 0x1d2   : > { %2702 = vmatprep.mubr.bf16.mxu0 %v8117_v8 }
 0x1d9   : > { %6745 = vmatmul.mubr.msk.bf16.gmra.mrb[16].mxu0 %vm1412_vm0, %v7803_v50 }
 0x1da   : > { %2712 = vmatprep.mubr.bf16.mxu0 %v8117_v8 }
 0x1e1   : > { %6746 = vmatmul.mubr.msk.bf16.gmra.mrb[20].mxu0 %vm1412_vm0, %v7804_v51 }
 0x1e2   : > { %2722 = vmatprep.mubr.bf16.mxu0 %v8117_v8 }
 0x1e9   : > { %6747 = vmatmul.mubr.msk.bf16.gmra.mrb[24].mxu0 %vm1412_vm0, %v7808_v52 }
 0x1ea   : > { %2732 = vmatprep.mubr.bf16.mxu0 %v8117_v8 }
 0x1f1   : > { %6748 = vmatmul.mubr.msk.bf16.gmra.mrb[28].mxu0 %vm1412_vm0, %v7809_v53 }
 0x1f2   : > { %2742 = vmatprep.mubr.bf16.mxu0 %v8117_v8 }
 0x1f9   : > { %6749 = vmatmul.mubr.msk.bf16.gmra.mrb[32].mxu0 %vm1412_vm0, %v7813_v54 }
 0x1fa   : > { %2752 = vmatprep.mubr.bf16.mxu0 %v8117_v8 }
 0x201   : > { %6750 = vmatmul.mubr.msk.bf16.gmra.mrb[36].mxu0 %vm1412_vm0, %v7814_v55 }
 0x202   : > { %2762 = vmatprep.mubr.bf16.mxu0 %v8117_v8 }
 0x209   : > { %6751 = vmatmul.mubr.msk.bf16.gmra.mrb[40].mxu0 %vm1412_vm0, %v7818_v56 }
 0x20a   : > { %2772 = vmatprep.mubr.bf16.mxu0 %v8117_v8 }
 0x211   : > { %6752 = vmatmul.mubr.msk.bf16.gmra.mrb[44].mxu0 %vm1412_vm0, %v7819_v57 }
 0x212   : > { %2782 = vmatprep.mubr.bf16.mxu0 %v8117_v8 }
 0x219   : > { %6753 = vmatmul.mubr.msk.bf16.gmra.mrb[48].mxu0 %vm1412_vm0, %v7820_v58 }
 0x21a   : > { %2792 = vmatprep.mubr.bf16.mxu0 %v8117_v8 }
 0x221   : > { %6754 = vmatmul.mubr.msk.bf16.gmra.mrb[52].mxu0 %vm1412_vm0, %v7824_v59 }
 0x222   : > { %3105 = vmatprep.mubr.bf16.mxu0 %v8117_v8 }
 0x229   : > { %6821 = vmatmul.mubr.msk.bf16.vlgmr.msra.gmra.mrb[0].mxu0 %vm1412_vm0, %v7825_v60 }
 0x22a   : > { %3115 = vmatprep.mubr.bf16.mxu0 %v8117_v8 }
 0x231   : > { %6822 = vmatmul.mubr.msk.bf16.gmra.mrb[4].mxu0 %vm1412_vm0, %v7826_v61 }
 0x232   : > { %3125 = vmatprep.mubr.bf16.mxu0 %v8117_v8 }
 0x239   : > { %6823 = vmatmul.mubr.msk.bf16.gmra.mrb[8].mxu0 %vm1412_vm0, %v7827_v62 }
 0x23a   : > { %3135 = vmatprep.mubr.bf16.mxu0 %v8117_v8 }
 0x241   : > { %6824 = vmatmul.mubr.msk.bf16.gmra.mrb[12].mxu0 %vm1412_vm0, %v7828_v63 }
 0x242   : > { %3145 = vmatprep.mubr.bf16.mxu0 %v8117_v8 }
 0x249   : > { %6825 = vmatmul.mubr.msk.bf16.gmra.mrb[16].mxu0 %vm1412_vm0, %v7829_v0 }
 0x24a   : > { %3155 = vmatprep.mubr.bf16.mxu0 %v8117_v8 }
 0x251   : > { %6826 = vmatmul.mubr.msk.bf16.gmra.mrb[20].mxu0 %vm1412_vm0, %v7830_v1 }
 0x252   : > { %3165 = vmatprep.mubr.bf16.mxu0 %v8117_v8 }
 0x259   : > { %6827 = vmatmul.mubr.msk.bf16.gmra.mrb[24].mxu0 %vm1412_vm0, %v7831_v2 }
 0x25a   : > { %3175 = vmatprep.mubr.bf16.mxu0 %v8117_v8 }
 0x261   : > { %6828 = vmatmul.mubr.msk.bf16.gmra.mrb[28].mxu0 %vm1412_vm0, %v7832_v3 }
 0x262   : > { %3185 = vmatprep.mubr.bf16.mxu0 %v8117_v8 }
 0x269   : > { %6829 = vmatmul.mubr.msk.bf16.gmra.mrb[32].mxu0 %vm1412_vm0, %v7833_v4 }
 0x26a   : > { %3195 = vmatprep.mubr.bf16.mxu0 %v8117_v8 }
 0x271   : > { %6830 = vmatmul.mubr.msk.bf16.gmra.mrb[36].mxu0 %vm1412_vm0, %v7834_v5 }
 0x272   : > { %3205 = vmatprep.mubr.bf16.mxu0 %v8117_v8 }
 0x279   : > { %6831 = vmatmul.mubr.msk.bf16.gmra.mrb[40].mxu0 %vm1412_vm0, %v7835_v6 }
 0x27a   : > { %3215 = vmatprep.mubr.bf16.mxu0 %v8117_v8 }
 0x281   : > { %6832 = vmatmul.mubr.msk.bf16.gmra.mrb[44].mxu0 %vm1412_vm0, %v7836_v7 }
 0x282   : > { %3225 = vmatprep.mubr.bf16.mxu0 %v8117_v8 }
 0x289   : > { %6833 = vmatmul.mubr.msk.bf16.gmra.mrb[48].mxu0 %vm1412_vm0, %v7837_v9 }
 0x28a   : > { %3235 = vmatprep.mubr.bf16.mxu0 %v8117_v8 }
 0x291   : > { %6834 = vmatmul.mubr.msk.bf16.gmra.mrb[52].mxu0 %vm1412_vm0, %v7838_v10 }
 0x2fc   : > { %v3107_v19 = vpop.f32.mrb[0].mxu0 }
 0x2fd   : > { %v3314_v20 = vadd.f32 %v8831_v17, %v3107_v19  ;;  %v3109_v21 = vpop.f32.mrb[1].mxu0 }
 0x2fe   : > { %v3315_v22 = vadd.f32 %v8835_v18, %v3109_v21  ;;  %v3111_v23 = vpop.f32.mrb[2].mxu0 }
 0x2ff   : > { %v3316_v24 = vadd.f32 %v8831_v17, %v3111_v23  ;;  %v3113_v25 = vpop.f32.mrb[3].mxu0  ;;  %v3370_v27 = vmax.f32 %v3314_v20, 0.0 }
 0x300   : > { %v3317_v26 = vadd.f32 %v8835_v18, %v3113_v25  ;;  %v3371_v29 = vmax.f32 %v3315_v22, 0.0 }
 0x301   : > { %v3372_v28 = vmax.f32 %v3316_v24, 0.0 }
 0x302   : > { %v3373_v30 = vmax.f32 %v3317_v26, 0.0 }
 0x303   : > { %v8841_v31 = vpack.c.bf16 %v3372_v28, %v3370_v27 }
 0x304   : > { %v3117_v32 = vpop.f32.mrb[4].mxu0  ;;  %v8843_v33 = vpack.c.bf16 %v3373_v30, %v3371_v29 }
 0x305   : > { %v3318_v34 = vadd.f32 %v8831_v17, %v3117_v32  ;;  %v3119_v35 = vpop.f32.mrb[5].mxu0 }
 0x306   : > { %v3319_v36 = vadd.f32 %v8835_v18, %v3119_v35  ;;  %v3121_v37 = vpop.f32.mrb[6].mxu0  ;;  %3552 = vmatprep.subr.bf16.mxu1 %v8843_v33 }
 0x307   : > { %v3320_v38 = vadd.f32 %v8831_v17, %v3121_v37  ;;  %v3123_v39 = vpop.f32.mrb[7].mxu0  ;;  %3553 = vmatpush1.bf16.msra.mxu1 %v8841_v31  ;;  %v3374_v41 = vmax.f32 %v3318_v34, 0.0 }
 0x308   : > { %v3321_v40 = vadd.f32 %v8835_v18, %v3123_v39  ;;  %v3375_v43 = vmax.f32 %v3319_v36, 0.0 }
 0x309   : > { %v3376_v42 = vmax.f32 %v3320_v38, 0.0 }
 0x30a   : > { %v3377_v44 = vmax.f32 %v3321_v40, 0.0 }
 0x30b   : > { %v8851_v45 = vpack.c.bf16 %v3376_v42, %v3374_v41 }
 0x30c   : > { %v8853_v46 = vpack.c.bf16 %v3377_v44, %v3375_v43  ;;  %v3127_v47 = vpop.f32.mrb[8].mxu0 }
 0x30d   : > { %v3322_v48 = vadd.f32 %v8831_v17, %v3127_v47  ;;  %v3129_v49 = vpop.f32.mrb[9].mxu0 }
 0x30e   : > { %v3323_v50 = vadd.f32 %v8835_v18, %v3129_v49  ;;  %v3131_v51 = vpop.f32.mrb[10].mxu0  ;;  %3554 = vmatprep.subr.bf16.mxu1 %v8853_v46 }
 0x30f   : > { %v3324_v52 = vadd.f32 %v8831_v17, %v3131_v51  ;;  %v3133_v53 = vpop.f32.mrb[11].mxu0  ;;  %3555 = vmatpush1.bf16.msra.mxu1 %v8851_v45  ;;  %v3378_v55 = vmax.f32 %v3322_v48, 0.0 }
 0x310   : > { %v3325_v54 = vadd.f32 %v8835_v18, %v3133_v53  ;;  %v3379_v57 = vmax.f32 %v3323_v50, 0.0 }
 0x311   : > { %v3380_v56 = vmax.f32 %v3324_v52, 0.0 }
 0x312   : > { %v3381_v58 = vmax.f32 %v3325_v54, 0.0 }
 0x313   : > { %v8861_v59 = vpack.c.bf16 %v3380_v56, %v3378_v55 }
 0x314   : > { %v8863_v60 = vpack.c.bf16 %v3381_v58, %v3379_v57  ;;  %v3137_v61 = vpop.f32.mrb[12].mxu0 }
 0x315   : > { %v3326_v62 = vadd.f32 %v8831_v17, %v3137_v61  ;;  %v3139_v63 = vpop.f32.mrb[13].mxu0 }
 0x316   : > { %v3327_v0 = vadd.f32 %v8835_v18, %v3139_v63  ;;  %v3141_v1 = vpop.f32.mrb[14].mxu0  ;;  %3556 = vmatprep.subr.bf16.mxu1 %v8863_v60 }
 0x317   : > { %v3328_v2 = vadd.f32 %v8831_v17, %v3141_v1  ;;  %v3143_v3 = vpop.f32.mrb[15].mxu0  ;;  %3557 = vmatpush1.bf16.msra.mxu1 %v8861_v59  ;;  %v3382_v5 = vmax.f32 %v3326_v62, 0.0 }
 0x318   : > { %v3329_v4 = vadd.f32 %v8835_v18, %v3143_v3  ;;  %v3383_v7 = vmax.f32 %v3327_v0, 0.0 }
 0x319   : > { %v3384_v6 = vmax.f32 %v3328_v2, 0.0 }
 0x31a   : > { %v3385_v9 = vmax.f32 %v3329_v4, 0.0 }
 0x31b   : > { %v8871_v10 = vpack.c.bf16 %v3384_v6, %v3382_v5 }
 0x31c   : > { %v8873_v11 = vpack.c.bf16 %v3385_v9, %v3383_v7  ;;  %v3147_v12 = vpop.f32.mrb[16].mxu0 }
 0x31d   : > { %v3330_v15 = vadd.f32 %v8831_v17, %v3147_v12  ;;  %v3149_v19 = vpop.f32.mrb[17].mxu0 }
 0x31e   : > { %v3331_v20 = vadd.f32 %v8835_v18, %v3149_v19  ;;  %v3151_v21 = vpop.f32.mrb[18].mxu0  ;;  %3558 = vmatprep.subr.bf16.mxu1 %v8873_v11 }
 0x31f   : > { %v3332_v22 = vadd.f32 %v8831_v17, %v3151_v21  ;;  %v3153_v23 = vpop.f32.mrb[19].mxu0  ;;  %3559 = vmatpush1.bf16.msra.mxu1 %v8871_v10  ;;  %v3386_v25 = vmax.f32 %v3330_v15, 0.0 }
 0x320   : > { %v3333_v24 = vadd.f32 %v8835_v18, %v3153_v23  ;;  %v3387_v27 = vmax.f32 %v3331_v20, 0.0 }
 0x321   : > { %v3388_v26 = vmax.f32 %v3332_v22, 0.0 }
 0x322   : > { %v3389_v28 = vmax.f32 %v3333_v24, 0.0 }
 0x323   : > { %v8881_v29 = vpack.c.bf16 %v3388_v26, %v3386_v25 }
 0x324   : > { %v8883_v30 = vpack.c.bf16 %v3389_v28, %v3387_v27  ;;  %v3157_v32 = vpop.f32.mrb[20].mxu0 }
 0x325   : > { %v3334_v34 = vadd.f32 %v8831_v17, %v3157_v32  ;;  %v3159_v35 = vpop.f32.mrb[21].mxu0 }
 0x326   : > { %v3335_v36 = vadd.f32 %v8835_v18, %v3159_v35  ;;  %v3161_v37 = vpop.f32.mrb[22].mxu0  ;;  %3560 = vmatprep.subr.bf16.mxu1 %v8883_v30 }
 0x327   : > { %v3336_v38 = vadd.f32 %v8831_v17, %v3161_v37  ;;  %v3163_v39 = vpop.f32.mrb[23].mxu0  ;;  %3561 = vmatpush1.bf16.msra.mxu1 %v8881_v29  ;;  %v3390_v41 = vmax.f32 %v3334_v34, 0.0 }
 0x328   : > { %v3337_v40 = vadd.f32 %v8835_v18, %v3163_v39  ;;  %v3391_v43 = vmax.f32 %v3335_v36, 0.0 }
 0x329   : > { %v3392_v42 = vmax.f32 %v3336_v38, 0.0 }
 0x32a   : > { %v3393_v44 = vmax.f32 %v3337_v40, 0.0 }
 0x32b   : > { %v8891_v47 = vpack.c.bf16 %v3392_v42, %v3390_v41 }
 0x32c   : > { %v8893_v48 = vpack.c.bf16 %v3393_v44, %v3391_v43  ;;  %v3167_v49 = vpop.f32.mrb[24].mxu0 }
 0x32d   : > { %v3338_v50 = vadd.f32 %v8831_v17, %v3167_v49  ;;  %v3169_v51 = vpop.f32.mrb[25].mxu0 }
 0x32e   : > { %v3339_v52 = vadd.f32 %v8835_v18, %v3169_v51  ;;  %v3171_v53 = vpop.f32.mrb[26].mxu0  ;;  %3562 = vmatprep.subr.bf16.mxu1 %v8893_v48 }
 0x32f   : > { %v3340_v54 = vadd.f32 %v8831_v17, %v3171_v53  ;;  %v3173_v55 = vpop.f32.mrb[27].mxu0  ;;  %3563 = vmatpush1.bf16.msra.mxu1 %v8891_v47  ;;  %v3394_v57 = vmax.f32 %v3338_v50, 0.0 }
 0x330   : > { %v3341_v56 = vadd.f32 %v8835_v18, %v3173_v55  ;;  %v3395_v61 = vmax.f32 %v3339_v52, 0.0 }
 0x331   : > { %v3396_v58 = vmax.f32 %v3340_v54, 0.0 }
 0x332   : > { %v3397_v62 = vmax.f32 %v3341_v56, 0.0 }
 0x333   : > { %v8901_v63 = vpack.c.bf16 %v3396_v58, %v3394_v57 }
 0x334   : > { %v8903_v0 = vpack.c.bf16 %v3397_v62, %v3395_v61  ;;  %v3177_v1 = vpop.f32.mrb[28].mxu0 }
 0x335   : > { %v3342_v2 = vadd.f32 %v8831_v17, %v3177_v1  ;;  %v3179_v3 = vpop.f32.mrb[29].mxu0 }
 0x336   : > { %v3343_v4 = vadd.f32 %v8835_v18, %v3179_v3  ;;  %v3181_v5 = vpop.f32.mrb[30].mxu0  ;;  %3564 = vmatprep.subr.bf16.mxu1 %v8903_v0 }
 0x337   : > { %v3344_v6 = vadd.f32 %v8831_v17, %v3181_v5  ;;  %v3183_v7 = vpop.f32.mrb[31].mxu0  ;;  %3565 = vmatpush1.bf16.msra.mxu1 %v8901_v63  ;;  %v3398_v12 = vmax.f32 %v3342_v2, 0.0 }
 0x338   : > { %v3345_v9 = vadd.f32 %v8835_v18, %v3183_v7  ;;  %v3399_v19 = vmax.f32 %v3343_v4, 0.0 }
 0x339   : > { %v3400_v15 = vmax.f32 %v3344_v6, 0.0 }
 0x33a   : > { %v3401_v20 = vmax.f32 %v3345_v9, 0.0 }
 0x33b   : > { %v8911_v21 = vpack.c.bf16 %v3400_v15, %v3398_v12 }
 0x33c   : > { %v8913_v22 = vpack.c.bf16 %v3401_v20, %v3399_v19  ;;  %v3187_v23 = vpop.f32.mrb[32].mxu0 }
 0x33d   : > { %v3346_v24 = vadd.f32 %v8831_v17, %v3187_v23  ;;  %v3189_v25 = vpop.f32.mrb[33].mxu0 }
 0x33e   : > { %v3347_v26 = vadd.f32 %v8835_v18, %v3189_v25  ;;  %v3191_v27 = vpop.f32.mrb[34].mxu0  ;;  %3566 = vmatprep.subr.bf16.mxu1 %v8913_v22 }
 0x33f   : > { %v3348_v28 = vadd.f32 %v8831_v17, %v3191_v27  ;;  %v3193_v32 = vpop.f32.mrb[35].mxu0  ;;  %3567 = vmatpush1.bf16.msra.mxu1 %v8911_v21  ;;  %v3402_v35 = vmax.f32 %v3346_v24, 0.0 }
 0x340   : > { %v3349_v34 = vadd.f32 %v8835_v18, %v3193_v32  ;;  %v3403_v37 = vmax.f32 %v3347_v26, 0.0 }
 0x341   : > { %v3404_v36 = vmax.f32 %v3348_v28, 0.0 }
 0x342   : > { %v3405_v38 = vmax.f32 %v3349_v34, 0.0 }
 0x343   : > { %v8921_v39 = vpack.c.bf16 %v3404_v36, %v3402_v35 }
 0x344   : > { %v8923_v40 = vpack.c.bf16 %v3405_v38, %v3403_v37  ;;  %v3197_v41 = vpop.f32.mrb[36].mxu0 }
 0x345   : > { %v3350_v42 = vadd.f32 %v8831_v17, %v3197_v41  ;;  %v3199_v43 = vpop.f32.mrb[37].mxu0 }
 0x346   : > { %v3351_v44 = vadd.f32 %v8835_v18, %v3199_v43  ;;  %v3201_v49 = vpop.f32.mrb[38].mxu0  ;;  %3568 = vmatprep.subr.bf16.mxu1 %v8923_v40 }
 0x347   : > { %v3352_v50 = vadd.f32 %v8831_v17, %v3201_v49  ;;  %v3203_v51 = vpop.f32.mrb[39].mxu0  ;;  %3569 = vmatpush1.bf16.msra.mxu1 %v8921_v39  ;;  %v3406_v53 = vmax.f32 %v3350_v42, 0.0 }
 0x348   : > { %v3353_v52 = vadd.f32 %v8835_v18, %v3203_v51  ;;  %v3407_v55 = vmax.f32 %v3351_v44, 0.0 }
 0x349   : > { %v3408_v54 = vmax.f32 %v3352_v50, 0.0 }
 0x34a   : > { %v3409_v56 = vmax.f32 %v3353_v52, 0.0 }
 0x34b   : > { %v8931_v57 = vpack.c.bf16 %v3408_v54, %v3406_v53 }
 0x34c   : > { %v8933_v58 = vpack.c.bf16 %v3409_v56, %v3407_v55  ;;  %v3207_v61 = vpop.f32.mrb[40].mxu0 }
 0x34d   : > { %v3354_v62 = vadd.f32 %v8831_v17, %v3207_v61  ;;  %v3209_v1 = vpop.f32.mrb[41].mxu0 }
 0x34e   : > { %v3355_v2 = vadd.f32 %v8835_v18, %v3209_v1  ;;  %v3211_v3 = vpop.f32.mrb[42].mxu0  ;;  %3570 = vmatprep.subr.bf16.mxu1 %v8933_v58 }
 0x34f   : > { %v3356_v4 = vadd.f32 %v8831_v17, %v3211_v3  ;;  %v3213_v5 = vpop.f32.mrb[43].mxu0  ;;  %3571 = vmatpush1.bf16.msra.mxu1 %v8931_v57  ;;  %v3410_v7 = vmax.f32 %v3354_v62, 0.0 }
 0x350   : > { %v3357_v6 = vadd.f32 %v8835_v18, %v3213_v5  ;;  %v3411_v12 = vmax.f32 %v3355_v2, 0.0 }
 0x351   : > { %v3412_v9 = vmax.f32 %v3356_v4, 0.0 }
 0x352   : > { %v3413_v15 = vmax.f32 %v3357_v6, 0.0 }
 0x353   : > { %v8941_v19 = vpack.c.bf16 %v3412_v9, %v3410_v7 }
 0x354   : > { %v8943_v20 = vpack.c.bf16 %v3413_v15, %v3411_v12  ;;  %v3217_v23 = vpop.f32.mrb[44].mxu0 }
 0x355   : > { %v3358_v24 = vadd.f32 %v8831_v17, %v3217_v23  ;;  %v3219_v25 = vpop.f32.mrb[45].mxu0 }
 0x356   : > { %v3359_v26 = vadd.f32 %v8835_v18, %v3219_v25  ;;  %v3221_v27 = vpop.f32.mrb[46].mxu0  ;;  %3572 = vmatprep.subr.bf16.mxu1 %v8943_v20 }
 0x357   : > { %v3360_v28 = vadd.f32 %v8831_v17, %v3221_v27  ;;  %v3223_v32 = vpop.f32.mrb[47].mxu0  ;;  %3573 = vmatpush1.bf16.msra.mxu1 %v8941_v19  ;;  %v3414_v35 = vmax.f32 %v3358_v24, 0.0 }
 0x358   : > { %v3361_v34 = vadd.f32 %v8835_v18, %v3223_v32  ;;  %v3415_v37 = vmax.f32 %v3359_v26, 0.0  ;;  %v7839_v32 = vld [vmem:[%s10021_s27] ss:$8 sps:$4 sm:$0xff]  }
 0x359   : > { %v3416_v36 = vmax.f32 %v3360_v28, 0.0 }
 0x35a   : > { %v3417_v38 = vmax.f32 %v3361_v34, 0.0  ;;  %v7845_v34 = vld [vmem:[%s10021_s27 + $0x24] ss:$8 sps:$4 sm:$0xff]  }
 0x35b   : > { %v8951_v41 = vpack.c.bf16 %v3416_v36, %v3414_v35  ;;  %v7881_v35 = vld [vmem:[%s9983_s5] sm:$0xff]  }
 0x35c   : > { %v8953_v42 = vpack.c.bf16 %v3417_v38, %v3415_v37  ;;  %v3227_v43 = vpop.f32.mrb[48].mxu0  ;;  %v7880_v36 = vld [vmem:[%s9982_s4 + $0x60] ss:$8 sps:$4 sm:$0xff]   ;;  %v7883_v38 = vld [vmem:[%s9983_s5 + $0x10] sm:$0xff]  }
 0x35d   : > { %v3362_v44 = vadd.f32 %v8831_v17, %v3227_v43  ;;  %v3229_v49 = vpop.f32.mrb[49].mxu0  ;;  %v7882_v37 = vld [vmem:[%s9983_s5 + $0x8] sm:$0xff]  }
 0x35e   : > { %v3363_v50 = vadd.f32 %v8835_v18, %v3229_v49  ;;  %v3231_v51 = vpop.f32.mrb[50].mxu0  ;;  %3574 = vmatprep.subr.bf16.mxu1 %v8953_v42  ;;  %v7886_v43 = vld [vmem:[%s9983_s5 + $0x28] sm:$0xff]   ;;  %v7888_v49 = vld [vmem:[%s9983_s5 + $0x38] sm:$0xff]  }
 0x35f   : > { %v3364_v52 = vadd.f32 %v8831_v17, %v3231_v51  ;;  %v3233_v53 = vpop.f32.mrb[51].mxu0  ;;  %3575 = vmatpush1.bf16.msra.mxu1 %v8951_v41  ;;  %v3418_v55 = vmax.f32 %v3362_v44, 0.0  ;;  %v7887_v44 = vld [vmem:[%s9983_s5 + $0x30] sm:$0xff]   ;;  %v7890_v51 = vld [vmem:[%s9983_s5 + $0x48] sm:$0xff]  }
 0x360   : > { %v3365_v54 = vadd.f32 %v8835_v18, %v3233_v53  ;;  %v3419_v61 = vmax.f32 %v3363_v50, 0.0  ;;  %v7889_v50 = vld [vmem:[%s9983_s5 + $0x40] sm:$0xff]  }
 0x361   : > { %v3420_v56 = vmax.f32 %v3364_v52, 0.0  ;;  %v7891_v52 = vld [vmem:[%s9983_s5 + $0x50] ss:$0 sps:$4 sm:$0xff]  }
 0x362   : > { %v3421_v62 = vmax.f32 %v3365_v54, 0.0  ;;  %v4006_v53 = vsel %vm4004_vm1, %v7891_v52, 0 }
 0x363   : > { %v8961_v1 = vpack.c.bf16 %v3420_v56, %v3418_v55 }
 0x364   : > { %v8963_v2 = vpack.c.bf16 %v3421_v62, %v3419_v61  ;;  %v3237_v3 = vpop.f32.mrb[52].mxu0 }
 0x365   : > { %v3366_v4 = vadd.f32 %v8831_v17, %v3237_v3  ;;  %v3239_v5 = vpop.f32.mrb[53].mxu0 }
 0x366   : > { %v3367_v6 = vadd.f32 %v8835_v18, %v3239_v5  ;;  %v3241_v7 = vpop.f32.mrb[54].mxu0  ;;  %3576 = vmatprep.subr.bf16.mxu1 %v8963_v2 }
 0x367   : > { %v3368_v9 = vadd.f32 %v8831_v17, %v3241_v7  ;;  %v3243_v12 = vpop.f32.mrb[55].mxu0  ;;  %3577 = vmatpush1.bf16.msra.mxu1 %v8961_v1  ;;  %v3422_v23 = vmax.f32 %v3366_v4, 0.0  ;;  %v7842_v17 = vld [vmem:[%s10021_s27 + $0x14] ss:$8 sps:$4 sm:$0xff]  }
 0x368   : > { %v3369_v15 = vadd.f32 %v8835_v18, %v3243_v12  ;;  %v3423_v25 = vmax.f32 %v3367_v6, 0.0  ;;  %v7844_v18 = vld [vmem:[%s10021_s27 + $0x10] ss:$8 sps:$4 sm:$0xff]  }
 0x369   : > { %v3424_v24 = vmax.f32 %v3368_v9, 0.0 }
 0x36a   : > { %v3425_v26 = vmax.f32 %v3369_v15, 0.0 }
 0x36b   : > { %v3452_v27 = vpack.c.bf16 %v3424_v24, %v3422_v23 }
 0x36c   : > { %v3453_v28 = vpack.c.bf16 %v3425_v26, %v3423_v25 }
 0x36e   : > { %3578 = vmatprep.subr.bf16.mxu1 %v3453_v28 }
 0x36f   : > { %3579 = vmatpush1.bf16.msra.mxu1 %v3452_v27 }
 0x370   : > { %3753 = vmatprep.subr.bf16.mxu1 %v8843_v33  ;;  %v7848_v33 = vld [vmem:[%s10021_s27 + $0x34] ss:$8 sps:$4 sm:$0xff]  }
 0x372   : > { %3585 = vmatmul.mubr.bf16.vlgmr.msra.gmra.mrb[0].mxu1 %v7839_v32 }
 0x373   : > { %3754 = vmatpush1.bf16.msra.mxu1 %v8841_v31  ;;  %6850 = vmatprep.mubr.msk.bf16.mxu1 %vm1412_vm0, %v7842_v17  ;;  %v7847_v31 = vld [vmem:[%s10021_s27 + $0x20] ss:$8 sps:$4 sm:$0xff]  }
 0x374   : > { %3755 = vmatprep.subr.bf16.mxu1 %v8853_v46  ;;  %v7851_v46 = vld [vmem:[%s10021_s27 + $0x44] ss:$8 sps:$4 sm:$0xff]  }
 0x377   : > { %3756 = vmatpush1.bf16.msra.mxu1 %v8851_v45  ;;  %v7850_v45 = vld [vmem:[%s10021_s27 + $0x30] ss:$8 sps:$4 sm:$0xff]  }
 0x378   : > { %3757 = vmatprep.subr.bf16.mxu1 %v8863_v60  ;;  %v7854_v60 = vld [vmem:[%s10021_s27 + $0x54] ss:$8 sps:$4 sm:$0xff]  }
 0x37a   : > { %3595 = vmatmul.mubr.bf16.gmra.mrb[4].mxu1 %v7844_v18 }
 0x37b   : > { %3758 = vmatpush1.bf16.msra.mxu1 %v8861_v59  ;;  %6851 = vmatprep.mubr.msk.bf16.mxu1 %vm1412_vm0, %v7845_v34  ;;  %v7853_v59 = vld [vmem:[%s10021_s27 + $0x40] ss:$8 sps:$4 sm:$0xff]  }
 0x37c   : > { %3759 = vmatprep.subr.bf16.mxu1 %v8873_v11  ;;  %v7857_v11 = vld [vmem:[%s10021_s27 + $0x64] ss:$8 sps:$4 sm:$0xff]  }
 0x37f   : > { %3760 = vmatpush1.bf16.msra.mxu1 %v8871_v10  ;;  %v7856_v10 = vld [vmem:[%s10021_s27 + $0x50] ss:$8 sps:$4 sm:$0xff]  }
 0x380   : > { %3761 = vmatprep.subr.bf16.mxu1 %v8883_v30  ;;  %v7862_v30 = vld [vmem:[%s9982_s4 + $0x4] ss:$8 sps:$4 sm:$0xff]  }
 0x382   : > { %3605 = vmatmul.mubr.bf16.gmra.mrb[8].mxu1 %v7847_v31 }
 0x383   : > { %3762 = vmatpush1.bf16.msra.mxu1 %v8881_v29  ;;  %6852 = vmatprep.mubr.msk.bf16.mxu1 %vm1412_vm0, %v7848_v33  ;;  %v7859_v29 = vld [vmem:[%s10021_s27 + $0x60] ss:$8 sps:$4 sm:$0xff]  }
 0x384   : > { %3763 = vmatprep.subr.bf16.mxu1 %v8893_v48  ;;  %v7863_v48 = vld [vmem:[%s9982_s4 + $0x14] ss:$8 sps:$4 sm:$0xff]  }
 0x387   : > { %3764 = vmatpush1.bf16.msra.mxu1 %v8891_v47  ;;  %v7860_v47 = vld [vmem:[%s9982_s4] ss:$8 sps:$4 sm:$0xff]  }
 0x388   : > { %3765 = vmatprep.subr.bf16.mxu1 %v8903_v0  ;;  %v7866_v0 = vld [vmem:[%s9982_s4 + $0x24] ss:$8 sps:$4 sm:$0xff]  }
 0x38a   : > { %3615 = vmatmul.mubr.bf16.gmra.mrb[12].mxu1 %v7850_v45 }
 0x38b   : > { %3766 = vmatpush1.bf16.msra.mxu1 %v8901_v63  ;;  %6853 = vmatprep.mubr.msk.bf16.mxu1 %vm1412_vm0, %v7851_v46  ;;  %v7865_v63 = vld [vmem:[%s9982_s4 + $0x10] ss:$8 sps:$4 sm:$0xff]  }
 0x38c   : > { %3767 = vmatprep.subr.bf16.mxu1 %v8913_v22  ;;  %v7869_v22 = vld [vmem:[%s9982_s4 + $0x34] ss:$8 sps:$4 sm:$0xff]  }
 0x38f   : > { %3768 = vmatpush1.bf16.msra.mxu1 %v8911_v21  ;;  %v7868_v21 = vld [vmem:[%s9982_s4 + $0x20] ss:$8 sps:$4 sm:$0xff]  }
 0x390   : > { %3769 = vmatprep.subr.bf16.mxu1 %v8923_v40  ;;  %v7872_v40 = vld [vmem:[%s9982_s4 + $0x44] ss:$8 sps:$4 sm:$0xff]  }
 0x392   : > { %3625 = vmatmul.mubr.bf16.gmra.mrb[16].mxu1 %v7853_v59 }
 0x393   : > { %3770 = vmatpush1.bf16.msra.mxu1 %v8921_v39  ;;  %6854 = vmatprep.mubr.msk.bf16.mxu1 %vm1412_vm0, %v7854_v60  ;;  %v7871_v39 = vld [vmem:[%s9982_s4 + $0x30] ss:$8 sps:$4 sm:$0xff]  }
 0x394   : > { %3771 = vmatprep.subr.bf16.mxu1 %v8933_v58  ;;  %v7875_v58 = vld [vmem:[%s9982_s4 + $0x54] ss:$8 sps:$4 sm:$0xff]  }
 0x397   : > { %3772 = vmatpush1.bf16.msra.mxu1 %v8931_v57  ;;  %v7874_v57 = vld [vmem:[%s9982_s4 + $0x40] ss:$8 sps:$4 sm:$0xff]  }
 0x398   : > { %3773 = vmatprep.subr.bf16.mxu1 %v8943_v20  ;;  %v7878_v20 = vld [vmem:[%s9982_s4 + $0x64] ss:$8 sps:$4 sm:$0xff]  }
 0x39a   : > { %3635 = vmatmul.mubr.bf16.gmra.mrb[20].mxu1 %v7856_v10 }
 0x39b   : > { %3774 = vmatpush1.bf16.msra.mxu1 %v8941_v19  ;;  %6855 = vmatprep.mubr.msk.bf16.mxu1 %vm1412_vm0, %v7857_v11  ;;  %v7877_v19 = vld [vmem:[%s9982_s4 + $0x50] ss:$8 sps:$4 sm:$0xff]  }
 0x39c   : > { %3775 = vmatprep.subr.bf16.mxu1 %v8953_v42  ;;  %v7885_v42 = vld [vmem:[%s9983_s5 + $0x20] sm:$0xff]  }
 0x39f   : > { %3776 = vmatpush1.bf16.msra.mxu1 %v8951_v41  ;;  %v7884_v41 = vld [vmem:[%s9983_s5 + $0x18] sm:$0xff]  }
 0x3a0   : > { %3777 = vmatprep.subr.bf16.mxu1 %v8963_v2 }
 0x3a2   : > { %3645 = vmatmul.mubr.bf16.gmra.mrb[24].mxu1 %v7859_v29 }
 0x3a3   : > { %3778 = vmatpush1.bf16.msra.mxu1 %v8961_v1  ;;  %6870 = vmatprep.mubr.msk.bf16.mxu1 %vm1412_vm0, %v7862_v30 }
 0x3a4   : > { %3779 = vmatprep.subr.bf16.mxu1 %v3453_v28 }
 0x3a7   : > { %3780 = vmatpush1.bf16.msra.mxu1 %v3452_v27 }
 0x3a8   : > { %4008 = vmatprep.subr.bf16.mxu1 %v8117_v8 }
 0x3aa   : > { %3786 = vmatmul.mubr.bf16.vlgmr.msra.gmra.mrb[28].mxu1 %v7860_v47 }
 0x3ab   : > { %6871 = vmatprep.mubr.msk.bf16.mxu1 %vm1412_vm0, %v7863_v48  ;;  %4009 = vmatpush1.bf16.msra.mxu1 %v7881_v35 }
 0x3ac   : > { %4010 = vmatprep.subr.bf16.mxu1 %v8117_v8 }
 0x3af   : > { %4011 = vmatpush1.bf16.msra.mxu1 %v7882_v37 }
 0x3b0   : > { %4012 = vmatprep.subr.bf16.mxu1 %v8117_v8 }
 0x3b2   : > { %3796 = vmatmul.mubr.bf16.gmra.mrb[32].mxu1 %v7865_v63 }
 0x3b3   : > { %6872 = vmatprep.mubr.msk.bf16.mxu1 %vm1412_vm0, %v7866_v0  ;;  %4013 = vmatpush1.bf16.msra.mxu1 %v7883_v38  ;;  %v7892_v0 = vld [vmem:[%s9984_s6] sm:$0xff]   ;;  %v7894_v38 = vld [vmem:[%s9984_s6 + $0x10] sm:$0xff]  }
 0x3b4   : > { %4014 = vmatprep.subr.bf16.mxu1 %v8117_v8 }
 0x3b7   : > { %4015 = vmatpush1.bf16.msra.mxu1 %v7884_v41 }
 0x3b8   : > { %4016 = vmatprep.subr.bf16.mxu1 %v8117_v8 }
 0x3ba   : > { %3806 = vmatmul.mubr.bf16.gmra.mrb[36].mxu1 %v7868_v21 }
 0x3bb   : > { %6873 = vmatprep.mubr.msk.bf16.mxu1 %vm1412_vm0, %v7869_v22  ;;  %4017 = vmatpush1.bf16.msra.mxu1 %v7885_v42 }
 0x3bc   : > { %4018 = vmatprep.subr.bf16.mxu1 %v8117_v8 }
 0x3bf   : > { %4019 = vmatpush1.bf16.msra.mxu1 %v7886_v43 }
 0x3c0   : > { %4020 = vmatprep.subr.bf16.mxu1 %v8117_v8 }
 0x3c2   : > { %3816 = vmatmul.mubr.bf16.gmra.mrb[40].mxu1 %v7871_v39 }
 0x3c3   : > { %6874 = vmatprep.mubr.msk.bf16.mxu1 %vm1412_vm0, %v7872_v40  ;;  %4021 = vmatpush1.bf16.msra.mxu1 %v7887_v44 }
 0x3c4   : > { %4022 = vmatprep.subr.bf16.mxu1 %v8117_v8 }
 0x3c7   : > { %4023 = vmatpush1.bf16.msra.mxu1 %v7888_v49 }
 0x3c8   : > { %4024 = vmatprep.subr.bf16.mxu1 %v8117_v8 }
 0x3ca   : > { %3826 = vmatmul.mubr.bf16.gmra.mrb[44].mxu1 %v7874_v57 }
 0x3cb   : > { %6875 = vmatprep.mubr.msk.bf16.mxu1 %vm1412_vm0, %v7875_v58  ;;  %4025 = vmatpush1.bf16.msra.mxu1 %v7889_v50  ;;  %v7893_v58 = vld [vmem:[%s9984_s6 + $0x8] sm:$0xff]   ;;  %v7895_v50 = vld [vmem:[%s9984_s6 + $0x18] sm:$0xff]  }
 0x3cc   : > { %4026 = vmatprep.subr.bf16.mxu1 %v8117_v8 }
 0x3cf   : > { %4027 = vmatpush1.bf16.msra.mxu1 %v7890_v51 }
 0x3d0   : > { %4028 = vmatprep.subr.bf16.mxu1 %v8117_v8 }
 0x3d2   : > { %3836 = vmatmul.mubr.bf16.gmra.mrb[48].mxu1 %v7877_v19 }
 0x3d3   : > { %6876 = vmatprep.mubr.msk.bf16.mxu1 %vm1412_vm0, %v7878_v20  ;;  %4029 = vmatpush1.bf16.msra.mxu1 %v4006_v53 }
 0x3d4   : > { %4184 = vmatprep.subr.bf16.mxu1 %v8117_v8 }
 0x3da   : > { %3846 = vmatmul.mubr.bf16.gmra.mrb[52].mxu1 %v7880_v36 }
 0x445   : > { %v3586_v54 = vpop.f32.mrb[0].mxu1 }
 0x446   : > { %v3588_v55 = vpop.f32.mrb[1].mxu1 }
 0x447   : > { %v3590_v56 = vpop.f32.mrb[2].mxu1 }
 0x448   : > { %v3592_v61 = vpop.f32.mrb[3].mxu1 }
 0x44d   : > { %v3596_v62 = vpop.f32.mrb[4].mxu1 }
 0x44e   : > { %v3598_v1 = vpop.f32.mrb[5].mxu1 }
 0x44f   : > { %v3600_v2 = vpop.f32.mrb[6].mxu1 }
 0x450   : > { %v3602_v3 = vpop.f32.mrb[7].mxu1 }
 0x455   : > { %v9137_v4 = vpop.f32.mrb[8].mxu1 }
 0x456   : > { %v9139_v5 = vpop.f32.mrb[9].mxu1 }
 0x457   : > { %v3610_v6 = vpop.f32.mrb[10].mxu1 }
 0x458   : > { %v3612_v7 = vpop.f32.mrb[11].mxu1 }
 0x45d   : > { %v9141_v9 = vpop.f32.mrb[12].mxu1 }
 0x45e   : > { %v9143_v12 = vpop.f32.mrb[13].mxu1 }
 0x45f   : > { %v9145_v15 = vpop.f32.mrb[14].mxu1 }
 0x460   : > { %v9147_v23 = vpop.f32.mrb[15].mxu1 }
 0x465   : > { %v9149_v24 = vpop.f32.mrb[16].mxu1 }
 0x466   : > { %v9151_v25 = vpop.f32.mrb[17].mxu1 }
 0x467   : > { %v9153_v26 = vpop.f32.mrb[18].mxu1 }
 0x468   : > { %v9155_v27 = vpop.f32.mrb[19].mxu1 }
 0x46d   : > { %v9157_v28 = vpop.f32.mrb[20].mxu1 }
 0x46e   : > { %v9159_v32 = vpop.f32.mrb[21].mxu1 }
 0x46f   : > { %v9161_v17 = vpop.f32.mrb[22].mxu1 }
 0x470   : > { %v9163_v18 = vpop.f32.mrb[23].mxu1 }
 0x475   : > { %v9165_v34 = vpop.f32.mrb[24].mxu1 }
 0x476   : > { %v9167_v31 = vpop.f32.mrb[25].mxu1 }
 0x477   : > { %v9169_v33 = vpop.f32.mrb[26].mxu1 }
 0x478   : > { %v9171_v45 = vpop.f32.mrb[27].mxu1 }
 0x47d   : > { %v3787_v46 = vpop.f32.mrb[28].mxu1 }
 0x47e   : > { %v3856_v59 = vmax.f32 %v3586_v54, %v3787_v46  ;;  %v3789_v60 = vpop.f32.mrb[29].mxu1 }
 0x47f   : > { %v3857_v10 = vmax.f32 %v3588_v55, %v3789_v60  ;;  %v3791_v11 = vpop.f32.mrb[30].mxu1 }
 0x480   : > { %v3858_v29 = vmax.f32 %v3590_v56, %v3791_v11  ;;  %v3793_v30 = vpop.f32.mrb[31].mxu1  ;;  %v7896_v56 = vld [vmem:[%s9984_s6 + $0x20] sm:$0xff]   ;;  %v7899_v11 = vld [vmem:[%s9984_s6 + $0x38] sm:$0xff]  }
 0x481   : > { %v3859_v47 = vmax.f32 %v3592_v61, %v3793_v30 }
 0x482   : > { %v9173_v48 = vpack.c.bf16 %v3858_v29, %v3856_v59 }
 0x483   : > { %v9175_v63 = vpack.c.bf16 %v3859_v47, %v3857_v10 }
 0x485   : > { %v3797_v21 = vpop.f32.mrb[32].mxu1  ;;  %6888 = vmatprep.mubr.msk.bf16.mxu1 %vm3982_vm2, %v9175_v63 }
 0x486   : > { %v3860_v22 = vmax.f32 %v3596_v62, %v3797_v21  ;;  %v3799_v39 = vpop.f32.mrb[33].mxu1  ;;  %4041 = vmatmul.mubr.bf16.vlgmr.msra.gmra.mrb[56].mxu1 %v9173_v48 }
 0x487   : > { %v3861_v40 = vmax.f32 %v3598_v1, %v3799_v39  ;;  %v3801_v57 = vpop.f32.mrb[34].mxu1  ;;  %4185 = vmatpush1.bf16.msra.mxu1 %v7892_v0 }
 0x488   : > { %v3862_v19 = vmax.f32 %v3600_v2, %v3801_v57  ;;  %v3803_v20 = vpop.f32.mrb[35].mxu1  ;;  %4186 = vmatprep.subr.bf16.mxu1 %v8117_v8 }
 0x489   : > { %v3863_v35 = vmax.f32 %v3602_v3, %v3803_v20 }
 0x48a   : > { %v9187_v36 = vpack.c.bf16 %v3862_v19, %v3860_v22  ;;  %v7902_v19 = vld [vmem:[%s9984_s6 + $0x50] ss:$0 sps:$4 sm:$0xff]  }
 0x48b   : > { %v9189_v37 = vpack.c.bf16 %v3863_v35, %v3861_v40  ;;  %4187 = vmatpush1.bf16.msra.mxu1 %v7893_v58 }
 0x48c   : > { %4188 = vmatprep.subr.bf16.mxu1 %v8117_v8 }
 0x48d   : > { %v3807_v41 = vpop.f32.mrb[36].mxu1  ;;  %6889 = vmatprep.mubr.msk.bf16.mxu1 %vm3982_vm2, %v9189_v37 }
 0x48e   : > { %v3864_v42 = vmax.f32 %v9137_v4, %v3807_v41  ;;  %v3809_v43 = vpop.f32.mrb[37].mxu1  ;;  %4049 = vmatmul.mubr.bf16.gmra.mrb[60].mxu1 %v9187_v36  ;;  %v7897_v4 = vld [vmem:[%s9984_s6 + $0x28] sm:$0xff]  }
 0x48f   : > { %v3865_v44 = vmax.f32 %v9139_v5, %v3809_v43  ;;  %v3811_v49 = vpop.f32.mrb[38].mxu1  ;;  %4189 = vmatpush1.bf16.msra.mxu1 %v7894_v38 }
 0x490   : > { %v3866_v51 = vmax.f32 %v3610_v6, %v3811_v49  ;;  %v3813_v52 = vpop.f32.mrb[39].mxu1  ;;  %4190 = vmatprep.subr.bf16.mxu1 %v8117_v8 }
 0x491   : > { %v3867_v53 = vmax.f32 %v3612_v7, %v3813_v52  ;;  %v7915_v52 = vld [vmem:[%s9985_s7 + $0x98] ss:$8 sps:$4 sm:$0xff]  }
 0x492   : > { %v9204_v54 = vpack.c.bf16 %v3866_v51, %v3864_v42 }
 0x493   : > { %v9206_v55 = vpack.c.bf16 %v3867_v53, %v3865_v44  ;;  %4191 = vmatpush1.bf16.msra.mxu1 %v7895_v50  ;;  %v7917_v53 = vld [vmem:[%s9985_s7 + $0x9c] ss:$8 sps:$4 sm:$0xff]  }
 0x494   : > { %4192 = vmatprep.subr.bf16.mxu1 %v8117_v8 }
 0x495   : > { %v3817_v61 = vpop.f32.mrb[40].mxu1  ;;  %6890 = vmatprep.mubr.msk.bf16.mxu1 %vm3982_vm2, %v9206_v55 }
 0x496   : > { %v3868_v62 = vmax.f32 %v9141_v9, %v3817_v61  ;;  %v3819_v1 = vpop.f32.mrb[41].mxu1  ;;  %4057 = vmatmul.mubr.bf16.gmra.mrb[64].mxu1 %v9204_v54 }
 0x497   : > { %v3869_v2 = vmax.f32 %v9143_v12, %v3819_v1  ;;  %v3821_v3 = vpop.f32.mrb[42].mxu1  ;;  %4193 = vmatpush1.bf16.msra.mxu1 %v7896_v56  ;;  %v7898_v12 = vld [vmem:[%s9984_s6 + $0x30] sm:$0xff]  }
 0x498   : > { %v3870_v5 = vmax.f32 %v9145_v15, %v3821_v3  ;;  %v3823_v6 = vpop.f32.mrb[43].mxu1  ;;  %4194 = vmatprep.subr.bf16.mxu1 %v8117_v8 }
 0x499   : > { %v3871_v7 = vmax.f32 %v9147_v23, %v3823_v6 }
 0x49a   : > { %v9223_v46 = vpack.c.bf16 %v3870_v5, %v3868_v62  ;;  %v7922_v62 = vld [vmem:[%s9985_s7 + $0x4] ss:$8 sps:$4 sm:$0xff]  }
 0x49b   : > { %v3891_v9 = vpack.c.bf16 %v3871_v7, %v3869_v2  ;;  %4195 = vmatpush1.bf16.msra.mxu1 %v7897_v4 }
 0x49c   : > { %4196 = vmatprep.subr.bf16.mxu1 %v8117_v8 }
 0x49d   : > { %v3827_v59 = vpop.f32.mrb[44].mxu1  ;;  %6891 = vmatprep.mubr.msk.bf16.mxu1 %vm3982_vm2, %v3891_v9 }
 0x49e   : > { %v3872_v15 = vmax.f32 %v9149_v24, %v3827_v59  ;;  %v3829_v60 = vpop.f32.mrb[45].mxu1  ;;  %4065 = vmatmul.mubr.bf16.gmra.mrb[68].mxu1 %v9223_v46 }
 0x49f   : > { %v3873_v23 = vmax.f32 %v9151_v25, %v3829_v60  ;;  %v3831_v10 = vpop.f32.mrb[46].mxu1  ;;  %4197 = vmatpush1.bf16.msra.mxu1 %v7898_v12  ;;  %v7900_v25 = vld [vmem:[%s9984_s6 + $0x40] sm:$0xff]  }
 0x4a0   : > { %v3874_v29 = vmax.f32 %v9153_v26, %v3831_v10  ;;  %v3833_v30 = vpop.f32.mrb[47].mxu1  ;;  %4198 = vmatprep.subr.bf16.mxu1 %v8117_v8 }
 0x4a1   : > { %v3875_v47 = vmax.f32 %v9155_v27, %v3833_v30  ;;  %v7901_v27 = vld [vmem:[%s9984_s6 + $0x48] sm:$0xff]  }
 0x4a2   : > { %v3892_v0 = vpack.c.bf16 %v3874_v29, %v3872_v15 }
 0x4a3   : > { %v3893_v24 = vpack.c.bf16 %v3875_v47, %v3873_v23  ;;  %4199 = vmatpush1.bf16.msra.mxu1 %v7899_v11 }
 0x4a4   : > { %4200 = vmatprep.subr.bf16.mxu1 %v8117_v8 }
 0x4a5   : > { %v3837_v21 = vpop.f32.mrb[48].mxu1  ;;  %6892 = vmatprep.mubr.msk.bf16.mxu1 %vm3982_vm2, %v3893_v24 }
 0x4a6   : > { %v3876_v22 = vmax.f32 %v9157_v28, %v3837_v21  ;;  %v3839_v26 = vpop.f32.mrb[49].mxu1  ;;  %4073 = vmatmul.mubr.bf16.gmra.mrb[72].mxu1 %v3892_v0 }
 0x4a7   : > { %v3877_v39 = vmax.f32 %v9159_v32, %v3839_v26  ;;  %v3841_v40 = vpop.f32.mrb[50].mxu1  ;;  %4201 = vmatpush1.bf16.msra.mxu1 %v7900_v25  ;;  %v4182_v32 = vsel %vm4004_vm1, %v7902_v19, 0 }
 0x4a8   : > { %v3878_v57 = vmax.f32 %v9161_v17, %v3841_v40  ;;  %v3843_v58 = vpop.f32.mrb[51].mxu1  ;;  %4202 = vmatprep.subr.bf16.mxu1 %v8117_v8 }
 0x4a9   : > { %v3879_v28 = vmax.f32 %v9163_v18, %v3843_v58 }
 0x4aa   : > { %v3894_v20 = vpack.c.bf16 %v3878_v57, %v3876_v22 }
 0x4ab   : > { %v3895_v35 = vpack.c.bf16 %v3879_v28, %v3877_v39  ;;  %4203 = vmatpush1.bf16.msra.mxu1 %v7901_v27 }
 0x4ac   : > { %4204 = vmatprep.subr.bf16.mxu1 %v8117_v8 }
 0x4ad   : > { %v3847_v38 = vpop.f32.mrb[52].mxu1  ;;  %6893 = vmatprep.mubr.msk.bf16.mxu1 %vm3982_vm2, %v3895_v35 }
 0x4ae   : > { %v3880_v17 = vmax.f32 %v9165_v34, %v3847_v38  ;;  %v3849_v41 = vpop.f32.mrb[53].mxu1  ;;  %4081 = vmatmul.mubr.bf16.gmra.mrb[76].mxu1 %v3894_v20  ;;  %v7903_v34 = vld [vmem:[%s9985_s7 + $0x58] ss:$8 sps:$4 sm:$0xff]  }
 0x4af   : > { %v3881_v42 = vmax.f32 %v9167_v31, %v3849_v41  ;;  %v3851_v43 = vpop.f32.mrb[54].mxu1  ;;  %4205 = vmatpush1.bf16.msra.mxu1 %v4182_v32  ;;  %v7905_v31 = vld [vmem:[%s9985_s7 + $0x5c] ss:$8 sps:$4 sm:$0xff]  }
 0x4b0   : > { %v3882_v18 = vmax.f32 %v9169_v33, %v3851_v43  ;;  %v3853_v44 = vpop.f32.mrb[55].mxu1  ;;  %4413 = vmatprep.subr.bf16.mxu1 %v7905_v31  ;;  %v7906_v33 = vld [vmem:[%s9985_s7 + $0x68] ss:$8 sps:$4 sm:$0xff]   ;;  %v7925_v31 = vld [vmem:[%s9985_s7 + $0x14] ss:$8 sps:$4 sm:$0xff]  }
 0x4b1   : > { %v3883_v49 = vmax.f32 %v9171_v45, %v3853_v44  ;;  %v7908_v45 = vld [vmem:[%s9985_s7 + $0x6c] ss:$8 sps:$4 sm:$0xff]  }
 0x4b2   : > { %v3896_v50 = vpack.c.bf16 %v3882_v18, %v3880_v17 }
 0x4b3   : > { %v3897_v51 = vpack.c.bf16 %v3883_v49, %v3881_v42 }
 0x4b5   : > { %6894 = vmatprep.mubr.msk.bf16.mxu1 %vm3982_vm2, %v3897_v51 }
 0x4b6   : > { %4089 = vmatmul.mubr.bf16.gmra.mrb[80].mxu1 %v3896_v50 }
 0x4b7   : > { %6906 = vmatprep.mubr.msk.bf16.mxu1 %vm3982_vm2, %v9175_v63  ;;  %v7911_v63 = vld [vmem:[%s9985_s7 + $0x7c] ss:$8 sps:$4 sm:$0xff]  }
 0x4be   : > { %4217 = vmatmul.mubr.bf16.vlgmr.msra.gmra.mrb[84].mxu1 %v9173_v48  ;;  %v7909_v48 = vld [vmem:[%s9985_s7 + $0x78] ss:$8 sps:$4 sm:$0xff]  }
 0x4bf   : > { %6907 = vmatprep.mubr.msk.bf16.mxu1 %vm3982_vm2, %v9189_v37  ;;  %4414 = vmatpush1.bf16.msra.mxu1 %v7903_v34  ;;  %v7914_v37 = vld [vmem:[%s9985_s7 + $0x8c] ss:$8 sps:$4 sm:$0xff]  }
 0x4c0   : > { %4415 = vmatprep.subr.bf16.mxu1 %v7908_v45 }
 0x4c3   : > { %4416 = vmatpush1.bf16.msra.mxu1 %v7906_v33 }
 0x4c4   : > { %4417 = vmatprep.subr.bf16.mxu1 %v7911_v63 }
 0x4c6   : > { %4225 = vmatmul.mubr.bf16.gmra.mrb[88].mxu1 %v9187_v36  ;;  %v7912_v36 = vld [vmem:[%s9985_s7 + $0x88] ss:$8 sps:$4 sm:$0xff]  }
 0x4c7   : > { %6908 = vmatprep.mubr.msk.bf16.mxu1 %vm3982_vm2, %v9206_v55  ;;  %4418 = vmatpush1.bf16.msra.mxu1 %v7909_v48 }
 0x4c8   : > { %4419 = vmatprep.subr.bf16.mxu1 %v7914_v37 }
 0x4cb   : > { %4420 = vmatpush1.bf16.msra.mxu1 %v7912_v36 }
 0x4cc   : > { %4421 = vmatprep.subr.bf16.mxu1 %v7917_v53  ;;  %v7928_v53 = vld [vmem:[%s9985_s7 + $0x24] ss:$8 sps:$4 sm:$0xff]  }
 0x4ce   : > { %4233 = vmatmul.mubr.bf16.gmra.mrb[92].mxu1 %v9204_v54  ;;  %v6923_v54 = vld [vmem:[%s9985_s7 + $0xa8] sm:$0x33] }
 0x4cf   : > { %6909 = vmatprep.mubr.msk.bf16.mxu1 %vm3982_vm2, %v3891_v9  ;;  %4422 = vmatpush1.bf16.msra.mxu1 %v7915_v52  ;;  %v6935_v55 = vcombine.high %v6923_v54, %v6923_v54  ;;  %v6934_v56 = vcombine.low %v6923_v54, %v6923_v54  ;;  %v7923_v52 = vld [vmem:[%s9985_s7 + $0x10] ss:$8 sps:$4 sm:$0xff]  }
 0x4d1   : > { %6936 = vmatprep.subr.msk.bf16.mxu1 %vm4406_vm3, %v6935_v55  ;;  %v4408_v61 = vsel %vm4406_vm3, %v6934_v56, 0  ;;  %v7926_v56 = vld [vmem:[%s9985_s7 + $0x20] ss:$8 sps:$4 sm:$0xff]  }
 0x4d3   : > { %4424 = vmatpush1.bf16.msra.mxu1 %v4408_v61 }
 0x4d4   : > { %4572 = vmatprep.subr.bf16.mxu1 %v7922_v62  ;;  %v7931_v62 = vld [vmem:[%s9985_s7 + $0x34] ss:$8 sps:$4 sm:$0xff]  }
 0x4d6   : > { %4241 = vmatmul.mubr.bf16.gmra.mrb[96].mxu1 %v9223_v46 }
 0x4d7   : > { %6910 = vmatprep.mubr.msk.bf16.mxu1 %vm3982_vm2, %v3893_v24 }
 0x4de   : > { %4249 = vmatmul.mubr.bf16.gmra.mrb[100].mxu1 %v3892_v0 }
 0x4df   : > { %6911 = vmatprep.mubr.msk.bf16.mxu1 %vm3982_vm2, %v3895_v35 }
 0x4e6   : > { %4257 = vmatmul.mubr.bf16.gmra.mrb[104].mxu1 %v3894_v20 }
 0x4e7   : > { %6912 = vmatprep.mubr.msk.bf16.mxu1 %vm3982_vm2, %v3897_v51  ;;  %v7920_v51 = vld [vmem:[%s9985_s7] ss:$8 sps:$4 sm:$0xff]  }
 0x4ee   : > { %4265 = vmatmul.mubr.bf16.gmra.mrb[108].mxu1 %v3896_v50 }
 0x4ef   : > { %4445 = vmatprep.mubr.bf16.mxu1 %v8117_v8 }
 0x559   : > { %v4042_v1 = vpop.f32.mrb[56].mxu1 }
 0x55a   : > { %v4044_v2 = vpop.f32.mrb[57].mxu1 }
 0x55b   : > { %v4045_v3 = vpop.f32.mrb[58].mxu1 }
 0x55c   : > { %v4047_v4 = vpop.f32.mrb[59].mxu1 }
 0x561   : > { %v4050_v5 = vpop.f32.mrb[60].mxu1 }
 0x562   : > { %v4052_v6 = vpop.f32.mrb[61].mxu1 }
 0x563   : > { %v4053_v7 = vpop.f32.mrb[62].mxu1 }
 0x564   : > { %v4055_v46 = vpop.f32.mrb[63].mxu1 }
 0x565   : > { %v7934_v46 = vld [vmem:[%s9985_s7 + $0x44] ss:$8 sps:$4 sm:$0xff]  }
 0x569   : > { %v4058_v9 = vpop.f32.mrb[64].mxu1 }
 0x56a   : > { %v4060_v12 = vpop.f32.mrb[65].mxu1 }
 0x56b   : > { %v4061_v59 = vpop.f32.mrb[66].mxu1  ;;  %v4304_v12 = vld [vmem:[%s9985_s7 + $0x50] sm:$0x33] }
 0x56c   : > { %v4063_v15 = vpop.f32.mrb[67].mxu1 }
 0x56d   : > { %v7932_v15 = vld [vmem:[%s9985_s7 + $0x40] ss:$8 sps:$4 sm:$0xff]  }
 0x571   : > { %v9316_v60 = vpop.f32.mrb[68].mxu1 }
 0x572   : > { %v4068_v23 = vpop.f32.mrb[69].mxu1 }
 0x573   : > { %v9318_v10 = vpop.f32.mrb[70].mxu1  ;;  %v6953_v23 = vcombine.high %v4304_v12, %v4304_v12 }
 0x574   : > { %v4071_v11 = vpop.f32.mrb[71].mxu1 }
 0x579   : > { %v9320_v29 = vpop.f32.mrb[72].mxu1 }
 0x57a   : > { %v4076_v30 = vpop.f32.mrb[73].mxu1 }
 0x57b   : > { %v9322_v47 = vpop.f32.mrb[74].mxu1 }
 0x57c   : > { %v4079_v0 = vpop.f32.mrb[75].mxu1 }
 0x581   : > { %v9324_v24 = vpop.f32.mrb[76].mxu1 }
 0x582   : > { %v4084_v25 = vpop.f32.mrb[77].mxu1 }
 0x583   : > { %v9326_v21 = vpop.f32.mrb[78].mxu1 }
 0x584   : > { %v4087_v22 = vpop.f32.mrb[79].mxu1 }
 0x589   : > { %v9328_v26 = vpop.f32.mrb[80].mxu1 }
 0x58a   : > { %v4092_v39 = vpop.f32.mrb[81].mxu1 }
 0x58b   : > { %v9330_v40 = vpop.f32.mrb[82].mxu1 }
 0x58c   : > { %v4095_v27 = vpop.f32.mrb[83].mxu1 }
 0x591   : > { %v4218_v57 = vpop.f32.mrb[84].mxu1 }
 0x592   : > { %v4273_v58 = vmax.f32 %v4042_v1, %v4218_v57  ;;  %v4220_v19 = vpop.f32.mrb[85].mxu1 }
 0x593   : > { %v4221_v28 = vpop.f32.mrb[86].mxu1 }
 0x594   : > { %v4274_v20 = vmax.f32 %v4045_v3, %v4221_v28  ;;  %v4223_v35 = vpop.f32.mrb[87].mxu1 }
 0x596   : > { %v9332_v32 = vpack.c.bf16 %v4274_v20, %v4273_v58 }
 0x598   : > { %v4324_v49 = vrot.slane %v9332_v32, 4 }
 0x599   : > { %v4226_v38 = vpop.f32.mrb[88].mxu1 }
 0x59a   : > { %v4275_v17 = vmax.f32 %v4050_v5, %v4226_v38  ;;  %v4228_v41 = vpop.f32.mrb[89].mxu1 }
 0x59b   : > { %v4229_v42 = vpop.f32.mrb[90].mxu1 }
 0x59c   : > { %v4276_v43 = vmax.f32 %v4053_v7, %v4229_v42  ;;  %v4231_v18 = vpop.f32.mrb[91].mxu1  ;;  %v7929_v7 = vld [vmem:[%s9985_s7 + $0x30] ss:$8 sps:$4 sm:$0xff]  }
 0x59e   : > { %v9334_v44 = vpack.c.bf16 %v4276_v43, %v4275_v17 }
 0x5a0   : > { %v4325_v50 = vrot.slane %v9334_v44, 4 }
 0x5a1   : > { %v4234_v34 = vpop.f32.mrb[92].mxu1 }
 0x5a2   : > { %v4277_v33 = vmax.f32 %v4058_v9, %v4234_v34  ;;  %v4236_v45 = vpop.f32.mrb[93].mxu1  ;;  %v4326_v48 = vsel %vm4004_vm1, %v4324_v49, %v4325_v50 }
 0x5a3   : > { %v4237_v63 = vpop.f32.mrb[94].mxu1  ;;  %6937 = vmatmul.mubr.msk.bf16.vlgmr.msra.gmra.mrb[112].mxu1 %vm4390_vm4, %v4326_v48  ;;  %v7945_v48 = vld [vmem:[%s9985_s7 + $0xd4] ss:$8 sps:$4 sm:$0xff]  }
 0x5a4   : > { %v4278_v36 = vmax.f32 %v4061_v59, %v4237_v63  ;;  %v4239_v37 = vpop.f32.mrb[95].mxu1  ;;  %4573 = vmatpush1.bf16.msra.mxu1 %v7920_v51  ;;  %4455 = vmatprep.mubr.bf16.mxu1 %v8117_v8  ;;  %v7943_v63 = vld [vmem:[%s9985_s7 + $0xd0] ss:$8 sps:$4 sm:$0xff]  }
 0x5a5   : > { %4574 = vmatprep.subr.bf16.mxu1 %v7925_v31  ;;  %v7951_v37 = vld [vmem:[%s9985_s7 + $0xf4] ss:$8 sps:$4 sm:$0xff]  }
 0x5a6   : > { %v9353_v54 = vpack.c.bf16 %v4278_v36, %v4277_v33  ;;  %v7942_v33 = vld [vmem:[%s9985_s7 + $0xc4] ss:$8 sps:$4 sm:$0xff]   ;;  %v7946_v36 = vld [vmem:[%s9985_s7 + $0xe0] ss:$8 sps:$4 sm:$0xff]  }
 0x5a8   : > { %v4327_v55 = vrot.slane %v9353_v54, 4  ;;  %4575 = vmatpush1.bf16.msra.mxu1 %v7923_v52  ;;  %v6970_v52 = vld [vmem:[%s9985_s7 + $0x100] sm:$0x33] }
 0x5a9   : > { %v4242_v61 = vpop.f32.mrb[96].mxu1  ;;  %4576 = vmatprep.subr.bf16.mxu1 %v7928_v53  ;;  %v7949_v53 = vld [vmem:[%s9985_s7 + $0xf0] ss:$8 sps:$4 sm:$0xff]  }
 0x5aa   : > { %v4279_v1 = vmax.f32 %v9316_v60, %v4242_v61  ;;  %v4244_v2 = vpop.f32.mrb[97].mxu1  ;;  %v9364_v3 = vsel %vm4004_vm1, %v4325_v50, %v4327_v55 }
 0x5ab   : > { %v4245_v4 = vpop.f32.mrb[98].mxu1  ;;  %6938 = vmatmul.mubr.msk.bf16.gmra.mrb[116].mxu1 %vm4390_vm4, %v9364_v3  ;;  %v7959_v2 = vld [vmem:[%s9985_s7 + $0x11c] ss:$8 sps:$4 sm:$0xff]  }
 0x5ac   : > { %v4280_v5 = vmax.f32 %v9318_v10, %v4245_v4  ;;  %v4247_v6 = vpop.f32.mrb[99].mxu1  ;;  %4465 = vmatprep.mubr.bf16.mxu1 %v8117_v8  ;;  %4577 = vmatpush1.bf16.msra.mxu1 %v7926_v56  ;;  %v6952_v10 = vcombine.low %v4304_v12, %v4304_v12  ;;  %v6981_v56 = vcombine.low %v6970_v52, %v6970_v52  ;;  %v7957_v4 = vld [vmem:[%s9985_s7 + $0x118] ss:$8 sps:$4 sm:$0xff]  }
 0x5ad   : > { %4578 = vmatprep.subr.bf16.mxu1 %v7931_v62  ;;  %v7956_v62 = vld [vmem:[%s9985_s7 + $0x10c] ss:$8 sps:$4 sm:$0xff]   ;;  %v7960_v6 = vld [vmem:[%s9985_s7 + $0x128] ss:$8 sps:$4 sm:$0xff]   ;;  %v6999_v12 = vld [vmem:[%s9985_s7 + $0x158] sm:$0x33] }
 0x5ae   : > { %v9376_v9 = vpack.c.bf16 %v4280_v5, %v4279_v1  ;;  %v4567_v27 = vsel %vm4406_vm3, %v6952_v10, 0  ;;  %v4726_v61 = vsel %vm4406_vm3, %v6981_v56, 0  ;;  %v7954_v1 = vld [vmem:[%s9985_s7 + $0x108] ss:$8 sps:$4 sm:$0xff]   ;;  %v7962_v5 = vld [vmem:[%s9985_s7 + $0x12c] ss:$8 sps:$4 sm:$0xff]  }
 0x5af   : > { %v7973_v10 = vld [vmem:[%s9985_s7 + $0x164] ss:$8 sps:$4 sm:$0xff]  }
 0x5b0   : > { %v4329_v59 = vrot.slane %v9376_v9, 4  ;;  %4579 = vmatpush1.bf16.msra.mxu1 %v7929_v7  ;;  %v7963_v7 = vld [vmem:[%s9985_s7 + $0x138] ss:$8 sps:$4 sm:$0xff]  }
 0x5b1   : > { %v4250_v60 = vpop.f32.mrb[100].mxu1  ;;  %4580 = vmatprep.subr.bf16.mxu1 %v7934_v46  ;;  %v7968_v46 = vld [vmem:[%s9985_s7 + $0x14c] ss:$8 sps:$4 sm:$0xff]  }
 0x5b2   : > { %v4281_v11 = vmax.f32 %v9320_v29, %v4250_v60  ;;  %v4252_v30 = vpop.f32.mrb[101].mxu1  ;;  %v9387_v0 = vsel %vm4004_vm1, %v4327_v55, %v4329_v59  ;;  %v7939_v29 = vld [vmem:[%s9985_s7 + $0xb4] ss:$8 sps:$4 sm:$0xff]   ;;  %v6982_v55 = vcombine.high %v6970_v52, %v6970_v52  ;;  %v7010_v60 = vcombine.low %v6999_v12, %v6999_v12 }
 0x5b3   : > { %v4253_v25 = vpop.f32.mrb[102].mxu1  ;;  %6939 = vmatmul.mubr.msk.bf16.gmra.mrb[120].mxu1 %vm4390_vm4, %v9387_v0  ;;  %v7976_v30 = vld [vmem:[%s9985_s7 + $0x174] ss:$8 sps:$4 sm:$0xff]  }
 0x5b4   : > { %v4282_v22 = vmax.f32 %v9322_v47, %v4253_v25  ;;  %v4255_v39 = vpop.f32.mrb[103].mxu1  ;;  %4475 = vmatprep.mubr.bf16.mxu1 %v8117_v8  ;;  %4581 = vmatpush1.bf16.msra.mxu1 %v7932_v15  ;;  %v7011_v15 = vcombine.high %v6999_v12, %v6999_v12  ;;  %v7974_v25 = vld [vmem:[%s9985_s7 + $0x170] ss:$8 sps:$4 sm:$0xff]  }
 0x5b5   : > { %6954 = vmatprep.subr.msk.bf16.mxu1 %vm4406_vm3, %v6953_v23  ;;  %v4908_v23 = vsel %vm4406_vm3, %v7010_v60, 0  ;;  %v7977_v39 = vld [vmem:[%s9985_s7 + $0x180] ss:$8 sps:$4 sm:$0xff]  }
 0x5b6   : > { %v9398_v57 = vpack.c.bf16 %v4282_v22, %v4281_v11  ;;  %v7971_v11 = vld [vmem:[%s9985_s7 + $0x160] ss:$8 sps:$4 sm:$0xff]   ;;  %v7979_v22 = vld [vmem:[%s9985_s7 + $0x184] ss:$8 sps:$4 sm:$0xff]  }
 0x5b8   : > { %v4331_v58 = vrot.slane %v9398_v57, 4  ;;  %4583 = vmatpush1.bf16.msra.mxu1 %v4567_v27  ;;  %v7980_v27 = vld [vmem:[%s9985_s7 + $0x190] ss:$8 sps:$4 sm:$0xff]  }
 0x5b9   : > { %v4258_v19 = vpop.f32.mrb[104].mxu1  ;;  %4731 = vmatprep.subr.bf16.mxu1 %v7939_v29  ;;  %v7985_v29 = vld [vmem:[%s9985_s7 + $0x1a4] ss:$8 sps:$4 sm:$0xff]  }
 0x5ba   : > { %v4283_v47 = vmax.f32 %v9324_v24, %v4258_v19  ;;  %v4260_v28 = vpop.f32.mrb[105].mxu1  ;;  %v9403_v20 = vsel %vm4004_vm1, %v4329_v59, %v4331_v58  ;;  %v7966_v59 = vld [vmem:[%s9985_s7 + $0x148] ss:$8 sps:$4 sm:$0xff]  }
 0x5bb   : > { %v4261_v35 = vpop.f32.mrb[106].mxu1  ;;  %6940 = vmatmul.mubr.msk.bf16.gmra.mrb[124].mxu1 %vm4390_vm4, %v9403_v20 }
 0x5bc   : > { %v4284_v38 = vmax.f32 %v9326_v21, %v4261_v35  ;;  %v4263_v17 = vpop.f32.mrb[107].mxu1  ;;  %4485 = vmatprep.mubr.bf16.mxu1 %v8117_v8  ;;  %v7998_v35 = vld [vmem:[%s9990_s12 + $0x20] sm:$0xff]  }
 0x5bd   : > { %v8001_v17 = vld [vmem:[%s9990_s12 + $0x30] sm:$0xff]  }
 0x5be   : > { %v9409_v41 = vpack.c.bf16 %v4284_v38, %v4283_v47  ;;  %v7999_v38 = vld [vmem:[%s9990_s12 + $0x28] sm:$0xff]  }
 0x5c0   : > { %v4333_v42 = vrot.slane %v9409_v41, 4 }
 0x5c1   : > { %v4266_v43 = vpop.f32.mrb[108].mxu1 }
 0x5c2   : > { %v4285_v24 = vmax.f32 %v9328_v26, %v4266_v43  ;;  %v4268_v18 = vpop.f32.mrb[109].mxu1  ;;  %v9414_v49 = vsel %vm4004_vm1, %v4331_v58, %v4333_v42  ;;  %v7937_v26 = vld [vmem:[%s9985_s7 + $0xb0] ss:$8 sps:$4 sm:$0xff]  }
 0x5c3   : > { %v4269_v50 = vpop.f32.mrb[110].mxu1  ;;  %6941 = vmatmul.mubr.msk.bf16.gmra.mrb[128].mxu1 %vm4390_vm4, %v9414_v49  ;;  %v7028_v58 = vld [vmem:[%s9985_s7 + $0x1b0] sm:$0x33] }
 0x5c4   : > { %v4286_v21 = vmax.f32 %v9330_v40, %v4269_v50  ;;  %v4271_v51 = vpop.f32.mrb[111].mxu1  ;;  %4604 = vmatprep.mubr.bf16.mxu1 %v8117_v8  ;;  %v7940_v40 = vld [vmem:[%s9985_s7 + $0xc0] ss:$8 sps:$4 sm:$0xff]   ;;  %v7040_v19 = vcombine.high %v7028_v58, %v7028_v58  ;;  %v7039_v47 = vcombine.low %v7028_v58, %v7028_v58 }
 0x5c6   : > { %v9420_v34 = vpack.c.bf16 %v4286_v21, %v4285_v24  ;;  %v5087_v28 = vsel %vm4406_vm3, %v7039_v47, 0 }
 0x5c8   : > { %v4847_v31 = vrot.slane %v9420_v34, 4 }
 0x5ca   : > { %v9430_v45 = vsel %vm4004_vm1, %v4333_v42, %v4847_v31 }
 0x5cb   : > { %6955 = vmatmul.mubr.msk.bf16.vlgmr.msra.gmra.mrb[112].mxu1 %vm4390_vm4, %v9332_v32  ;;  %v7948_v32 = vld [vmem:[%s9985_s7 + $0xe4] ss:$8 sps:$4 sm:$0xff]  }
 0x5cc   : > { %4732 = vmatpush1.bf16.msra.mxu1 %v7937_v26  ;;  %4614 = vmatprep.mubr.bf16.mxu1 %v8117_v8 }
 0x5cd   : > { %4733 = vmatprep.subr.bf16.mxu1 %v7942_v33 }
 0x5d0   : > { %4734 = vmatpush1.bf16.msra.mxu1 %v7940_v40 }
 0x5d1   : > { %4735 = vmatprep.subr.bf16.mxu1 %v7945_v48 }
 0x5d3   : > { %6956 = vmatmul.mubr.msk.bf16.gmra.mrb[116].mxu1 %vm4390_vm4, %v9334_v44 }
 0x5d4   : > { %4624 = vmatprep.mubr.bf16.mxu1 %v8117_v8  ;;  %4736 = vmatpush1.bf16.msra.mxu1 %v7943_v63 }
 0x5d5   : > { %4737 = vmatprep.subr.bf16.mxu1 %v7948_v32 }
 0x5d8   : > { %4738 = vmatpush1.bf16.msra.mxu1 %v7946_v36 }
 0x5d9   : > { %4739 = vmatprep.subr.bf16.mxu1 %v7951_v37 }
 0x5db   : > { %6957 = vmatmul.mubr.msk.bf16.gmra.mrb[120].mxu1 %vm4390_vm4, %v9353_v54 }
 0x5dc   : > { %4634 = vmatprep.mubr.bf16.mxu1 %v8117_v8  ;;  %4740 = vmatpush1.bf16.msra.mxu1 %v7949_v53 }
 0x5dd   : > { %6983 = vmatprep.subr.msk.bf16.mxu1 %vm4406_vm3, %v6982_v55 }
 0x5e0   : > { %4742 = vmatpush1.bf16.msra.mxu1 %v4726_v61 }
 0x5e1   : > { %4913 = vmatprep.subr.bf16.mxu1 %v7956_v62 }
 0x5e3   : > { %6958 = vmatmul.mubr.msk.bf16.gmra.mrb[124].mxu1 %vm4390_vm4, %v9376_v9 }
 0x5e4   : > { %4644 = vmatprep.mubr.bf16.mxu1 %v8117_v8 }
 0x5eb   : > { %6959 = vmatmul.mubr.msk.bf16.gmra.mrb[128].mxu1 %vm4390_vm4, %v9398_v57 }
 0x5ec   : > { %4763 = vmatprep.mubr.bf16.mxu1 %v8117_v8 }
 0x5f3   : > { %6984 = vmatmul.mubr.msk.bf16.vlgmr.msra.gmra.mrb[112].mxu1 %vm4390_vm4, %v9334_v44  ;;  %v7965_v44 = vld [vmem:[%s9985_s7 + $0x13c] ss:$8 sps:$4 sm:$0xff]  }
 0x5f4   : > { %4914 = vmatpush1.bf16.msra.mxu1 %v7954_v1  ;;  %4773 = vmatprep.mubr.bf16.mxu1 %v8117_v8 }
 0x5f5   : > { %4915 = vmatprep.subr.bf16.mxu1 %v7959_v2 }
 0x5f8   : > { %4916 = vmatpush1.bf16.msra.mxu1 %v7957_v4 }
 0x5f9   : > { %4917 = vmatprep.subr.bf16.mxu1 %v7962_v5 }
 0x5fb   : > { %6985 = vmatmul.mubr.msk.bf16.gmra.mrb[116].mxu1 %vm4390_vm4, %v9353_v54 }
 0x5fc   : > { %4783 = vmatprep.mubr.bf16.mxu1 %v8117_v8  ;;  %4918 = vmatpush1.bf16.msra.mxu1 %v7960_v6 }
 0x5fd   : > { %4919 = vmatprep.subr.bf16.mxu1 %v7965_v44 }
 0x600   : > { %4920 = vmatpush1.bf16.msra.mxu1 %v7963_v7 }
 0x601   : > { %4921 = vmatprep.subr.bf16.mxu1 %v7968_v46 }
 0x603   : > { %6986 = vmatmul.mubr.msk.bf16.gmra.mrb[120].mxu1 %vm4390_vm4, %v9376_v9 }
 0x604   : > { %4793 = vmatprep.mubr.bf16.mxu1 %v8117_v8  ;;  %4922 = vmatpush1.bf16.msra.mxu1 %v7966_v59 }
 0x605   : > { %7012 = vmatprep.subr.msk.bf16.mxu1 %vm4406_vm3, %v7011_v15 }
 0x608   : > { %4924 = vmatpush1.bf16.msra.mxu1 %v4908_v23 }
 0x609   : > { %5092 = vmatprep.subr.bf16.mxu1 %v7973_v10 }
 0x60b   : > { %6987 = vmatmul.mubr.msk.bf16.gmra.mrb[124].mxu1 %vm4390_vm4, %v9398_v57 }
 0x60c   : > { %4803 = vmatprep.mubr.bf16.mxu1 %v8117_v8 }
 0x613   : > { %6988 = vmatmul.mubr.msk.bf16.gmra.mrb[128].mxu1 %vm4390_vm4, %v9409_v41 }
 0x614   : > { %4945 = vmatprep.mubr.bf16.mxu1 %v8117_v8 }
 0x61b   : > { %7013 = vmatmul.mubr.msk.bf16.vlgmr.msra.gmra.mrb[112].mxu1 %vm4390_vm4, %v9364_v3  ;;  %v7982_v3 = vld [vmem:[%s9985_s7 + $0x194] ss:$8 sps:$4 sm:$0xff]  }
 0x61c   : > { %5093 = vmatpush1.bf16.msra.mxu1 %v7971_v11  ;;  %4955 = vmatprep.mubr.bf16.mxu1 %v8117_v8 }
 0x61d   : > { %5094 = vmatprep.subr.bf16.mxu1 %v7976_v30 }
 0x620   : > { %5095 = vmatpush1.bf16.msra.mxu1 %v7974_v25 }
 0x621   : > { %5096 = vmatprep.subr.bf16.mxu1 %v7979_v22 }
 0x623   : > { %7014 = vmatmul.mubr.msk.bf16.gmra.mrb[116].mxu1 %vm4390_vm4, %v9387_v0  ;;  %v7983_v0 = vld [vmem:[%s9985_s7 + $0x1a0] ss:$8 sps:$4 sm:$0xff]  }
 0x624   : > { %4965 = vmatprep.mubr.bf16.mxu1 %v8117_v8  ;;  %5097 = vmatpush1.bf16.msra.mxu1 %v7977_v39 }
 0x625   : > { %5098 = vmatprep.subr.bf16.mxu1 %v7982_v3 }
 0x628   : > { %5099 = vmatpush1.bf16.msra.mxu1 %v7980_v27 }
 0x629   : > { %5100 = vmatprep.subr.bf16.mxu1 %v7985_v29 }
 0x62b   : > { %7015 = vmatmul.mubr.msk.bf16.gmra.mrb[120].mxu1 %vm4390_vm4, %v9403_v20  ;;  %v7997_v20 = vld [vmem:[%s9990_s12 + $0x18] sm:$0xff]  }
 0x62c   : > { %4975 = vmatprep.mubr.bf16.mxu1 %v8117_v8  ;;  %5101 = vmatpush1.bf16.msra.mxu1 %v7983_v0 }
 0x62d   : > { %7041 = vmatprep.subr.msk.bf16.mxu1 %vm4406_vm3, %v7040_v19 }
 0x630   : > { %5103 = vmatpush1.bf16.msra.mxu1 %v5087_v28 }
 0x633   : > { %7016 = vmatmul.mubr.msk.bf16.gmra.mrb[124].mxu1 %vm4390_vm4, %v9414_v49 }
 0x634   : > { %4985 = vmatprep.mubr.bf16.mxu1 %v8117_v8 }
 0x63b   : > { %7017 = vmatmul.mubr.msk.bf16.gmra.mrb[128].mxu1 %vm4390_vm4, %v9430_v45 }
 0x63c   : > { %5124 = vmatprep.mubr.bf16.mxu1 %v8117_v8 }
 0x643   : > { %7042 = vmatmul.mubr.msk.bf16.vlgmr.msra.gmra.mrb[112].mxu1 %vm4390_vm4, %v9353_v54  ;;  %v7994_v54 = vld [vmem:[%s9990_s12] sm:$0xff]  }
 0x644   : > { %5134 = vmatprep.mubr.bf16.mxu1 %v8117_v8  ;;  %5677 = vmatpush1.bf16.msra.mxu0 %v7994_v54 }
 0x645   : > { %5678 = vmatprep.subr.bf16.mxu0 %v8117_v8 }
 0x64b   : > { %7043 = vmatmul.mubr.msk.bf16.gmra.mrb[116].mxu1 %vm4390_vm4, %v9376_v9  ;;  %v7995_v9 = vld [vmem:[%s9990_s12 + $0x8] sm:$0xff]  }
 0x64c   : > { %5144 = vmatprep.mubr.bf16.mxu1 %v8117_v8  ;;  %5679 = vmatpush1.bf16.msra.mxu0 %v7995_v9 }
 0x64d   : > { %5680 = vmatprep.subr.bf16.mxu0 %v8117_v8 }
 0x653   : > { %7044 = vmatmul.mubr.msk.bf16.gmra.mrb[120].mxu1 %vm4390_vm4, %v9398_v57  ;;  %v7996_v57 = vld [vmem:[%s9990_s12 + $0x10] sm:$0xff]  }
 0x654   : > { %5154 = vmatprep.mubr.bf16.mxu1 %v8117_v8  ;;  %5681 = vmatpush1.bf16.msra.mxu0 %v7996_v57 }
 0x655   : > { %5682 = vmatprep.subr.bf16.mxu0 %v8117_v8 }
 0x658   : > { %5683 = vmatpush1.bf16.msra.mxu0 %v7997_v20 }
 0x659   : > { %5684 = vmatprep.subr.bf16.mxu0 %v8117_v8 }
 0x65b   : > { %7045 = vmatmul.mubr.msk.bf16.gmra.mrb[124].mxu1 %vm4390_vm4, %v9409_v41  ;;  %v5195_v41 = vld [vmem:[%s9986_s8] sm:$0x3] }
 0x65c   : > { %5164 = vmatprep.mubr.bf16.mxu1 %v8117_v8  ;;  %5685 = vmatpush1.bf16.msra.mxu0 %v7998_v35  ;;  %v9621_v42 = vrot.slane %v5195_v41, %v3306_v14  ;;  %v9625_v43 = vrot.slane %v5195_v41, %v3310_v16 }
 0x65d   : > { %5686 = vmatprep.subr.bf16.mxu0 %v8117_v8 }
 0x660   : > { %5687 = vmatpush1.bf16.msra.mxu0 %v7999_v38 }
 0x661   : > { %5688 = vmatprep.subr.bf16.mxu0 %v8117_v8 }
 0x663   : > { %7046 = vmatmul.mubr.msk.bf16.gmra.mrb[128].mxu1 %vm4390_vm4, %v9420_v34 }
 0x664   : > { %5317 = vmatprep.mubr.bf16.mxu1 %v8117_v8  ;;  %5689 = vmatpush1.bf16.msra.mxu0 %v8001_v17 }
 0x665   : > { %5690 = vmatprep.subr.bf16.mxu0 %v8117_v8 }
 0x716   : > { %v5126_v24 = vpop.f32.mrb[112].mxu1 }
 0x717   : > { %v5207_v18 = vadd.f32 %v9621_v42, %v5126_v24  ;;  %v5128_v49 = vpop.f32.mrb[113].mxu1 }
 0x718   : > { %v5208_v50 = vadd.f32 %v9625_v43, %v5128_v49  ;;  %v5130_v21 = vpop.f32.mrb[114].mxu1 }
 0x719   : > { %v5209_v51 = vadd.f32 %v9621_v42, %v5130_v21  ;;  %v5132_v34 = vpop.f32.mrb[115].mxu1  ;;  %v5227_v26 = vmax.f32 %v5207_v18, 0.0 }
 0x71a   : > { %v5210_v31 = vadd.f32 %v9625_v43, %v5132_v34  ;;  %v5228_v14 = vmax.f32 %v5208_v50, 0.0 }
 0x71b   : > { %v5229_v33 = vmax.f32 %v5209_v51, 0.0 }
 0x71c   : > { %v5230_v45 = vmax.f32 %v5210_v31, 0.0 }
 0x71d   : > { %v9631_v40 = vpack.c.bf16 %v5229_v33, %v5227_v26  ;;  %v7988_v33 = vld [vmem:[%s9987_s9] sm:$0xff]  }
 0x71e   : > { %v9633_v13 = vpack.c.bf16 %v5230_v45, %v5228_v14  ;;  %v5136_v16 = vpop.f32.mrb[116].mxu1  ;;  %v7991_v14 = vld [vmem:[%s9988_s10] sm:$0xff]  }
 0x71f   : > { %v5211_v48 = vadd.f32 %v9621_v42, %v5136_v16  ;;  %v5138_v63 = vpop.f32.mrb[117].mxu1  ;;  %v8000_v45 = vld [vmem:[%s9989_s11] sm:$0xff]   ;;  %v7993_v16 = vld [vmem:[%s9988_s10 + $0x10] ss:$0 sps:$4 sm:$0xff]  }
 0x720   : > { %v5212_v32 = vadd.f32 %v9625_v43, %v5138_v63  ;;  %v5140_v36 = vpop.f32.mrb[118].mxu1  ;;  %5285 = vmatprep.subr.bf16.mxu1 %v9633_v13  ;;  %v8004_v63 = vld [vmem:[%s9990_s12 + $0x38] sm:$0xff]  }
 0x721   : > { %v5213_v37 = vadd.f32 %v9621_v42, %v5140_v36  ;;  %v5142_v52 = vpop.f32.mrb[119].mxu1  ;;  %5286 = vmatpush1.bf16.msra.mxu1 %v9631_v40  ;;  %v5231_v55 = vmax.f32 %v5211_v48, 0.0  ;;  %v8003_v48 = vld [vmem:[%s9989_s11 + $0x10] sm:$0xff]   ;;  %5691 = vmatpush1.bf16.msra.mxu0 %v8004_v63  ;;  %v8006_v36 = vld [vmem:[%s9989_s11 + $0x20] sm:$0xff]  }
 0x722   : > { %v5214_v53 = vadd.f32 %v9625_v43, %v5142_v52  ;;  %v5232_v61 = vmax.f32 %v5212_v32, 0.0  ;;  %v8005_v32 = vld [vmem:[%s9989_s11 + $0x18] sm:$0xff]   ;;  %5692 = vmatprep.subr.bf16.mxu0 %v8117_v8  ;;  %v8008_v52 = vld [vmem:[%s9990_s12 + $0x40] sm:$0xff]  }
 0x723   : > { %v5233_v56 = vmax.f32 %v5213_v37, 0.0  ;;  %v8007_v37 = vld [vmem:[%s9989_s11 + $0x28] sm:$0xff]  }
 0x724   : > { %v5234_v62 = vmax.f32 %v5214_v53, 0.0  ;;  %v8009_v53 = vld [vmem:[%s9989_s11 + $0x30] sm:$0xff]  }
 0x725   : > { %v5249_v1 = vpack.c.bf16 %v5233_v56, %v5231_v55  ;;  %5693 = vmatpush1.bf16.msra.mxu0 %v8008_v52  ;;  %v8010_v55 = vld [vmem:[%s9989_s11 + $0x38] sm:$0xff]   ;;  %v8011_v56 = vld [vmem:[%s9989_s11 + $0x40] sm:$0xff]  }
 0x726   : > { %v5250_v2 = vpack.c.bf16 %v5234_v62, %v5232_v61  ;;  %v5146_v4 = vpop.f32.mrb[120].mxu1  ;;  %5694 = vmatprep.subr.bf16.mxu0 %v8117_v8  ;;  %v8012_v61 = vld [vmem:[%s9990_s12 + $0x48] sm:$0xff]  }
 0x727   : > { %v5215_v5 = vadd.f32 %v9621_v42, %v5146_v4  ;;  %v5148_v6 = vpop.f32.mrb[121].mxu1  ;;  %v8013_v62 = vld [vmem:[%s9989_s11 + $0x48] sm:$0xff]  }
 0x728   : > { %v5216_v44 = vadd.f32 %v9625_v43, %v5148_v6  ;;  %v5150_v7 = vpop.f32.mrb[122].mxu1  ;;  %5287 = vmatprep.subr.bf16.mxu1 %v5250_v2 }
 0x729   : > { %v5217_v46 = vadd.f32 %v9621_v42, %v5150_v7  ;;  %v5152_v12 = vpop.f32.mrb[123].mxu1  ;;  %5288 = vmatpush1.bf16.msra.mxu1 %v5249_v1  ;;  %v5235_v15 = vmax.f32 %v5215_v5, 0.0  ;;  %5695 = vmatpush1.bf16.msra.mxu0 %v8012_v61  ;;  %v8023_v61 = vld [vmem:[%s9991_s13] sm:$0xff]  }
 0x72a   : > { %v5218_v59 = vadd.f32 %v9625_v43, %v5152_v12  ;;  %v5236_v23 = vmax.f32 %v5216_v44, 0.0 }
 0x72b   : > { %v5237_v60 = vmax.f32 %v5217_v46, 0.0 }
 0x72c   : > { %v5238_v10 = vmax.f32 %v5218_v59, 0.0 }
 0x72d   : > { %v5251_v11 = vpack.c.bf16 %v5237_v60, %v5235_v15 }
 0x72e   : > { %v5252_v30 = vpack.c.bf16 %v5238_v10, %v5236_v23  ;;  %v5156_v25 = vpop.f32.mrb[124].mxu1 }
 0x72f   : > { %v5219_v22 = vadd.f32 %v9621_v42, %v5156_v25  ;;  %v5158_v39 = vpop.f32.mrb[125].mxu1 }
 0x730   : > { %v5220_v3 = vadd.f32 %v9625_v43, %v5158_v39  ;;  %v5160_v27 = vpop.f32.mrb[126].mxu1  ;;  %5289 = vmatprep.subr.bf16.mxu1 %v5252_v30 }
 0x731   : > { %v5221_v29 = vadd.f32 %v9621_v42, %v5160_v27  ;;  %v5162_v58 = vpop.f32.mrb[127].mxu1  ;;  %5290 = vmatpush1.bf16.msra.mxu1 %v5251_v11  ;;  %v5239_v19 = vmax.f32 %v5219_v22, 0.0 }
 0x732   : > { %v5222_v0 = vadd.f32 %v9625_v43, %v5162_v58  ;;  %v5240_v28 = vmax.f32 %v5220_v3, 0.0  ;;  %v8014_v58 = vld [vmem:[%s9991_s13 + $0x28] sm:$0xff]  }
 0x733   : > { %v5241_v47 = vmax.f32 %v5221_v29, 0.0 }
 0x734   : > { %v5242_v54 = vmax.f32 %v5222_v0, 0.0  ;;  %v8016_v0 = vld [vmem:[%s9991_s13 + $0x50] sm:$0xff]  }
 0x735   : > { %v5253_v9 = vpack.c.bf16 %v5241_v47, %v5239_v19 }
 0x736   : > { %v5254_v57 = vpack.c.bf16 %v5242_v54, %v5240_v28  ;;  %v5166_v20 = vpop.f32.mrb[128].mxu1 }
 0x737   : > { %v5223_v35 = vadd.f32 %v9621_v42, %v5166_v20  ;;  %v5168_v38 = vpop.f32.mrb[129].mxu1  ;;  %v8018_v20 = vld [vmem:[%s9991_s13 + $0x58] sm:$0xff]  }
 0x738   : > { %v5224_v17 = vadd.f32 %v9625_v43, %v5168_v38  ;;  %v5170_v41 = vpop.f32.mrb[130].mxu1  ;;  %5291 = vmatprep.subr.bf16.mxu1 %v5254_v57 }
 0x739   : > { %v5225_v24 = vadd.f32 %v9621_v42, %v5170_v41  ;;  %v5172_v18 = vpop.f32.mrb[131].mxu1  ;;  %5292 = vmatpush1.bf16.msra.mxu1 %v5253_v9  ;;  %v5243_v50 = vmax.f32 %v5223_v35, 0.0  ;;  %v7989_v42 = vld [vmem:[%s9987_s9 + $0x8] sm:$0xff]  }
 0x73a   : > { %v5226_v49 = vadd.f32 %v9625_v43, %v5172_v18  ;;  %v5244_v51 = vmax.f32 %v5224_v17, 0.0  ;;  %v7990_v43 = vld [vmem:[%s9987_s9 + $0x10] ss:$0 sps:$4 sm:$0xff]   ;;  %v8017_v18 = vld [vmem:[%s9991_s13 + $0x38] sm:$0xff]  }
 0x73b   : > { %v5245_v21 = vmax.f32 %v5225_v24, 0.0 }
 0x73c   : > { %v5246_v34 = vmax.f32 %v5226_v49, 0.0 }
 0x73d   : > { %v5255_v31 = vpack.c.bf16 %v5245_v21, %v5243_v50 }
 0x73e   : > { %v5256_v26 = vpack.c.bf16 %v5246_v34, %v5244_v51 }
 0x740   : > { %5293 = vmatprep.subr.bf16.mxu1 %v5256_v26 }
 0x741   : > { %5294 = vmatpush1.bf16.msra.mxu1 %v5255_v31 }
 0x742   : > { %5373 = vmatprep.subr.bf16.mxu1 %v9633_v13  ;;  %v7992_v13 = vld [vmem:[%s9988_s10 + $0x8] sm:$0xff]  }
 0x744   : > { %7050 = vmatmul.mubr.msk.bf16.vlgmr.msra.gmra.mrb[132].mxu1 %vm5275_vm5, %v7988_v33 }
 0x745   : > { %5374 = vmatpush1.bf16.msra.mxu1 %v9631_v40  ;;  %5327 = vmatprep.mubr.bf16.mxu1 %v8117_v8  ;;  %v8002_v40 = vld [vmem:[%s9989_s11 + $0x8] sm:$0xff]  }
 0x746   : > { %5375 = vmatprep.subr.bf16.mxu1 %v5250_v2 }
 0x749   : > { %5376 = vmatpush1.bf16.msra.mxu1 %v5249_v1  ;;  %v8118_v1 = vmov 0.0  }
 0x74a   : > { %5377 = vmatprep.subr.bf16.mxu1 %v5252_v30  ;;  %7252 = vmatprep.subr.bf16.mxu0 %v8118_v1 }
 0x74c   : > { %7051 = vmatmul.mubr.msk.bf16.gmra.mrb[136].mxu1 %vm5275_vm5, %v7989_v42  ;;  %v8019_v42 = vld [vmem:[%s9991_s13 + $0x40] sm:$0xff]  }
 0x74d   : > { %5378 = vmatpush1.bf16.msra.mxu1 %v5251_v11  ;;  %5337 = vmatprep.mubr.bf16.mxu1 %v8117_v8 }
 0x74e   : > { %5379 = vmatprep.subr.bf16.mxu1 %v5254_v57  ;;  %v8015_v57 = vld [vmem:[%s9991_s13 + $0x30] sm:$0xff]  }
 0x751   : > { %5380 = vmatpush1.bf16.msra.mxu1 %v5253_v9 }
 0x752   : > { %5381 = vmatprep.subr.bf16.mxu1 %v5256_v26 }
 0x754   : > { %7052 = vmatmul.mubr.msk.bf16.gmra.mrb[140].mxu1 %vm5275_vm5, %v7990_v43  ;;  %v8020_v43 = vld [vmem:[%s9991_s13 + $0x60] sm:$0xff]  }
 0x755   : > { %5382 = vmatpush1.bf16.msra.mxu1 %v5255_v31  ;;  %5405 = vmatprep.mubr.bf16.mxu1 %v8117_v8 }
 0x756   : > { %5540 = vmatprep.subr.bf16.mxu1 %v8117_v8 }
 0x75c   : > { %7056 = vmatmul.mubr.msk.bf16.vlgmr.msra.gmra.mrb[144].mxu1 %vm5275_vm5, %v7991_v14  ;;  %v8021_v14 = vld [vmem:[%s9991_s13 + $0x48] sm:$0xff]  }
 0x75d   : > { %5415 = vmatprep.mubr.bf16.mxu1 %v8117_v8  ;;  %5541 = vmatpush1.bf16.msra.mxu1 %v8000_v45  ;;  %v8022_v45 = vld [vmem:[%s9991_s13 + $0x68] sm:$0xff]  }
 0x75e   : > { %5542 = vmatprep.subr.bf16.mxu1 %v8117_v8 }
 0x761   : > { %5543 = vmatpush1.bf16.msra.mxu1 %v8002_v40  ;;  %v8024_v40 = vld [vmem:[%s9991_s13 + $0x70] sm:$0xff]  }
 0x762   : > { %5544 = vmatprep.subr.bf16.mxu1 %v8117_v8 }
 0x764   : > { %7057 = vmatmul.mubr.msk.bf16.gmra.mrb[148].mxu1 %vm5275_vm5, %v7992_v13 }
 0x765   : > { %5425 = vmatprep.mubr.bf16.mxu1 %v8117_v8  ;;  %5545 = vmatpush1.bf16.msra.mxu1 %v8003_v48 }
 0x766   : > { %5546 = vmatprep.subr.bf16.mxu1 %v8117_v8 }
 0x769   : > { %5547 = vmatpush1.bf16.msra.mxu1 %v8005_v32 }
 0x76a   : > { %5548 = vmatprep.subr.bf16.mxu1 %v8117_v8 }
 0x76c   : > { %7058 = vmatmul.mubr.msk.bf16.gmra.mrb[152].mxu1 %vm5275_vm5, %v7993_v16 }
 0x76d   : > { %5549 = vmatpush1.bf16.msra.mxu1 %v8006_v36 }
 0x76e   : > { %5550 = vmatprep.subr.bf16.mxu1 %v8117_v8 }
 0x771   : > { %5551 = vmatpush1.bf16.msra.mxu1 %v8007_v37 }
 0x772   : > { %5552 = vmatprep.subr.bf16.mxu1 %v8117_v8 }
 0x775   : > { %5553 = vmatpush1.bf16.msra.mxu1 %v8009_v53 }
 0x776   : > { %5554 = vmatprep.subr.bf16.mxu1 %v8117_v8 }
 0x779   : > { %5555 = vmatpush1.bf16.msra.mxu1 %v8010_v55 }
 0x77a   : > { %5556 = vmatprep.subr.bf16.mxu1 %v8117_v8 }
 0x77d   : > { %5557 = vmatpush1.bf16.msra.mxu1 %v8011_v56 }
 0x77e   : > { %5558 = vmatprep.subr.bf16.mxu1 %v8117_v8 }
 0x781   : > { %5559 = vmatpush1.bf16.msra.mxu1 %v8013_v62 }
 0x782   : > { %7224 = vmatprep.subr.bf16.mxu1 %v8118_v1 }
 0x817   : > { %v5319_v2 = vpop.f32.mrb[132].mxu1 }
 0x818   : > { %v5321_v4 = vpop.f32.mrb[133].mxu1 }
 0x819   : > { %v5323_v5 = vpop.f32.mrb[134].mxu1 }
 0x81a   : > { %v5325_v6 = vpop.f32.mrb[135].mxu1 }
 0x81f   : > { %v5329_v8 = vpop.f32.mrb[136].mxu1 }
 0x820   : > { %v5331_v44 = vpop.f32.mrb[137].mxu1 }
 0x821   : > { %v5333_v7 = vpop.f32.mrb[138].mxu1 }
 0x822   : > { %v5335_v46 = vpop.f32.mrb[139].mxu1 }
 0x827   : > { %v5339_v12 = vpop.f32.mrb[140].mxu1 }
 0x828   : > { %v5341_v59 = vpop.f32.mrb[141].mxu1 }
 0x829   : > { %v5343_v15 = vpop.f32.mrb[142].mxu1 }
 0x82a   : > { %v5344_v60 = vpop.f32.mrb[143].mxu1 }
 0x82b   : > { %v8026_v60 = vld [vmem:[%s9991_s13 + $0xa0] sm:$0xff]  }
 0x82f   : > { %v5407_v23 = vpop.f32.mrb[144].mxu1 }
 0x830   : > { %v5434_v10 = vmax.f32 %v5319_v2, %v5407_v23  ;;  %v5409_v11 = vpop.f32.mrb[145].mxu1 }
 0x831   : > { %v5435_v30 = vmax.f32 %v5321_v4, %v5409_v11  ;;  %v5411_v25 = vpop.f32.mrb[146].mxu1 }
 0x832   : > { %v5436_v22 = vmax.f32 %v5323_v5, %v5411_v25  ;;  %v5413_v39 = vpop.f32.mrb[147].mxu1  ;;  %v8028_v25 = vld [vmem:[%s9991_s13 + $0xa8] sm:$0xff]  }
 0x833   : > { %v5437_v3 = vmax.f32 %v5325_v6, %v5413_v39 }
 0x834   : > { %v5444_v27 = vpack.c.bf16 %v5436_v22, %v5434_v10  ;;  %v8027_v10 = vld [vmem:[%s9991_s13 + $0x10] sm:$0xff]  }
 0x835   : > { %v5445_v29 = vpack.c.bf16 %v5437_v3, %v5435_v30 }
 0x837   : > { %v5417_v19 = vpop.f32.mrb[148].mxu1  ;;  %7069 = vmatprep.mubr.msk.bf16.mxu1 %vm5530_vm6, %v5445_v29  ;;  %7082 = vmatprep.mubr.msk.bf16.mxu0 %vm5530_vm6, %v5445_v29 }
 0x838   : > { %v5438_v47 = vmax.f32 %v5329_v8, %v5417_v19  ;;  %v5419_v28 = vpop.f32.mrb[149].mxu1  ;;  %5573 = vmatmul.mubr.bf16.vlgmr.msra.gmra.mrb[156].mxu1 %v5444_v27  ;;  %5709 = vmatmul.mubr.bf16.vlgmr.msra.gmra.mrb[56].mxu0 %v5444_v27 }
 0x839   : > { %v5439_v54 = vmax.f32 %v5331_v44, %v5419_v28  ;;  %v5421_v9 = vpop.f32.mrb[150].mxu1  ;;  %7225 = vmatpush3.bf16.msra.mxu1 %v8014_v58  ;;  %7253 = vmatpush3.bf16.msra.mxu0 %v8016_v0  ;;  %v8029_v58 = vld [vmem:[%s9991_s13 + $0x18] sm:$0xff]   ;;  %v8031_v28 = vld [vmem:[%s9991_s13 + $0x20] sm:$0xff]  }
 0x83a   : > { %v5440_v35 = vmax.f32 %v5333_v7, %v5421_v9  ;;  %v5423_v38 = vpop.f32.mrb[151].mxu1  ;;  %7226 = vmatprep.subr.bf16.mxu1 %v8118_v1  ;;  %7254 = vmatprep.subr.bf16.mxu0 %v8118_v1  ;;  %v8033_v9 = vld [vmem:[%s9991_s13 + $0x78] sm:$0xff]  }
 0x83b   : > { %v5441_v17 = vmax.f32 %v5335_v46, %v5423_v38  ;;  %v8025_v46 = vld [vmem:[%s9991_s13 + $0x8] sm:$0xff]  }
 0x83c   : > { %v5446_v41 = vpack.c.bf16 %v5440_v35, %v5438_v47  ;;  %v8030_v47 = vld [vmem:[%s9991_s13 + $0xb0] sm:$0xff]   ;;  %v8036_v38 = vld [vmem:[%s9991_s13 + $0x88] sm:$0xff]  }
 0x83d   : > { %v5447_v24 = vpack.c.bf16 %v5441_v17, %v5439_v54  ;;  %7227 = vmatpush3.bf16.msra.mxu1 %v8015_v57  ;;  %7255 = vmatpush3.bf16.msra.mxu0 %v8018_v20  ;;  %v8032_v54 = vld [vmem:[%s9991_s13 + $0xb8] sm:$0xff]   ;;  %v8034_v57 = vld [vmem:[%s9991_s13 + $0xc0] sm:$0xff]   ;;  %v8037_v17 = vld [vmem:[%s9991_s13 + $0x90] sm:$0xff]  }
 0x83e   : > { %7228 = vmatprep.subr.bf16.mxu1 %v8118_v1  ;;  %7256 = vmatprep.subr.bf16.mxu0 %v8118_v1  ;;  %v8035_v20 = vld [vmem:[%s9991_s13 + $0x80] sm:$0xff]  }
 0x83f   : > { %v5427_v49 = vpop.f32.mrb[152].mxu1  ;;  %7070 = vmatprep.mubr.msk.bf16.mxu1 %vm5530_vm6, %v5447_v24  ;;  %7083 = vmatprep.mubr.msk.bf16.mxu0 %vm5530_vm6, %v5447_v24 }
 0x840   : > { %v5442_v50 = vmax.f32 %v5339_v12, %v5427_v49  ;;  %v5429_v21 = vpop.f32.mrb[153].mxu1  ;;  %5581 = vmatmul.mubr.bf16.gmra.mrb[160].mxu1 %v5446_v41  ;;  %5717 = vmatmul.mubr.bf16.gmra.mrb[60].mxu0 %v5446_v41  ;;  %v8038_v41 = vld [vmem:[%s9991_s13 + $0x98] sm:$0xff]   ;;  %v8040_v49 = vld [vmem:[%s9993_s15 + $0x8] sm:$0xff]  }
 0x841   : > { %v5443_v51 = vmax.f32 %v5341_v59, %v5429_v21  ;;  %v5431_v34 = vpop.f32.mrb[154].mxu1  ;;  %7229 = vmatpush3.bf16.msra.mxu1 %v8017_v18  ;;  %7257 = vmatpush3.bf16.msra.mxu0 %v8020_v43  ;;  %v8039_v18 = vld [vmem:[%s9993_s15] sm:$0xff]   ;;  %v8042_v21 = vld [vmem:[%s9993_s15 + $0x18] sm:$0xff]   ;;  %v8048_v43 = vld [vmem:[%s9995_s17 + $0x8] sm:$0xff]  }
 0x842   : > { %v5432_v31 = vpop.f32.mrb[155].mxu1  ;;  %7230 = vmatprep.subr.bf16.mxu1 %v8118_v1  ;;  %v5448_v33 = vpack.c.bf16 %v5442_v50, %v5442_v50  ;;  %7258 = vmatprep.subr.bf16.mxu0 %v8118_v1  ;;  %v8041_v50 = vld [vmem:[%s9993_s15 + $0x10] sm:$0xff]   ;;  %v8044_v34 = vld [vmem:[%s9993_s15 + $0x28] sm:$0xff]  }
 0x843   : > { %v5449_v26 = vpack.c.bf16 %v5443_v51, %v5443_v51  ;;  %v8043_v51 = vld [vmem:[%s9993_s15 + $0x20] sm:$0xff]   ;;  %v8045_v31 = vld [vmem:[%s9993_s15 + $0x30] sm:$0xff]  }
 0x845   : > { %7071 = vmatprep.mubr.msk.bf16.mxu1 %vm5530_vm6, %v5449_v26  ;;  %7084 = vmatprep.mubr.msk.bf16.mxu0 %vm5530_vm6, %v5449_v26  ;;  %v8046_v26 = vld [vmem:[%s9993_s15 + $0x38] ss:$0 sps:$4 sm:$0xff]  }
 0x846   : > { %7231 = vmatpush3.bf16.msra.mxu1 %v8019_v42  ;;  %7259 = vmatpush3.bf16.msra.mxu0 %v8022_v45  ;;  %v8047_v42 = vld [vmem:[%s9995_s17] sm:$0xff]   ;;  %v8050_v45 = vld [vmem:[%s9995_s17 + $0x18] sm:$0xff]  }
 0x847   : > { %7232 = vmatprep.subr.bf16.mxu1 %v8118_v1  ;;  %7260 = vmatprep.subr.bf16.mxu0 %v8118_v1 }
 0x848   : > { %5589 = vmatmul.mubr.bf16.gmra.mrb[164].mxu1 %v5448_v33  ;;  %5725 = vmatmul.mubr.bf16.gmra.mrb[64].mxu0 %v5448_v33  ;;  %v6248_v33 = vsel %vm4004_vm1, %v8046_v26, 0 }
 0x849   : > { %7234 = vmatprep.mubr.msk.bf16.mxu1 %vm8119_vm7, %v8118_v1  ;;  %7262 = vmatprep.mubr.msk.bf16.mxu0 %vm8119_vm7, %v8118_v1 }
 0x84a   : > { %7233 = vmatpush3.bf16.msra.mxu1 %v8021_v14  ;;  %7261 = vmatpush3.bf16.msra.mxu0 %v8024_v40  ;;  %v8049_v14 = vld [vmem:[%s9995_s17 + $0x10] sm:$0xff]  }
 0x84b   : > { %7238 = vmatprep.subr.bf16.mxu1 %v8118_v1  ;;  %7280 = vmatprep.subr.bf16.mxu0 %v8118_v1 }
 0x90b   : > { %v5574_v13 = vpop.f32.mrb[156].mxu1  ;;  %v5710_v16 = vpop.f32.mrb[56].mxu0 }
 0x90c   : > { %v5732_v48 = vmax.f32 %v5574_v13, %v5710_v16  ;;  %v5576_v63 = vpop.f32.mrb[157].mxu1  ;;  %v5712_v32 = vpop.f32.mrb[57].mxu0 }
 0x90d   : > { %v5577_v36 = vpop.f32.mrb[158].mxu1  ;;  %v5713_v37 = vpop.f32.mrb[58].mxu0 }
 0x90e   : > { %v5733_v52 = vmax.f32 %v5577_v36, %v5713_v37  ;;  %v5579_v53 = vpop.f32.mrb[159].mxu1  ;;  %v5715_v55 = vpop.f32.mrb[59].mxu0 }
 0x910   : > { %v5737_v56 = vpack.c.bf16 %v5733_v52, %v5732_v48 }
 0x912   : > { %v5762_v62 = vrot.slane %v5737_v56, 4 }
 0x913   : > { %v5582_v2 = vpop.f32.mrb[160].mxu1  ;;  %v5718_v4 = vpop.f32.mrb[60].mxu0 }
 0x914   : > { %v5734_v5 = vmax.f32 %v5582_v2, %v5718_v4  ;;  %v5584_v6 = vpop.f32.mrb[161].mxu1  ;;  %v5720_v8 = vpop.f32.mrb[61].mxu0  ;;  %7235 = vmatmul.mubr.msk.bf16.vlgmr.msra.gmra.mrb[168].mxu1 %vm5275_vm5, %v5762_v62 }
 0x915   : > { %7239 = vmatpush3.bf16.msra.mxu1 %v8023_v61  ;;  %v5585_v44 = vpop.f32.mrb[162].mxu1  ;;  %v5721_v7 = vpop.f32.mrb[62].mxu0  ;;  %7248 = vmatprep.mubr.msk.bf16.mxu1 %vm8119_vm7, %v8118_v1 }
 0x916   : > { %v5735_v12 = vmax.f32 %v5585_v44, %v5721_v7  ;;  %v5587_v59 = vpop.f32.mrb[163].mxu1  ;;  %v5723_v15 = vpop.f32.mrb[63].mxu0  ;;  %7240 = vmatprep.subr.bf16.mxu1 %v8118_v1 }
 0x918   : > { %v5738_v23 = vpack.c.bf16 %v5735_v12, %v5734_v5 }
 0x919   : > { %7241 = vmatpush3.bf16.msra.mxu1 %v8025_v46  ;;  %v7155_v46 = vld [vmem:[%s9992_s14] ss:$0 sm:$0xff] }
 0x91a   : > { %7263 = vmatmul.mubr.msk.bf16.vlgmr.msra.gmra.mrb[68].mxu0 %vm5275_vm5, %v5738_v23  ;;  %7242 = vmatprep.subr.bf16.mxu1 %v8118_v1  ;;  %v6006_v24 = vrot.slane %v5738_v23, 4 }
 0x91b   : > { %7281 = vmatpush3.bf16.msra.mxu0 %v8026_v60  ;;  %v5590_v11 = vpop.f32.mrb[164].mxu1  ;;  %v5726_v30 = vpop.f32.mrb[64].mxu0  ;;  %7290 = vmatprep.mubr.msk.bf16.mxu0 %vm8119_vm7, %v8118_v1 }
 0x91c   : > { %v5736_v22 = vmax.f32 %v5590_v11, %v5726_v30  ;;  %v5592_v39 = vpop.f32.mrb[165].mxu1  ;;  %v5728_v3 = vpop.f32.mrb[65].mxu0  ;;  %7282 = vmatprep.subr.bf16.mxu0 %v8118_v1  ;;  %v8051_v11 = vld [vmem:[%s9995_s17 + $0x20] sm:$0xff]   ;;  %v8052_v30 = vld [vmem:[%s9995_s17 + $0x28] ss:$0 sps:$4 sm:$0x33]  }
 0x91d   : > { %7243 = vmatpush3.bf16.msra.mxu1 %v8027_v10  ;;  %v5593_v27 = vpop.f32.mrb[166].mxu1  ;;  %v5729_v29 = vpop.f32.mrb[66].mxu0 }
 0x91e   : > { %v5594_v0 = vpop.f32.mrb[167].mxu1  ;;  %v5730_v19 = vpop.f32.mrb[67].mxu0  ;;  %7244 = vmatprep.subr.bf16.mxu1 %v8118_v1  ;;  %v5739_v35 = vpack.c.bf16 %v5736_v22, %v5736_v22  ;;  %v7156_v22 = vld [vmem:[%s9994_s16] ss:$0 sm:$0xff] }
 0x91f   : > { %7283 = vmatpush3.bf16.msra.mxu0 %v8028_v25  ;;  %v6347_v25 = vsel %vm4406_vm3, %v8052_v30, 0 }
 0x920   : > { %7284 = vmatprep.subr.bf16.mxu0 %v8118_v1 }
 0x921   : > { %7245 = vmatpush3.bf16.msra.mxu1 %v8029_v58 }
 0x922   : > { %7246 = vmatprep.subr.bf16.mxu1 %v8118_v1 }
 0x923   : > { %7285 = vmatpush3.bf16.msra.mxu0 %v8030_v47 }
 0x924   : > { %7286 = vmatprep.subr.bf16.mxu0 %v8118_v1 }
 0x925   : > { %7247 = vmatpush3.bf16.msra.mxu1 %v8031_v28 }
 0x926   : > { %7266 = vmatprep.subr.bf16.mxu1 %v8118_v1 }
 0x927   : > { %7287 = vmatpush3.bf16.msra.mxu0 %v8032_v54 }
 0x928   : > { %7249 = vmatmul.mubr.msk.bf16.vlgmr.msra.gmra.mrb[172].mxu1 %vm5275_vm5, %v5737_v56  ;;  %7288 = vmatprep.subr.bf16.mxu0 %v8118_v1 }
 0x929   : > { %7267 = vmatpush3.bf16.msra.mxu1 %v8033_v9  ;;  %7276 = vmatprep.mubr.msk.bf16.mxu1 %vm8119_vm7, %v8118_v1 }
 0x92a   : > { %7268 = vmatprep.subr.bf16.mxu1 %v8118_v1 }
 0x92b   : > { %7289 = vmatpush3.bf16.msra.mxu0 %v8034_v57 }
 0x92c   : > { %7314 = vmatprep.subr.bf16.mxu0 %v8118_v1 }
 0x92d   : > { %7269 = vmatpush3.bf16.msra.mxu1 %v8035_v20 }
 0x92e   : > { %7291 = vmatmul.mubr.msk.bf16.vlgmr.msra.gmra.mrb[72].mxu0 %vm5275_vm5, %v5739_v35  ;;  %7270 = vmatprep.subr.bf16.mxu1 %v8118_v1 }
 0x92f   : > { %7326 = vmatprep.mubr.msk.bf16.mxu0 %vm8119_vm7, %v8118_v1  ;;  %7315 = vmatpush3.bf16.msra.mxu0 %v8047_v42 }
 0x930   : > { %7316 = vmatprep.subr.bf16.mxu0 %v8118_v1 }
 0x931   : > { %7271 = vmatpush3.bf16.msra.mxu1 %v8036_v38 }
 0x932   : > { %7272 = vmatprep.subr.bf16.mxu1 %v8118_v1 }
 0x933   : > { %7317 = vmatpush3.bf16.msra.mxu0 %v8048_v43 }
 0x934   : > { %7318 = vmatprep.subr.bf16.mxu0 %v8118_v1 }
 0x935   : > { %7273 = vmatpush3.bf16.msra.mxu1 %v8037_v17 }
 0x936   : > { %7274 = vmatprep.subr.bf16.mxu1 %v8118_v1 }
 0x937   : > { %7319 = vmatpush3.bf16.msra.mxu0 %v8049_v14 }
 0x938   : > { %7320 = vmatprep.subr.bf16.mxu0 %v8118_v1 }
 0x939   : > { %7275 = vmatpush3.bf16.msra.mxu1 %v8038_v41 }
 0x93a   : > { %7294 = vmatprep.subr.bf16.mxu1 %v8118_v1 }
 0x93b   : > { %7321 = vmatpush3.bf16.msra.mxu0 %v8050_v45 }
 0x93c   : > { %7277 = vmatmul.mubr.msk.bf16.vlgmr.msra.gmra.mrb[176].mxu1 %vm5275_vm5, %v6006_v24  ;;  %7322 = vmatprep.subr.bf16.mxu0 %v8118_v1 }
 0x93d   : > { %7310 = vmatprep.mubr.msk.bf16.mxu1 %vm8119_vm7, %v8118_v1  ;;  %7295 = vmatpush3.bf16.msra.mxu1 %v8039_v18 }
 0x93e   : > { %7296 = vmatprep.subr.bf16.mxu1 %v8118_v1 }
 0x93f   : > { %7323 = vmatpush3.bf16.msra.mxu0 %v8051_v11 }
 0x940   : > { %7324 = vmatprep.subr.bf16.mxu0 %v8118_v1 }
 0x941   : > { %7297 = vmatpush3.bf16.msra.mxu1 %v8040_v49 }
 0x942   : > { %7298 = vmatprep.subr.bf16.mxu1 %v8118_v1 }
 0x943   : > { %7325 = vmatpush3.bf16.msra.mxu0 %v6347_v25 }
 0x945   : > { %7299 = vmatpush3.bf16.msra.mxu1 %v8041_v50 }
 0x946   : > { %7300 = vmatprep.subr.bf16.mxu1 %v8118_v1 }
 0x949   : > { %7301 = vmatpush3.bf16.msra.mxu1 %v8042_v21 }
 0x94a   : > { %7302 = vmatprep.subr.bf16.mxu1 %v8118_v1 }
 0x94d   : > { %7303 = vmatpush3.bf16.msra.mxu1 %v8043_v51 }
 0x94e   : > { %7304 = vmatprep.subr.bf16.mxu1 %v8118_v1 }
 0x951   : > { %7305 = vmatpush3.bf16.msra.mxu1 %v8044_v34 }
 0x952   : > { %7306 = vmatprep.subr.bf16.mxu1 %v8118_v1 }
 0x955   : > { %7307 = vmatpush3.bf16.msra.mxu1 %v8045_v31 }
 0x956   : > { %7308 = vmatprep.subr.bf16.mxu1 %v8118_v1  ;;  %v7166_v1 = vld [vmem:[%s9996_s18] ss:$0 sm:$0xff] }
 0x959   : > { %7309 = vmatpush3.bf16.msra.mxu1 %v6248_v33 }
 0x9e7   : > { %v5830_v40 = vpop.f32.mrb[168].mxu1 }
 0x9e8   : > { %v7236_v13 = vpop.f32.mrb[169].mxu1 }
 0x9e9   : > { %v5833_v16 = vpop.f32.mrb[170].mxu1 }
 0x9ea   : > { %v7237_v48 = vpop.f32.mrb[171].mxu1 }
 0x9ed   : > { %v5987_v63 = vpop.f32.mrb[68].mxu0 }
 0x9ee   : > { %v7264_v32 = vpop.f32.mrb[69].mxu0 }
 0x9ef   : > { %v5990_v36 = vpop.f32.mrb[70].mxu0 }
 0x9f0   : > { %v7265_v37 = vpop.f32.mrb[71].mxu0 }
 0x9fb   : > { %v5903_v52 = vpop.f32.mrb[172].mxu1 }
 0x9fc   : > { %v5904_v53 = vadd.f32 %v5903_v52, %v5830_v40  ;;  %v7250_v55 = vpop.f32.mrb[173].mxu1 }
 0x9fd   : > { %v5906_v56 = vpop.f32.mrb[174].mxu1 }
 0x9fe   : > { %v7251_v61 = vpop.f32.mrb[175].mxu1  ;;  %v5993_v62 = vadd.f32 %v5987_v63, %v5904_v53 }
 0xa01   : > { %v6159_v2 = vpop.f32.mrb[72].mxu0 }
 0xa02   : > { %v7292_v4 = vpop.f32.mrb[73].mxu0 }
 0xa03   : > { %v6162_v5 = vpop.f32.mrb[74].mxu0 }
 0xa04   : > { %v7293_v6 = vpop.f32.mrb[75].mxu0 }
 0xa0f   : > { %v6074_v8 = vpop.f32.mrb[176].mxu1 }
 0xa10   : > { %v6080_v44 = vadd.f32 %v6074_v8, %v5993_v62  ;;  %v7278_v7 = vpop.f32.mrb[177].mxu1 }
 0xa11   : > { %v6077_v12 = vpop.f32.mrb[178].mxu1 }
 0xa12   : > { %v6165_v59 = vadd.f32 %v6159_v2, %v6080_v44  ;;  %v7279_v15 = vpop.f32.mrb[179].mxu1 }
 0xa14   : > { %v6173_v60 = vadd.f32 %v7155_v46, %v6165_v59 }
 0xa16   : > { %v6174_v23 = vmax.f32 %v6173_v60, 0.0 }
 0xa18   : > { %v6175_v10 = vpack.c.bf16 %v6174_v23, %v6174_v23 }
 0xa1a   : > { %7311 = vmatmul.mubr.msk.bf16.vlgmr.msra.gmra.mrb[180].mxu1 %vm6243_vm8, %v6175_v10 }
 0xaed   : > { %v6284_v39 = vpop.f32.mrb[180].mxu1 }
 0xaee   : > { %v6285_v3 = vadd.f32 %v7156_v22, %v6284_v39  ;;  %v7312_v27 = vpop.f32.mrb[181].mxu1 }
 0xaef   : > { %v6287_v29 = vpop.f32.mrb[182].mxu1 }
 0xaf0   : > { %v6290_v58 = vmax.f32 %v6285_v3, 0.0  ;;  %v7313_v0 = vpop.f32.mrb[183].mxu1 }
 0xaf2   : > { %v6291_v19 = vpack.c.bf16 %v6290_v58, %v6290_v58 }
 0xaf4   : > { %7327 = vmatmul.mubr.msk.bf16.vlgmr.msra.gmra.mrb[76].mxu0 %vm4390_vm4, %v6291_v19 }
 0xbc7   : > { %v6383_v47 = vpop.f32.mrb[76].mxu0 }
 0xbc8   : > { %v6384_v28 = vadd.f32 %v7166_v1, %v6383_v47  ;;  %v7328_v54 = vpop.f32.mrb[77].mxu0 }
 0xbc9   : > { %v6386_v9 = vpop.f32.mrb[78].mxu0 }
 0xbca   : > { %6389 = vst [vmem:[%s1198_s1] sm:$0xff] %v6384_v28  ;;  %v7329_v57 = vpop.f32.mrb[79].mxu0 }
 0xbcb   : > { %8066 = shalt.err (!%p8063_p5)
}
 0xbcc   : > { %s8067_s29 = scalar_lea.hbm %s9934_s23, 128  ;;  %s8071_s2 = scalar_lea.hbm %s9997_s19, 256 }
 0xbcd   : > { %p8068_p7 = scmp.ne.s32.totalorder %s9934_s23, %s8067_s29  ;;  %p8072_p12 = scmp.lt.u32.totalorder %s9934_s23, %s9997_s19 }
 0xbce   : > { %p8073_p13 = scmp.lt.u32.totalorder %s8071_s2, %s8067_s29  ;;  %p8075_p1 = scmp.lt.u32.totalorder %s8067_s29, %s9934_s23 }
 0xbcf   : > { %p8069_p10 = pnand %p8068_p7, %p8259_p6 }
 0xbd0   : > { %p8074_p0 = por %p8073_p13, %p8072_p12 }
 0xbd1   : > { %p8070_p11 = pneg %p8069_p10 }
 0xbd2   : > { %p8076_p2 = por %p8075_p1, %p8074_p0 }
 0xbd4   : > { %p8077_p3 = pnand %p8076_p2, %p8070_p11 }
 0xbd6   : > { %8080 = shalt.err (!%p8077_p3)
}
 0xbd7   : > { %7637 = dma.vmem_to_hbm [thread:$0]  (%p8259_p6), %s9936_s22, 128, %s9934_s23, %s6391_s0  }
 0xbd8 PF: > { %s10024_s26 = sld [smem:[#allocation6_spill]]  ;;  %p7640_p4 = pnand %p6471_p9, %p8263_p8 }
 0xbde   : > { %s6416_s20 = sand.u32 1, %s10024_s26  }
 0xbdf   : > { %s6417_s1 = scalar_lea.sflag [#allocation4], %s6416_s20 }
 0xbe0   : > { %8098 = dma.done.wait (!%p7640_p4), %s6417_s1, 128  }
 0xbe1   : > { %8100 = vsyncadd (!%p7640_p4), %s6417_s1, 4294967168  ;;  %s10026_s21 = sld [smem:[#allocation9_spill]]  ;;  %s10027_s0 = sld [smem:[#allocation7_spill]] }
 0xbe2   : > { %s10028_s30 = sld [smem:[#allocation8_spill]]  ;;  %s10029_s20 = sld [smem:[#allocation10_spill]] }
 0xbe7   : > { %p29_p5 = scmp.ge.s32.totalorder %s10026_s21, 4  }
 0xbe9   :  { %31 = sbr.rel (!%p29_p5) target bundleno = 8 (0x8), region = 193 }
 0xbf0   :  { %6422 = vsyncpa [#allocation4], 1 }
 0xbf1   :  { %6424 = vsyncpa [#allocation4 + $0x1], 1 }

</bundles_post_ra>
